<compile_context>
chip_gen: v6e
topology: v6e:2x2x1
jax: 0.10.0
libtpu: 0.0.40
codegen_flags: <defaults>
</compile_context>

<pallas_src>
import functools

import jax
import jax.numpy as jnp
from jax.experimental import pallas as pl
from jax.experimental.pallas import tpu as pltpu

LANE = 128
LV_OFF = 64  # lane offset of logvar inside the packed 128-lane [mu | logvar] head block


def _round_up(n, m):
    return ((n + m - 1) // m) * m


def vae_kernel(x_ref, eps_ref,
               w1_ref, b1_ref, w2_ref, b2_ref,
               whd_ref, bhd_ref,
               w3_ref, b3_ref, w4_ref, b4_ref, w5_ref, b5_ref,
               out_ref, xpad_ref, zpad_ref,
               *, input_dim, latent_dim, in_p):
    """One batch-tile of the full VAE forward.

    Matmuls run on the MXU with f32 accumulation; weight refs are bf16 by
    default (f32 on the exact path).  Elementwise math stays f32.
    """
    f32 = jnp.float32
    mm = w1_ref.dtype  # matmul operand dtype (bf16 fast path or f32 exact path)

    # Embed the narrow (tb, input_dim) input tile into a zero-padded 128-lane
    # VMEM scratch: HBM traffic stays at the true input width while every MXU
    # matmul sees a lane-aligned K (padding lanes are exactly zero).
    xpad_ref[...] = jnp.zeros_like(xpad_ref)
    xpad_ref[:, :input_dim] = x_ref[...]
    x = xpad_ref[...]

    # ---- encoder ----
    h = jnp.dot(x.astype(mm), w1_ref[...], preferred_element_type=f32) + b1_ref[...]
    h = jnp.maximum(h, 0.0)
    h = jnp.dot(h.astype(mm), w2_ref[...], preferred_element_type=f32) + b2_ref[...]
    h = jnp.maximum(h, 0.0)

    # ---- fused latent heads: ONE matmul into a single 128-lane block ----
    # mu -> lanes [0, latent_dim), logvar -> lanes [LV_OFF, LV_OFF + latent_dim)
    heads = jnp.dot(h.astype(mm), whd_ref[...], preferred_element_type=f32) + bhd_ref[...]
    mu = heads[:, :latent_dim]
    logvar = heads[:, LV_OFF:LV_OFF + latent_dim]

    # ---- reparameterize (f32 VPU/EUP math) ----
    # TODO(synk): optionally sample eps in-kernel (pltpu.prng_seed +
    # pltpu.stateful_normal with a scalar-prefetch seed) to drop the eps stream
    # entirely; kept as an explicit input to match the reference RNG exactly.
    z = mu + eps_ref[...] * jnp.exp(0.5 * logvar)

    # Embed z into a zero-padded 128-lane scratch for the aligned decoder
    # matmul (w3 rows >= latent_dim are zero, so the result is exact).
    zpad_ref[...] = jnp.zeros_like(zpad_ref)
    zpad_ref[:, :latent_dim] = z
    zf = zpad_ref[...]

    # ---- decoder ----
    d = jnp.dot(zf.astype(mm), w3_ref[...], preferred_element_type=f32) + b3_ref[...]
    d = jnp.maximum(d, 0.0)
    d = jnp.dot(d.astype(mm), w4_ref[...], preferred_element_type=f32) + b4_ref[...]
    d = jnp.maximum(d, 0.0)
    logits = jnp.dot(d.astype(mm), w5_ref[...], preferred_element_type=f32) + b5_ref[...]
    recon = jax.nn.sigmoid(logits)

    # ---- two direct sub-slice stores at 128-lane-aligned offsets (no concat temp) ----
    out_ref[:, :in_p] = recon.astype(out_ref.dtype)
    out_ref[:, in_p:] = heads.astype(out_ref.dtype)


def vae_forward(x, eps, params, *, tb=None, matmul_dtype=jnp.bfloat16,
                out_dtype=jnp.float32):
    """Run the fused VAE forward kernel.

    x:   (B, input_dim) float32
    eps: (B, latent_dim) float32, standard-normal noise for reparameterization
    params: dict of pre-transposed weights (in, out) and (1, out) biases
    tb:  batch tile (rows per grid step); default picks 256-1024 row tiles with
         >= 2 grid steps for real batches (multiples of 256 for v6e/v7x MXU).
    matmul_dtype: jnp.bfloat16 (MXU fast path, default on all generations) or
         jnp.float32 (exact / debug path).
    out_dtype: dtype of the packed output slab (bf16 halves HBM writeback on
         the bf16 path if the looser tolerance is acceptable).
    """
    B, input_dim = x.shape
    latent_dim = params["wmu"].shape[1]
    hidden = params["w1"].shape[1]
    half = params["w2"].shape[1]
    assert hidden % LANE == 0 and half % LANE == 0
    assert latent_dim <= LV_OFF, "packed mu|logvar head block needs latent_dim <= 64"

    in_p = _round_up(input_dim, LANE)   # recon lanes in the packed output slab
    lat_p = LANE                        # padded z width for the decoder matmul
    head_w = LANE                       # packed [mu | logvar] block width
    out_w = in_p + head_w               # 256 for input_dim<=128

    # Batch tiling: aim for >= 2 grid steps (both v7x TensorCores busy) with row
    # tiles that are multiples of 256 (fills the 256-wide v6e/v7x MXU), capped
    # at 1024 rows/step; tiny batches get a single right-sized step.
    if tb is None:
        tb = max(256, min(1024, _round_up(-(-B // 2), 256)))
    tb = max(8, _round_up(min(tb, _round_up(B, 8)), 8))
    B_pad = _round_up(B, tb)
    grid = (B_pad // tb,)

    f32 = jnp.float32
    mmd = matmul_dtype

    # Inputs keep their true lane widths (no 8x / 12.8x zero-pad in HBM); only
    # ragged batch rows are padded.
    xp = jnp.pad(x.astype(f32), ((0, B_pad - B), (0, 0)))
    epsp = jnp.pad(eps.astype(f32), ((0, B_pad - B), (0, 0)))

    # Weights pre-transposed (in, out), zero-padded only where a lane-aligned
    # K/N is needed (one-time, tiny).  Matmul operands in matmul_dtype, biases
    # stay f32 (added after the f32 accumulation).
    def pad2(a, shape, dt):
        return jnp.pad(a, [(0, s - d) for d, s in zip(a.shape, shape)]).astype(dt)

    w1 = pad2(params["w1"], (in_p, hidden), mmd)
    b1 = params["b1"].astype(f32)
    w2 = params["w2"].astype(mmd)
    b2 = params["b2"].astype(f32)

    # Fused mu/logvar head packed into ONE 128-lane block.
    whd = jnp.zeros((half, head_w), f32)
    whd = whd.at[:, :latent_dim].set(params["wmu"])
    whd = whd.at[:, LV_OFF:LV_OFF + latent_dim].set(params["wlv"])
    whd = whd.astype(mmd)
    bhd = jnp.zeros((1, head_w), f32)
    bhd = bhd.at[:, :latent_dim].set(params["bmu"])
    bhd = bhd.at[:, LV_OFF:LV_OFF + latent_dim].set(params["blv"])

    w3 = pad2(params["w3"], (lat_p, half), mmd)
    b3 = params["b3"].astype(f32)
    w4 = params["w4"].astype(mmd)
    b4 = params["b4"].astype(f32)
    w5 = pad2(params["w5"], (hidden, in_p), mmd)
    b5 = pad2(params["b5"], (1, in_p), f32)

    weight_args = [w1, b1, w2, b2, whd, bhd, w3, b3, w4, b4, w5, b5]

    def row_spec(w):
        return pl.BlockSpec((tb, w), lambda i: (i, 0))

    def const_spec(shape):
        # Grid-invariant weight block (same tile every batch step; never re-fetched).
        # TODO(synk): pipeline_mode=pl.Buffered(1) to drop the 2x weight residency
        # (matters on v7x if hidden_dim scales to 2-4K); at hidden=256 the duplicate
        # is < 1 MiB so default buffering is kept for portability.
        return pl.BlockSpec(shape, lambda i: (0, 0))

    # Explicit VMEM budget from the tile math (double-buffered I/O tiles +
    # 2x weights + scratch + headroom), capped at v7x's 64 MiB physical VMEM.
    out_itemsize = jnp.dtype(out_dtype).itemsize
    weight_bytes = sum(int(w.size) * w.dtype.itemsize for w in weight_args)
    io_tile_bytes = 2 * tb * (4 * (input_dim + latent_dim) + out_itemsize * out_w)
    scratch_bytes = 4 * tb * (in_p + lat_p)
    vmem_limit = int(1.5 * (io_tile_bytes + 2 * weight_bytes + scratch_bytes)) + (4 << 20)
    vmem_limit = min(64 << 20, max(32 << 20, vmem_limit))

    # Advisory cost estimate so XLA can overlap surrounding ops with this
    # tiny, latency-bound custom call.
    macs = (input_dim * hidden + hidden * half + half * 2 * latent_dim
            + latent_dim * half + half * hidden + hidden * input_dim)
    cost = pl.CostEstimate(
        flops=2 * B_pad * macs,
        transcendentals=B_pad * (latent_dim + input_dim),
        bytes_accessed=int(xp.size * 4 + epsp.size * 4 + weight_bytes
                           + B_pad * out_w * out_itemsize),
    )

    fn = pl.pallas_call(
        functools.partial(vae_kernel, input_dim=input_dim,
                          latent_dim=latent_dim, in_p=in_p),
        out_shape=jax.ShapeDtypeStruct((B_pad, out_w), out_dtype),
        grid_spec=pltpu.PrefetchScalarGridSpec(
            num_scalar_prefetch=0,
            grid=grid,
            in_specs=[row_spec(input_dim), row_spec(latent_dim)]
                     + [const_spec(w.shape) for w in weight_args],
            out_specs=row_spec(out_w),
            scratch_shapes=[pltpu.VMEM((tb, in_p), f32),
                            pltpu.VMEM((tb, lat_p), f32)],
        ),
        compiler_params=pltpu.CompilerParams(
            # Batch-parallel grid: shards across v7x's two TensorCores when grid >= 2.
            dimension_semantics=("parallel",),
            vmem_limit_bytes=vmem_limit,
        ),
        cost_estimate=cost,
    )

    packed = fn(xp, epsp, *weight_args)

    recon = packed[:B, :input_dim]
    mu = packed[:B, in_p:in_p + latent_dim]
    logvar = packed[:B, in_p + LV_OFF:in_p + LV_OFF + latent_dim]
    return recon, mu, logvar


def init_params(key, input_dim, latent_dim, hidden_dim=256):
    """Deterministic init mirroring nn.Linear default (uniform(-1/sqrt(in), 1/sqrt(in))).
    Weights are stored pre-transposed as (in, out); biases as (1, out)."""
    dims = {
        "w1": (input_dim, hidden_dim),
        "w2": (hidden_dim, hidden_dim // 2),
        "wmu": (hidden_dim // 2, latent_dim),
        "wlv": (hidden_dim // 2, latent_dim),
        "w3": (latent_dim, hidden_dim // 2),
        "w4": (hidden_dim // 2, hidden_dim),
        "w5": (hidden_dim, input_dim),
    }
    params = {}
    keys = jax.random.split(key, 2 * len(dims))
    for i, (name, (fan_in, fan_out)) in enumerate(dims.items()):
        bound = 1.0 / jnp.sqrt(jnp.float32(fan_in))
        params[name] = jax.random.uniform(
            keys[2 * i], (fan_in, fan_out), jnp.float32, -bound, bound)
        params[name.replace("w", "b", 1)] = jax.random.uniform(
            keys[2 * i + 1], (1, fan_out), jnp.float32, -bound, bound)
    return params


if __name__ == "__main__":
    # Small tabular shapes consistent with the module: x of (batch, input_dim).
    # B=512 -> two 256-row tiles: both v7x TensorCores busy, MXU-filling tiles.
    B = 512
    INPUT_DIM = 16
    LATENT_DIM = 10
    HIDDEN_DIM = 256

    key = jax.random.PRNGKey(0)
    k_x, k_eps, k_params = jax.random.split(key, 3)

    # df is MinMax-scaled to [0, 1] in the reference pipeline.
    x = jax.random.uniform(k_x, (B, INPUT_DIM), jnp.float32)
    eps = jax.random.normal(k_eps, (B, LATENT_DIM), jnp.float32)
    params = init_params(k_params, INPUT_DIM, LATENT_DIM, HIDDEN_DIM)

    # Pure-JAX reference.
    def ref(x, eps, p):
        h = jnp.maximum(x @ p["w1"] + p["b1"], 0.0)
        h = jnp.maximum(h @ p["w2"] + p["b2"], 0.0)
        mu = h @ p["wmu"] + p["bmu"]
        lv = h @ p["wlv"] + p["blv"]
        z = mu + eps * jnp.exp(0.5 * lv)
        d = jnp.maximum(z @ p["w3"] + p["b3"], 0.0)
        d = jnp.maximum(d @ p["w4"] + p["b4"], 0.0)
        return jax.nn.sigmoid(d @ p["w5"] + p["b5"]), mu, lv

    r_ref, mu_ref, lv_ref = ref(x, eps, params)

    # Exact path: f32 MXU operands.
    recon, mu, logvar = vae_forward(x, eps, params, matmul_dtype=jnp.float32)
    jax.block_until_ready((recon, mu, logvar))
    assert jnp.allclose(recon, r_ref, atol=1e-5, rtol=1e-5)
    assert jnp.allclose(mu, mu_ref, atol=1e-5, rtol=1e-5)
    assert jnp.allclose(logvar, lv_ref, atol=1e-5, rtol=1e-5)

    # Default fast path: bf16 MXU operands, f32 accumulation & elementwise math.
    recon_bf, mu_bf, lv_bf = vae_forward(x, eps, params)
    jax.block_until_ready((recon_bf, mu_bf, lv_bf))
    assert jnp.allclose(recon_bf, r_ref, atol=5e-2, rtol=5e-2)
    assert jnp.allclose(mu_bf, mu_ref, atol=5e-2, rtol=5e-2)
    assert jnp.allclose(lv_bf, lv_ref, atol=5e-2, rtol=5e-2)

    print("KERNEL_OK")
</pallas_src>

<mosaic_0001>
module attributes {stable_mosaic.version = 11 : i64} {
  func.func @vae_kernel(%arg0: i32, %arg1: memref<256x16xf32, #tpu.memory_space<vmem>>, %arg2: memref<256x10xf32, #tpu.memory_space<vmem>>, %arg3: memref<128x256xf32, #tpu.memory_space<vmem>>, %arg4: memref<1x256xf32, #tpu.memory_space<vmem>>, %arg5: memref<256x128xf32, #tpu.memory_space<vmem>>, %arg6: memref<1x128xf32, #tpu.memory_space<vmem>>, %arg7: memref<128x128xf32, #tpu.memory_space<vmem>>, %arg8: memref<1x128xf32, #tpu.memory_space<vmem>>, %arg9: memref<128x128xf32, #tpu.memory_space<vmem>>, %arg10: memref<1x128xf32, #tpu.memory_space<vmem>>, %arg11: memref<128x256xf32, #tpu.memory_space<vmem>>, %arg12: memref<1x256xf32, #tpu.memory_space<vmem>>, %arg13: memref<256x128xf32, #tpu.memory_space<vmem>>, %arg14: memref<1x128xf32, #tpu.memory_space<vmem>>, %arg15: memref<256x256xf32, #tpu.memory_space<vmem>>, %arg16: memref<256x128xf32, #tpu.memory_space<vmem>>, %arg17: memref<256x128xf32, #tpu.memory_space<vmem>>) attributes {dimension_semantics = [#tpu.dimension_semantics<parallel>], iteration_bounds = array<i64: 2>, scalar_prefetch = 0 : i64, scratch_operands = 2 : i64, tpu.core_type = #tpu.core_type<tc>, window_params = [{transform_indices = @transform_0, window_bounds = array<i64: 256, 16>}, {transform_indices = @transform_1, window_bounds = array<i64: 256, 10>}, {pipeline_mode = #tpu.pipeline_mode<synchronous>, transform_indices = @transform_2, window_bounds = array<i64: 128, 256>}, {pipeline_mode = #tpu.pipeline_mode<synchronous>, transform_indices = @transform_3, window_bounds = array<i64: 1, 256>}, {pipeline_mode = #tpu.pipeline_mode<synchronous>, transform_indices = @transform_4, window_bounds = array<i64: 256, 128>}, {pipeline_mode = #tpu.pipeline_mode<synchronous>, transform_indices = @transform_5, window_bounds = array<i64: 1, 128>}, {pipeline_mode = #tpu.pipeline_mode<synchronous>, transform_indices = @transform_6, window_bounds = array<i64: 128, 128>}, {pipeline_mode = #tpu.pipeline_mode<synchronous>, transform_indices = @transform_7, window_bounds = array<i64: 1, 128>}, {pipeline_mode = #tpu.pipeline_mode<synchronous>, transform_indices = @transform_8, window_bounds = array<i64: 128, 128>}, {pipeline_mode = #tpu.pipeline_mode<synchronous>, transform_indices = @transform_9, window_bounds = array<i64: 1, 128>}, {pipeline_mode = #tpu.pipeline_mode<synchronous>, transform_indices = @transform_10, window_bounds = array<i64: 128, 256>}, {pipeline_mode = #tpu.pipeline_mode<synchronous>, transform_indices = @transform_11, window_bounds = array<i64: 1, 256>}, {pipeline_mode = #tpu.pipeline_mode<synchronous>, transform_indices = @transform_12, window_bounds = array<i64: 256, 128>}, {pipeline_mode = #tpu.pipeline_mode<synchronous>, transform_indices = @transform_13, window_bounds = array<i64: 1, 128>}, {transform_indices = @transform_14, window_bounds = array<i64: 256, 256>}]} {
    %cst = arith.constant 0.000000e+00 : f32
    %0 = vector.broadcast %cst : f32 to vector<256x128xf32>
    %c0 = arith.constant 0 : index
    %c0_0 = arith.constant 0 : index
    %1 = vector.load %arg16[%c0, %c0_0] : memref<256x128xf32, #tpu.memory_space<vmem>>, vector<256x128xf32>
    tpu.vector_store %arg16[%c0, %c0_0], %0 {strides = array<i32>} : memref<256x128xf32, #tpu.memory_space<vmem>>, vector<256x128xf32>,
    %c0_1 = arith.constant 0 : index
    %c0_2 = arith.constant 0 : index
    %2 = vector.load %arg1[%c0_1, %c0_2] : memref<256x16xf32, #tpu.memory_space<vmem>>, vector<256x16xf32>
    %c0_3 = arith.constant 0 : index
    %c0_4 = arith.constant 0 : index
    %3 = vector.load %arg16[%c0_3, %c0_4] : memref<256x128xf32, #tpu.memory_space<vmem>>, vector<256x16xf32>
    tpu.vector_store %arg16[%c0_3, %c0_4], %2 {strides = array<i32>} : memref<256x128xf32, #tpu.memory_space<vmem>>, vector<256x16xf32>,
    %c0_5 = arith.constant 0 : index
    %c0_6 = arith.constant 0 : index
    %4 = vector.load %arg16[%c0_5, %c0_6] : memref<256x128xf32, #tpu.memory_space<vmem>>, vector<256x128xf32>
    %c0_7 = arith.constant 0 : index
    %c0_8 = arith.constant 0 : index
    %5 = vector.load %arg3[%c0_7, %c0_8] : memref<128x256xf32, #tpu.memory_space<vmem>>, vector<128x256xf32>
    %cst_9 = arith.constant dense<0.000000e+00> : vector<256x256xf32>
    %6 = tpu.matmul %4, %5, %cst_9 {dimension_numbers = #tpu.dot_dimension_numbers<[1], [0], [0], [1], [0, 0, 1, 1], [], []>} : vector<256x128xf32>, vector<128x256xf32>, vector<256x256xf32> -> vector<256x256xf32>
    %c0_10 = arith.constant 0 : index
    %c0_11 = arith.constant 0 : index
    %7 = vector.load %arg4[%c0_10, %c0_11] : memref<1x256xf32, #tpu.memory_space<vmem>>, vector<1x256xf32>
    %8 = vector.broadcast %7 : vector<1x256xf32> to vector<256x256xf32>
    %9 = arith.addf %6, %8 : vector<256x256xf32>
    %cst_12 = arith.constant 0.000000e+00 : f32
    %10 = vector.broadcast %cst_12 : f32 to vector<256x256xf32>
    %11 = arith.maximumf %9, %10 : vector<256x256xf32>
    %c0_13 = arith.constant 0 : index
    %c0_14 = arith.constant 0 : index
    %12 = vector.load %arg5[%c0_13, %c0_14] : memref<256x128xf32, #tpu.memory_space<vmem>>, vector<256x128xf32>
    %cst_15 = arith.constant dense<0.000000e+00> : vector<256x128xf32>
    %13 = tpu.matmul %11, %12, %cst_15 {dimension_numbers = #tpu.dot_dimension_numbers<[1], [0], [0], [1], [0, 0, 1, 1], [], []>} : vector<256x256xf32>, vector<256x128xf32>, vector<256x128xf32> -> vector<256x128xf32>
    %c0_16 = arith.constant 0 : index
    %c0_17 = arith.constant 0 : index
    %14 = vector.load %arg6[%c0_16, %c0_17] : memref<1x128xf32, #tpu.memory_space<vmem>>, vector<1x128xf32>
    %15 = vector.broadcast %14 : vector<1x128xf32> to vector<256x128xf32>
    %16 = arith.addf %13, %15 : vector<256x128xf32>
    %cst_18 = arith.constant 0.000000e+00 : f32
    %17 = vector.broadcast %cst_18 : f32 to vector<256x128xf32>
    %18 = arith.maximumf %16, %17 : vector<256x128xf32>
    %c0_19 = arith.constant 0 : index
    %c0_20 = arith.constant 0 : index
    %19 = vector.load %arg7[%c0_19, %c0_20] : memref<128x128xf32, #tpu.memory_space<vmem>>, vector<128x128xf32>
    %cst_21 = arith.constant dense<0.000000e+00> : vector<256x128xf32>
    %20 = tpu.matmul %18, %19, %cst_21 {dimension_numbers = #tpu.dot_dimension_numbers<[1], [0], [0], [1], [0, 0, 1, 1], [], []>} : vector<256x128xf32>, vector<128x128xf32>, vector<256x128xf32> -> vector<256x128xf32>
    %c0_22 = arith.constant 0 : index
    %c0_23 = arith.constant 0 : index
    %21 = vector.load %arg8[%c0_22, %c0_23] : memref<1x128xf32, #tpu.memory_space<vmem>>, vector<1x128xf32>
    %22 = vector.broadcast %21 : vector<1x128xf32> to vector<256x128xf32>
    %23 = arith.addf %20, %22 : vector<256x128xf32>
    %24 = vector.extract_strided_slice %23 {offsets = [0, 0], sizes = [256, 10], strides = [1, 1]} : vector<256x128xf32> to vector<256x10xf32>
    %25 = vector.extract_strided_slice %23 {offsets = [0, 64], sizes = [256, 10], strides = [1, 1]} : vector<256x128xf32> to vector<256x10xf32>
    %c0_24 = arith.constant 0 : index
    %c0_25 = arith.constant 0 : index
    %26 = vector.load %arg2[%c0_24, %c0_25] : memref<256x10xf32, #tpu.memory_space<vmem>>, vector<256x10xf32>
    %cst_26 = arith.constant 5.000000e-01 : f32
    %27 = vector.broadcast %cst_26 : f32 to vector<256x10xf32>
    %28 = arith.mulf %27, %25 : vector<256x10xf32>
    %29 = math.exp %28 : vector<256x10xf32>
    %30 = arith.mulf %26, %29 : vector<256x10xf32>
    %31 = arith.addf %24, %30 : vector<256x10xf32>
    %cst_27 = arith.constant 0.000000e+00 : f32
    %32 = vector.broadcast %cst_27 : f32 to vector<256x128xf32>
    %c0_28 = arith.constant 0 : index
    %c0_29 = arith.constant 0 : index
    %33 = vector.load %arg17[%c0_28, %c0_29] : memref<256x128xf32, #tpu.memory_space<vmem>>, vector<256x128xf32>
    tpu.vector_store %arg17[%c0_28, %c0_29], %32 {strides = array<i32>} : memref<256x128xf32, #tpu.memory_space<vmem>>, vector<256x128xf32>,
    %c0_30 = arith.constant 0 : index
    %c0_31 = arith.constant 0 : index
    %34 = vector.load %arg17[%c0_30, %c0_31] : memref<256x128xf32, #tpu.memory_space<vmem>>, vector<256x10xf32>
    tpu.vector_store %arg17[%c0_30, %c0_31], %31 {strides = array<i32>} : memref<256x128xf32, #tpu.memory_space<vmem>>, vector<256x10xf32>,
    %c0_32 = arith.constant 0 : index
    %c0_33 = arith.constant 0 : index
    %35 = vector.load %arg17[%c0_32, %c0_33] : memref<256x128xf32, #tpu.memory_space<vmem>>, vector<256x128xf32>
    %c0_34 = arith.constant 0 : index
    %c0_35 = arith.constant 0 : index
    %36 = vector.load %arg9[%c0_34, %c0_35] : memref<128x128xf32, #tpu.memory_space<vmem>>, vector<128x128xf32>
    %cst_36 = arith.constant dense<0.000000e+00> : vector<256x128xf32>
    %37 = tpu.matmul %35, %36, %cst_36 {dimension_numbers = #tpu.dot_dimension_numbers<[1], [0], [0], [1], [0, 0, 1, 1], [], []>} : vector<256x128xf32>, vector<128x128xf32>, vector<256x128xf32> -> vector<256x128xf32>
    %c0_37 = arith.constant 0 : index
    %c0_38 = arith.constant 0 : index
    %38 = vector.load %arg10[%c0_37, %c0_38] : memref<1x128xf32, #tpu.memory_space<vmem>>, vector<1x128xf32>
    %39 = vector.broadcast %38 : vector<1x128xf32> to vector<256x128xf32>
    %40 = arith.addf %37, %39 : vector<256x128xf32>
    %cst_39 = arith.constant 0.000000e+00 : f32
    %41 = vector.broadcast %cst_39 : f32 to vector<256x128xf32>
    %42 = arith.maximumf %40, %41 : vector<256x128xf32>
    %c0_40 = arith.constant 0 : index
    %c0_41 = arith.constant 0 : index
    %43 = vector.load %arg11[%c0_40, %c0_41] : memref<128x256xf32, #tpu.memory_space<vmem>>, vector<128x256xf32>
    %cst_42 = arith.constant dense<0.000000e+00> : vector<256x256xf32>
    %44 = tpu.matmul %42, %43, %cst_42 {dimension_numbers = #tpu.dot_dimension_numbers<[1], [0], [0], [1], [0, 0, 1, 1], [], []>} : vector<256x128xf32>, vector<128x256xf32>, vector<256x256xf32> -> vector<256x256xf32>
    %c0_43 = arith.constant 0 : index
    %c0_44 = arith.constant 0 : index
    %45 = vector.load %arg12[%c0_43, %c0_44] : memref<1x256xf32, #tpu.memory_space<vmem>>, vector<1x256xf32>
    %46 = vector.broadcast %45 : vector<1x256xf32> to vector<256x256xf32>
    %47 = arith.addf %44, %46 : vector<256x256xf32>
    %cst_45 = arith.constant 0.000000e+00 : f32
    %48 = vector.broadcast %cst_45 : f32 to vector<256x256xf32>
    %49 = arith.maximumf %47, %48 : vector<256x256xf32>
    %c0_46 = arith.constant 0 : index
    %c0_47 = arith.constant 0 : index
    %50 = vector.load %arg13[%c0_46, %c0_47] : memref<256x128xf32, #tpu.memory_space<vmem>>, vector<256x128xf32>
    %cst_48 = arith.constant dense<0.000000e+00> : vector<256x128xf32>
    %51 = tpu.matmul %49, %50, %cst_48 {dimension_numbers = #tpu.dot_dimension_numbers<[1], [0], [0], [1], [0, 0, 1, 1], [], []>} : vector<256x256xf32>, vector<256x128xf32>, vector<256x128xf32> -> vector<256x128xf32>
    %c0_49 = arith.constant 0 : index
    %c0_50 = arith.constant 0 : index
    %52 = vector.load %arg14[%c0_49, %c0_50] : memref<1x128xf32, #tpu.memory_space<vmem>>, vector<1x128xf32>
    %53 = vector.broadcast %52 : vector<1x128xf32> to vector<256x128xf32>
    %54 = arith.addf %51, %53 : vector<256x128xf32>
    %55 = arith.negf %54 : vector<256x128xf32>
    %56 = math.exp %55 : vector<256x128xf32>
    %cst_51 = arith.constant 1.000000e+00 : f32
    %57 = vector.broadcast %cst_51 : f32 to vector<256x128xf32>
    %58 = arith.addf %57, %56 : vector<256x128xf32>
    %59 = arith.divf %57, %58 : vector<256x128xf32>
    %c0_52 = arith.constant 0 : index
    %c0_53 = arith.constant 0 : index
    %60 = vector.load %arg15[%c0_52, %c0_53] : memref<256x256xf32, #tpu.memory_space<vmem>>, vector<256x128xf32>
    tpu.vector_store %arg15[%c0_52, %c0_53], %59 {strides = array<i32>} : memref<256x256xf32, #tpu.memory_space<vmem>>, vector<256x128xf32>,
    %c0_54 = arith.constant 0 : index
    %c128 = arith.constant 128 : index
    %61 = vector.load %arg15[%c0_54, %c128] : memref<256x256xf32, #tpu.memory_space<vmem>>, vector<256x128xf32>
    tpu.vector_store %arg15[%c0_54, %c128], %23 {strides = array<i32>} : memref<256x256xf32, #tpu.memory_space<vmem>>, vector<256x128xf32>,
    return
  }
  func.func @transform_0(%arg0: i32) -> (i32, i32) {
    %c0_i32 = arith.constant 0 : i32
    %c0_i32_0 = arith.constant 0 : i32
    return %arg0, %c0_i32 : i32, i32
  }
  func.func @transform_1(%arg0: i32) -> (i32, i32) {
    %c0_i32 = arith.constant 0 : i32
    %c0_i32_0 = arith.constant 0 : i32
    return %arg0, %c0_i32 : i32, i32
  }
  func.func @transform_2(%arg0: i32) -> (i32, i32) {
    %c0_i32 = arith.constant 0 : i32
    %c0_i32_0 = arith.constant 0 : i32
    %c0_i32_1 = arith.constant 0 : i32
    return %c0_i32, %c0_i32_0 : i32, i32
  }
  func.func @transform_3(%arg0: i32) -> (i32, i32) {
    %c0_i32 = arith.constant 0 : i32
    %c0_i32_0 = arith.constant 0 : i32
    %c0_i32_1 = arith.constant 0 : i32
    return %c0_i32, %c0_i32_0 : i32, i32
  }
  func.func @transform_4(%arg0: i32) -> (i32, i32) {
    %c0_i32 = arith.constant 0 : i32
    %c0_i32_0 = arith.constant 0 : i32
    %c0_i32_1 = arith.constant 0 : i32
    return %c0_i32, %c0_i32_0 : i32, i32
  }
  func.func @transform_5(%arg0: i32) -> (i32, i32) {
    %c0_i32 = arith.constant 0 : i32
    %c0_i32_0 = arith.constant 0 : i32
    %c0_i32_1 = arith.constant 0 : i32
    return %c0_i32, %c0_i32_0 : i32, i32
  }
  func.func @transform_6(%arg0: i32) -> (i32, i32) {
    %c0_i32 = arith.constant 0 : i32
    %c0_i32_0 = arith.constant 0 : i32
    %c0_i32_1 = arith.constant 0 : i32
    return %c0_i32, %c0_i32_0 : i32, i32
  }
  func.func @transform_7(%arg0: i32) -> (i32, i32) {
    %c0_i32 = arith.constant 0 : i32
    %c0_i32_0 = arith.constant 0 : i32
    %c0_i32_1 = arith.constant 0 : i32
    return %c0_i32, %c0_i32_0 : i32, i32
  }
  func.func @transform_8(%arg0: i32) -> (i32, i32) {
    %c0_i32 = arith.constant 0 : i32
    %c0_i32_0 = arith.constant 0 : i32
    %c0_i32_1 = arith.constant 0 : i32
    return %c0_i32, %c0_i32_0 : i32, i32
  }
  func.func @transform_9(%arg0: i32) -> (i32, i32) {
    %c0_i32 = arith.constant 0 : i32
    %c0_i32_0 = arith.constant 0 : i32
    %c0_i32_1 = arith.constant 0 : i32
    return %c0_i32, %c0_i32_0 : i32, i32
  }
  func.func @transform_10(%arg0: i32) -> (i32, i32) {
    %c0_i32 = arith.constant 0 : i32
    %c0_i32_0 = arith.constant 0 : i32
    %c0_i32_1 = arith.constant 0 : i32
    return %c0_i32, %c0_i32_0 : i32, i32
  }
  func.func @transform_11(%arg0: i32) -> (i32, i32) {
    %c0_i32 = arith.constant 0 : i32
    %c0_i32_0 = arith.constant 0 : i32
    %c0_i32_1 = arith.constant 0 : i32
    return %c0_i32, %c0_i32_0 : i32, i32
  }
  func.func @transform_12(%arg0: i32) -> (i32, i32) {
    %c0_i32 = arith.constant 0 : i32
    %c0_i32_0 = arith.constant 0 : i32
    %c0_i32_1 = arith.constant 0 : i32
    return %c0_i32, %c0_i32_0 : i32, i32
  }
  func.func @transform_13(%arg0: i32) -> (i32, i32) {
    %c0_i32 = arith.constant 0 : i32
    %c0_i32_0 = arith.constant 0 : i32
    %c0_i32_1 = arith.constant 0 : i32
    return %c0_i32, %c0_i32_0 : i32, i32
  }
  func.func @transform_14(%arg0: i32) -> (i32, i32) {
    %c0_i32 = arith.constant 0 : i32
    %c0_i32_0 = arith.constant 0 : i32
    return %arg0, %c0_i32 : i32, i32
  }
}

</mosaic_0001>

<bundles_post_ra>
// kernel: tpu_custom_call.1
= control target key start
LH: loop header
LB: loop body
LE: loop exit
PB: predicated region body
PF: predicated region fallthrough
CT: control target
= control target key end

     0   :  { %s5719_s0 = inlined_call_operand.vmem [shape: f32[512,16], index: 0, kind: input, shape index: {}]   ;;  %s5720_s1 = inlined_call_operand.vmem [shape: f32[512,10], index: 1, kind: input, shape index: {}]   ;;  %s5721_s2 = inlined_call_operand.vmem [shape: f32[128,256], index: 2, kind: input, shape index: {}]   ;;  %s5722_s3 = inlined_call_operand.hbm [shape: f32[1,256], index: 3, kind: input, shape index: {}]   ;;  %s5723_s4 = inlined_call_operand.vmem [shape: f32[256,128], index: 4, kind: input, shape index: {}]   ;;  %s5724_s5 = inlined_call_operand.hbm [shape: f32[1,128], index: 5, kind: input, shape index: {}]   ;;  %s5725_s6 = inlined_call_operand.vmem [shape: f32[128,128], index: 6, kind: input, shape index: {}]   ;;  %s5726_s7 = inlined_call_operand.vmem [shape: f32[1,128], index: 7, kind: input, shape index: {}]   ;;  %s5727_s8 = inlined_call_operand.hbm [shape: f32[128,128], index: 8, kind: input, shape index: {}]   ;;  %s5728_s9 = inlined_call_operand.vmem [shape: f32[1,128], index: 9, kind: input, shape index: {}]   ;;  %s5729_s10 = inlined_call_operand.vmem [shape: f32[128,256], index: 10, kind: input, shape index: {}]   ;;  %s5730_s11 = inlined_call_operand.vmem [shape: f32[1,256], index: 11, kind: input, shape index: {}]   ;;  %s5731_s12 = inlined_call_operand.vmem [shape: f32[256,128], index: 12, kind: input, shape index: {}]   ;;  %s5732_s13 = inlined_call_operand.vmem [shape: f32[1,128], index: 13, kind: input, shape index: {}]   ;;  %s5733_s14 = inlined_call_operand.hbm [shape: f32[512,256], index: 14, kind: output, shape index: {}]  }
   0x1   :  { %5742 = sst [smem:[#allocation17_spill]] %s5722_s3 }
   0x2   :  { %19 = vsyncpa [#allocation5], 0 }
   0x3   :  { %20 = vsyncpa [#allocation8], 0 }
   0x4   :  { %21 = vsyncpa [#allocation6], 0 }
   0x5   :  { %23 = vsyncpa [#allocation6 + $0x1], 0  ;;  %s4153_s29 = smov 0   ;;  %s4155_s30 = smov 0  }
   0x6   :  { %s4157_s15 = smov 0   ;;  %s4159_s16 = smov 0  }
   0x7 LB: > { %5743 = sst [smem:[#allocation14_spill]] %s4062_s15  ;;  %s4174_s17 = sadd.s32 4294967295, %s4066_s16   ;;  %s4066_s16 = sphi %s4159_s16, %s5760_s16   ;;  %s4062_s15 = sphi %s4157_s15, %s5762_s15   ;;  %s4058_s30 = sphi %s4155_s30, %s5764_s30   ;;  %s4054_s29 = sphi %s4153_s29, %s5763_s29  }
   0x8   : > { %s3271_s18 = sadd.s32 4294967294, %s4066_s16   ;;  %s4178_s19 = sadd.s32 1, %s4066_s16  }
   0x9   : > { %5744 = sst [smem:[#allocation15_spill]] %s4178_s19  ;;  %s340_s20 = sadd.s32 1, %s4062_s15 }
   0xa   : > { %s337_s21 = ssub.s32 %s4066_s16, %s4178_s19  ;;  %p350_p0 = scmp.ne.s32.totalorder %s4062_s15, %s4058_s30 }
   0xb   : > { %p338_p1 = scmp.eq.s32.totalorder %s337_s21, 0  ;;  %p351_p2 = scmp.eq.s32.totalorder %s4174_s17, 1 }
   0xc   : > { %p356_p3 = scmp.ne.s32.totalorder %s4058_s30, %s4054_s29  ;;  %p357_p4 = scmp.eq.s32.totalorder %s3271_s18, 1 }
   0xd   : > { %s4189_s22 = scalar_select %p338_p1, %s4062_s15, %s340_s20  }
   0xe   : > { %p4191_p5 = por %p351_p2, %p350_p0  ;;  %p4195_p6 = por %p357_p4, %p356_p3 }
   0xf   : > { %5745 = sst [smem:[#allocation16_spill]] %s4189_s22  ;;  %p3272_p7 = scmp.ge.s32.totalorder %s4066_s16, 1 }
  0x10   : > { %s5746_s23 = scalar_select %p4191_p5, 1, 0 }
  0x11   : > { %s5747_s24 = scalar_select %p4195_p6, 1, 0 }
  0x12   : > { %p364_p8 = scmp.lt.s32.totalorder %s4066_s16, 3  ;;  %p5737_p9 = scmp.eq.s32.totalorder %s4174_s17, 0 }
  0x13   : > { %s4068_s26 = smov [#allocation7]   ;;  %s4069_s28 = smov [#allocation4]  }
  0x14   : > { %p4202_p10 = pnand %p3272_p7, %p364_p8  ;;  %s394_s27 = sshll.u32 %s4068_s26, 4  ;;  %s395_s27 = int_to_ptr.vmem [resolvable:$true] %s394_s27 }
  0x15   : > { %s380_s18 = sshll.u32 %s4069_s28, 4  ;;  %s4070_s21 = smov [#allocation9]   ;;  %s381_s18 = int_to_ptr.vmem [resolvable:$true] %s380_s18 }
  0x16   : > { %s5748_s25 = scalar_select %p4202_p10, 1, 0 }
  0x17   : > { %p3664_p11 = pneg %p4202_p10  ;;  %s410_s22 = sshll.u32 %s4070_s21, 4  ;;  %s4214_s22 = int_to_ptr.vmem [resolvable:$true] %s410_s22 }
  0x18   : > { %s3931_s26 = scalar_lea.vmem %s395_s27, 16  ;;  %s3938_s28 = scalar_lea.vmem %s395_s27, 32 }
  0x19   : > { %p4210_p12 = pnand %p5737_p9, %p3664_p11  ;;  %p3932_p0 = scmp.ne.s32.totalorder %s395_s27, %s3931_s26 }
  0x1a   : > { %p3939_p3 = scmp.lt.s32.totalorder %s395_s27, %s395_s27  ;;  %p3940_p4 = scmp.lt.s32.totalorder %s3938_s28, %s3931_s26 }
  0x1b   : > { %p3922_p13 = pneg %p4210_p12 }
  0x1c   : > { %p3941_p7 = por %p3940_p4, %p3939_p3 }
  0x1d   : > { %p3934_p1 = pnand %p3932_p0, %p3922_p13 }
  0x1f   : > { %p3935_p2 = pneg %p3934_p1 }
  0x21   : > { %p3942_p8 = pnand %p3941_p7, %p3935_p2 }
  0x23   : > { %3945 = shalt.err (!%p3942_p8)
}
  0x24   : > { %3670 = dma.hbm_to_vmem [thread:$0]  (!%p4210_p12), %s5724_s5, 16, %s395_s27, [#allocation8]  }
  0x25   : > { %s3957_s19 = scalar_lea.vmem %s381_s18, 32  ;;  %p3965_p1 = scmp.lt.s32.totalorder %s381_s18, %s381_s18 }
  0x26   : > { %p3958_p11 = scmp.ne.s32.totalorder %s381_s18, %s3957_s19  ;;  %p3966_p6 = scmp.lt.s32.totalorder %s3957_s19, %s3957_s19 }
  0x28   : > { %p3960_p9 = pnand %p3958_p11, %p3922_p13  ;;  %p3967_p5 = por %p3966_p6, %p3965_p1 }
  0x2a   : > { %p3961_p0 = pneg %p3960_p9 }
  0x2c   : > { %p3968_p10 = pnand %p3967_p5, %p3961_p0 }
  0x2e   : > { %3971 = shalt.err (!%p3968_p10)
}
  0x2f   : > { %s5750_s3 = sld [smem:[#allocation17_spill]]  ;;  %s3983_s15 = scalar_lea.vmem %s4214_s22, 2048 }
  0x30   : > { %p3984_p2 = scmp.ne.s32.totalorder %s4214_s22, %s3983_s15  ;;  %p3991_p6 = scmp.lt.s32.totalorder %s4214_s22, %s4214_s22 }
  0x31   : > { %p3992_p5 = scmp.lt.s32.totalorder %s3983_s15, %s3983_s15 }
  0x32   : > { %p3986_p9 = pnand %p3984_p2, %p3922_p13 }
  0x33   : > { %p3993_p10 = por %p3992_p5, %p3991_p6 }
  0x34   : > { %p3987_p3 = pneg %p3986_p9 }
  0x35   : > { %3667 = dma.hbm_to_vmem [thread:$0]  (!%p4210_p12), %s5750_s3, 32, %s381_s18, [#allocation5]  }
  0x36   : > { %p3994_p4 = pnand %p3993_p10, %p3987_p3 }
  0x38   : > { %3997 = shalt.err (!%p3994_p4)
}
  0x39   : > { %s4071_s19 = smov 128   ;;  %s4072_s27 = smov 8  }
  0x3a   : > { %3673 = dma.hbm_to_vmem [thread:$0]  (!%p4210_p12), %s5727_s8, 2048, %s4214_s22, [#allocation8], %s4071_s19, %s4071_s19, %s4072_s27  }
  0x3b   : > { %p5751_p7 = scmp.ne.s32.totalorder %s5748_s25, 0 }
  0x3c   : > { %p5752_p13 = scmp.eq.s32.totalorder (!%p5751_p7), %s4174_s17, 0 }
  0x3d   : > { %459 = sbr.rel (%p5751_p7) target bundleno = 1624 (0x658), region = 76 }
  0x42   : > { %4041 = dma.done.wait (%p5752_p13), [#allocation5], 32   ;;  %p5753_p8 = pmov %p5752_p13 }
  0x44   : > { %4043 = vsyncadd (%p5753_p8), [#allocation5], 4294967264  ;;  %p5754_p11 = pmov %p5753_p8 }
  0x45   : > { %p5755_p0 = pmov %p5753_p8 }
  0x46   : > { %4045 = dma.done.wait (%p5754_p11), [#allocation8], 2064  }
  0x47   : > { %4047 = vsyncadd (%p5755_p0), [#allocation8], 4294965232  ;;  %s3282_s18 = sshll.u32 %s4174_s17, 5  ;;  %v4073_v0 = vmov 0.0   ;;  %v691_v1 = vld [vmem:[%s5721_s2 + $0xf8] sm:$0xff]  ;;  %v690_v2 = vld [vmem:[%s5721_s2 + $0xf0] sm:$0xff] }
  0x48   : > { %768 = vmatprep.mubr.f32.mxu0 %v4073_v0  ;;  %531 = vst [vmem:[#allocation2] sm:$0xff] %v4073_v0  ;;  %532 = vst [vmem:[#allocation2 + $0x8] sm:$0xff] %v4073_v0  ;;  %1064 = vmatprep.subr.mxu1 %v4073_v0  ;;  %p519_p12 = scmp.lt.s32.totalorder %s3282_s18, 63  ;;  %v689_v3 = vld [vmem:[%s5721_s2 + $0xe8] sm:$0xff]  ;;  %v688_v4 = vld [vmem:[%s5721_s2 + $0xe0] sm:$0xff]  ;;  %vm595_vm0 = vcmask 130048  }
  0x49   : > { %533 = vst [vmem:[#allocation2 + $0x10] sm:$0xff] %v4073_v0  ;;  %534 = vst [vmem:[#allocation2 + $0x18] sm:$0xff] %v4073_v0  ;;  %704 = vmatprep.subr.mxu0 %v691_v1  ;;  %v687_v5 = vld [vmem:[%s5721_s2 + $0xd8] sm:$0xff]  ;;  %v686_v6 = vld [vmem:[%s5721_s2 + $0xd0] sm:$0xff]  ;;  %s4074_s3 = smov 64   ;;  %vm1921_vm1 = vcmask 80896  }
  0x4a   : > { %535 = vst [vmem:[#allocation2 + $0x20] sm:$0xff] %v4073_v0  ;;  %536 = vst [vmem:[#allocation2 + $0x28] sm:$0xff] %v4073_v0  ;;  %s5766_s18 = smov (!%p519_p12, %s3282_s18), 63  ;;  %705 = vmatpush1.msra.mxu0 %v690_v2  ;;  %v685_v7 = vld [vmem:[%s5721_s2 + $0xc8] sm:$0xff]  ;;  %v684_v8 = vld [vmem:[%s5721_s2 + $0xc0] sm:$0xff]  ;;  %p5758_p2 = scmp.ne.s32.totalorder %s5746_s23, 0 }
  0x4b   : > { %537 = vst [vmem:[#allocation2 + $0x30] sm:$0xff] %v4073_v0  ;;  %538 = vst [vmem:[#allocation2 + $0x38] sm:$0xff] %v4073_v0  ;;  %706 = vmatprep.subr.mxu0 %v689_v3  ;;  %s5740_s19 = sshll.u32 %s5766_s18, 3  ;;  %v683_v9 = vld [vmem:[%s5721_s2 + $0xb8] sm:$0xff]  ;;  %v682_v10 = vld [vmem:[%s5721_s2 + $0xb0] sm:$0xff]  ;;  %s5756_s27 = sshll.u32 %s5766_s18, 3 }
  0x4c   : > { %539 = vst [vmem:[#allocation2 + $0x40] sm:$0xff] %v4073_v0  ;;  %540 = vst [vmem:[#allocation2 + $0x48] sm:$0xff] %v4073_v0  ;;  %707 = vmatpush1.msra.mxu0 %v688_v4  ;;  %s4366_s15 = scalar_lea.vmem %s5719_s0, %s5740_s19  ;;  %v681_v11 = vld [vmem:[%s5721_s2 + $0xa8] sm:$0xff]  ;;  %v680_v12 = vld [vmem:[%s5721_s2 + $0xa0] sm:$0xff]  ;;  %s5053_s22 = scalar_lea.vmem %s5720_s1, %s5756_s27 }
  0x4d   : > { %541 = vst [vmem:[#allocation2 + $0x50] sm:$0xff] %v4073_v0  ;;  %542 = vst [vmem:[#allocation2 + $0x58] sm:$0xff] %v4073_v0  ;;  %708 = vmatprep.subr.mxu0 %v687_v5  ;;  %v679_v13 = vld [vmem:[%s5721_s2 + $0x98] sm:$0xff]  ;;  %v678_v14 = vld [vmem:[%s5721_s2 + $0x90] sm:$0xff]  ;;  %s5757_s27 = sand.u32 1, %s4058_s30  }
  0x4e   : > { %543 = vst [vmem:[#allocation2 + $0x60] sm:$0xff] %v4073_v0  ;;  %544 = vst [vmem:[#allocation2 + $0x68] sm:$0xff] %v4073_v0  ;;  %709 = vmatpush1.msra.mxu0 %v686_v6  ;;  %v677_v15 = vld [vmem:[%s5721_s2 + $0x88] sm:$0xff]  ;;  %v563_v16 = vld [vmem:[%s4366_s15] sm:$0xff]  ;;  %s5679_s21 = scalar_lea.sflag [#allocation6], %s5757_s27 }
  0x4f   : > { %545 = vst [vmem:[#allocation2 + $0x70] sm:$0xff] %v4073_v0  ;;  %546 = vst [vmem:[#allocation2 + $0x78] sm:$0xff] %v4073_v0  ;;  %710 = vmatprep.subr.mxu0 %v685_v7  ;;  %v676_v17 = vld [vmem:[%s5721_s2 + $0x80] sm:$0xff]  ;;  %v564_v18 = vld [vmem:[%s4366_s15 + $0x8] sm:$0xff] }
  0x50   : > { %547 = vst [vmem:[#allocation2 + $0x80] sm:$0xff] %v4073_v0  ;;  %548 = vst [vmem:[#allocation2 + $0x88] sm:$0xff] %v4073_v0  ;;  %711 = vmatpush1.msra.mxu0 %v684_v8  ;;  %v565_v19 = vld [vmem:[%s4366_s15 + $0x10] sm:$0xff]  ;;  %v566_v20 = vld [vmem:[%s4366_s15 + $0x18] sm:$0xff] }
  0x51   : > { %549 = vst [vmem:[#allocation2 + $0x90] sm:$0xff] %v4073_v0  ;;  %550 = vst [vmem:[#allocation2 + $0x98] sm:$0xff] %v4073_v0  ;;  %712 = vmatprep.subr.mxu0 %v683_v9  ;;  %v675_v21 = vld [vmem:[%s5721_s2 + $0x78] sm:$0xff]  ;;  %v567_v22 = vld [vmem:[%s4366_s15 + $0x20] sm:$0xff] }
  0x52   : > { %551 = vst [vmem:[#allocation2 + $0xa0] sm:$0xff] %v4073_v0  ;;  %552 = vst [vmem:[#allocation2 + $0xa8] sm:$0xff] %v4073_v0  ;;  %713 = vmatpush1.msra.mxu0 %v682_v10  ;;  %v568_v23 = vld [vmem:[%s4366_s15 + $0x28] sm:$0xff]  ;;  %v569_v24 = vld [vmem:[%s4366_s15 + $0x30] sm:$0xff] }
  0x53   : > { %553 = vst [vmem:[#allocation2 + $0xb0] sm:$0xff] %v4073_v0  ;;  %554 = vst [vmem:[#allocation2 + $0xb8] sm:$0xff] %v4073_v0  ;;  %714 = vmatprep.subr.mxu0 %v681_v11  ;;  %v674_v25 = vld [vmem:[%s5721_s2 + $0x70] sm:$0xff]  ;;  %v570_v26 = vld [vmem:[%s4366_s15 + $0x38] sm:$0xff] }
  0x54   : > { %555 = vst [vmem:[#allocation2 + $0xc0] sm:$0xff] %v4073_v0  ;;  %556 = vst [vmem:[#allocation2 + $0xc8] sm:$0xff] %v4073_v0  ;;  %715 = vmatpush1.msra.mxu0 %v680_v12  ;;  %v571_v27 = vld [vmem:[%s4366_s15 + $0x40] sm:$0xff]  ;;  %v572_v28 = vld [vmem:[%s4366_s15 + $0x48] sm:$0xff] }
  0x55   : > { %557 = vst [vmem:[#allocation2 + $0xd0] sm:$0xff] %v4073_v0  ;;  %558 = vst [vmem:[#allocation2 + $0xd8] sm:$0xff] %v4073_v0  ;;  %716 = vmatprep.subr.mxu0 %v679_v13  ;;  %v673_v29 = vld [vmem:[%s5721_s2 + $0x68] sm:$0xff]  ;;  %v573_v30 = vld [vmem:[%s4366_s15 + $0x50] sm:$0xff] }
  0x56   : > { %559 = vst [vmem:[#allocation2 + $0xe0] sm:$0xff] %v4073_v0  ;;  %560 = vst [vmem:[#allocation2 + $0xe8] sm:$0xff] %v4073_v0  ;;  %717 = vmatpush1.msra.mxu0 %v678_v14  ;;  %v574_v31 = vld [vmem:[%s4366_s15 + $0x58] sm:$0xff]  ;;  %v575_v32 = vld [vmem:[%s4366_s15 + $0x60] sm:$0xff] }
  0x57   : > { %561 = vst [vmem:[#allocation2 + $0xf0] sm:$0xff] %v4073_v0  ;;  %562 = vst [vmem:[#allocation2 + $0xf8] sm:$0xff] %v4073_v0  ;;  %718 = vmatprep.subr.mxu0 %v677_v15  ;;  %v672_v33 = vld [vmem:[%s5721_s2 + $0x60] sm:$0xff]  ;;  %v576_v34 = vld [vmem:[%s4366_s15 + $0x68] sm:$0xff] }
  0x58   : > { %1889 = vst [vmem:[#allocation3] sm:$0xff] %v4073_v0  ;;  %1890 = vst [vmem:[#allocation3 + $0x8] sm:$0xff] %v4073_v0  ;;  %v577_v35 = vld [vmem:[%s4366_s15 + $0x70] sm:$0xff]  ;;  %v578_v36 = vld [vmem:[%s4366_s15 + $0x78] sm:$0xff]  ;;  %719 = vmatpush1.msra.mxu0 %v676_v17 }
  0x59   : > { %1891 = vst [vmem:[#allocation3 + $0x10] sm:$0xff] %v4073_v0  ;;  %1892 = vst [vmem:[#allocation3 + $0x18] sm:$0xff] %v4073_v0  ;;  %v579_v37 = vld [vmem:[%s4366_s15 + $0x80] sm:$0xff]  ;;  %v580_v38 = vld [vmem:[%s4366_s15 + $0x88] sm:$0xff]  ;;  %720 = vmatprep.subr.mxu0 %v675_v21 }
  0x5a   : > { %1893 = vst [vmem:[#allocation3 + $0x20] sm:$0xff] %v4073_v0  ;;  %1894 = vst [vmem:[#allocation3 + $0x28] sm:$0xff] %v4073_v0  ;;  %v581_v39 = vld [vmem:[%s4366_s15 + $0x90] sm:$0xff]  ;;  %v582_v40 = vld [vmem:[%s4366_s15 + $0x98] sm:$0xff]  ;;  %721 = vmatpush1.msra.mxu0 %v674_v25 }
  0x5b   : > { %1895 = vst [vmem:[#allocation3 + $0x30] sm:$0xff] %v4073_v0  ;;  %1896 = vst [vmem:[#allocation3 + $0x38] sm:$0xff] %v4073_v0  ;;  %v583_v41 = vld [vmem:[%s4366_s15 + $0xa0] sm:$0xff]  ;;  %v584_v42 = vld [vmem:[%s4366_s15 + $0xa8] sm:$0xff]  ;;  %722 = vmatprep.subr.mxu0 %v673_v29 }
  0x5c   : > { %1897 = vst [vmem:[#allocation3 + $0x40] sm:$0xff] %v4073_v0  ;;  %1898 = vst [vmem:[#allocation3 + $0x48] sm:$0xff] %v4073_v0  ;;  %v671_v43 = vld [vmem:[%s5721_s2 + $0x58] sm:$0xff]  ;;  %v585_v44 = vld [vmem:[%s4366_s15 + $0xb0] sm:$0xff]  ;;  %723 = vmatpush1.msra.mxu0 %v672_v33 }
  0x5d   : > { %1899 = vst [vmem:[#allocation3 + $0x50] sm:$0xff] %v4073_v0  ;;  %1900 = vst [vmem:[#allocation3 + $0x58] sm:$0xff] %v4073_v0  ;;  %v586_v45 = vld [vmem:[%s4366_s15 + $0xb8] sm:$0xff]  ;;  %v670_v46 = vld [vmem:[%s5721_s2 + $0x50] sm:$0xff]  ;;  %724 = vmatprep.subr.mxu0 %v671_v43 }
  0x5e   : > { %1901 = vst [vmem:[#allocation3 + $0x60] sm:$0xff] %v4073_v0  ;;  %1902 = vst [vmem:[#allocation3 + $0x68] sm:$0xff] %v4073_v0  ;;  %v669_v47 = vld [vmem:[%s5721_s2 + $0x48] sm:$0xff]  ;;  %v668_v48 = vld [vmem:[%s5721_s2 + $0x40] sm:$0xff]  ;;  %725 = vmatpush1.msra.mxu0 %v670_v46 }
  0x5f   : > { %1903 = vst [vmem:[#allocation3 + $0x70] sm:$0xff] %v4073_v0  ;;  %1904 = vst [vmem:[#allocation3 + $0x78] sm:$0xff] %v4073_v0  ;;  %v667_v49 = vld [vmem:[%s5721_s2 + $0x38] sm:$0xff]  ;;  %726 = vmatprep.subr.mxu0 %v669_v47  ;;  %v666_v50 = vld [vmem:[%s5721_s2 + $0x30] sm:$0xff] }
  0x60   : > { %1905 = vst [vmem:[#allocation3 + $0x80] sm:$0xff] %v4073_v0  ;;  %1906 = vst [vmem:[#allocation3 + $0x88] sm:$0xff] %v4073_v0  ;;  %727 = vmatpush1.msra.mxu0 %v668_v48  ;;  %v665_v51 = vld [vmem:[%s5721_s2 + $0x28] sm:$0xff]  ;;  %v664_v52 = vld [vmem:[%s5721_s2 + $0x20] sm:$0xff] }
  0x61   : > { %1907 = vst [vmem:[#allocation3 + $0x90] sm:$0xff] %v4073_v0  ;;  %1908 = vst [vmem:[#allocation3 + $0x98] sm:$0xff] %v4073_v0  ;;  %728 = vmatprep.subr.mxu0 %v667_v49  ;;  %v663_v53 = vld [vmem:[%s5721_s2 + $0x18] sm:$0xff]  ;;  %v662_v54 = vld [vmem:[%s5721_s2 + $0x10] sm:$0xff] }
  0x62   : > { %1909 = vst [vmem:[#allocation3 + $0xa0] sm:$0xff] %v4073_v0  ;;  %1910 = vst [vmem:[#allocation3 + $0xa8] sm:$0xff] %v4073_v0  ;;  %729 = vmatpush1.msra.mxu0 %v666_v50  ;;  %v661_v55 = vld [vmem:[%s5721_s2 + $0x8] sm:$0xff]  ;;  %v587_v56 = vld [vmem:[%s4366_s15 + $0xc0] sm:$0xff] }
  0x63   : > { %1911 = vst [vmem:[#allocation3 + $0xb0] sm:$0xff] %v4073_v0  ;;  %1912 = vst [vmem:[#allocation3 + $0xb8] sm:$0xff] %v4073_v0  ;;  %730 = vmatprep.subr.mxu0 %v665_v51  ;;  %v660_v57 = vld [vmem:[%s5721_s2] sm:$0xff]  ;;  %v588_v58 = vld [vmem:[%s4366_s15 + $0xc8] sm:$0xff] }
  0x64   : > { %1913 = vst [vmem:[#allocation3 + $0xc0] sm:$0xff] %v4073_v0  ;;  %1914 = vst [vmem:[#allocation3 + $0xc8] sm:$0xff] %v4073_v0  ;;  %v589_v59 = vld [vmem:[%s4366_s15 + $0xd0] sm:$0xff]  ;;  %v590_v60 = vld [vmem:[%s4366_s15 + $0xd8] sm:$0xff]  ;;  %731 = vmatpush1.msra.mxu0 %v664_v52 }
  0x65   : > { %1915 = vst [vmem:[#allocation3 + $0xd0] sm:$0xff] %v4073_v0  ;;  %1916 = vst [vmem:[#allocation3 + $0xd8] sm:$0xff] %v4073_v0  ;;  %v591_v61 = vld [vmem:[%s4366_s15 + $0xe0] sm:$0xff]  ;;  %v592_v62 = vld [vmem:[%s4366_s15 + $0xe8] sm:$0xff]  ;;  %732 = vmatprep.subr.mxu0 %v663_v53 }
  0x66   : > { %1917 = vst [vmem:[#allocation3 + $0xe0] sm:$0xff] %v4073_v0  ;;  %1918 = vst [vmem:[#allocation3 + $0xe8] sm:$0xff] %v4073_v0  ;;  %v593_v63 = vld [vmem:[%s4366_s15 + $0xf0] sm:$0xff]  ;;  %v594_v1 = vld [vmem:[%s4366_s15 + $0xf8] sm:$0xff]  ;;  %733 = vmatpush1.msra.mxu0 %v662_v54  ;;  %s5741_s15 = sand.u32 1, %s4058_s30  }
  0x67   : > { %1919 = vst [vmem:[#allocation3 + $0xf0] sm:$0xff] %v4073_v0  ;;  %1920 = vst [vmem:[#allocation3 + $0xf8] sm:$0xff] %v4073_v0  ;;  %v1040_v2 = vld [vmem:[%s5723_s4 + $0x78] sm:$0xff]  ;;  %v1039_v3 = vld [vmem:[%s5723_s4 + $0x70] sm:$0xff]  ;;  %734 = vmatprep.subr.mxu0 %v661_v55  ;;  %s3281_s19 = sshll.u32 %s5741_s15, 9 }
  0x68   : > { %596 = vst.msk [vmem:[#allocation2] sm:$0xff] %vm595_vm0, %v563_v16  ;;  %597 = vst.msk [vmem:[#allocation2 + $0x8] sm:$0xff] %vm595_vm0, %v564_v18  ;;  %1065 = vmatpush1.msra.mxu1 %v1040_v2  ;;  %v1038_v5 = vld [vmem:[%s5723_s4 + $0x68] sm:$0xff]  ;;  %735 = vmatpush1.msra.mxu0 %v660_v57  ;;  %v1037_v6 = vld [vmem:[%s5723_s4 + $0x60] sm:$0xff]  ;;  %s4828_s28 = scalar_lea.vmem [#allocation10], %s3281_s19 }
  0x69   : > { %598 = vst.msk [vmem:[#allocation2 + $0x10] sm:$0xff] %vm595_vm0, %v565_v19  ;;  %599 = vst.msk [vmem:[#allocation2 + $0x18] sm:$0xff] %vm595_vm0, %v566_v20  ;;  %1066 = vmatprep.subr.mxu1 %v4073_v0  ;;  %v1036_v8 = vld [vmem:[%s5723_s4 + $0x58] sm:$0xff]  ;;  %v1035_v9 = vld [vmem:[%s5723_s4 + $0x50] sm:$0xff]  ;;  %s3166_s19 = sshll.u32 %s4828_s28, 4  ;;  %s5674_s19 = int_to_ptr.vmem [resolvable:$true] %s3166_s19 }
  0x6a   : > { %600 = vst.msk [vmem:[#allocation2 + $0x20] sm:$0xff] %vm595_vm0, %v567_v22  ;;  %601 = vst.msk [vmem:[#allocation2 + $0x28] sm:$0xff] %vm595_vm0, %v568_v23  ;;  %1067 = vmatpush1.msra.mxu1 %v1039_v3  ;;  %v1034_v11 = vld [vmem:[%s5723_s4 + $0x48] sm:$0xff]  ;;  %v1033_v12 = vld [vmem:[%s5723_s4 + $0x40] sm:$0xff]  ;;  %s3998_s26 = scalar_lea.vmem %s5674_s19, 8192 }
  0x6b   : > { %602 = vst.msk [vmem:[#allocation2 + $0x30] sm:$0xff] %vm595_vm0, %v569_v24  ;;  %603 = vst.msk [vmem:[#allocation2 + $0x38] sm:$0xff] %vm595_vm0, %v570_v26  ;;  %1068 = vmatprep.subr.mxu1 %v4073_v0  ;;  %v1032_v14 = vld [vmem:[%s5723_s4 + $0x38] sm:$0xff]  ;;  %v1031_v15 = vld [vmem:[%s5723_s4 + $0x30] sm:$0xff]  ;;  %p3999_p1 = scmp.ne.s32.totalorder %s5674_s19, %s3998_s26 }
  0x6c   : > { %604 = vst.msk [vmem:[#allocation2 + $0x40] sm:$0xff] %vm595_vm0, %v571_v27  ;;  %605 = vst.msk [vmem:[#allocation2 + $0x48] sm:$0xff] %vm595_vm0, %v572_v28  ;;  %1069 = vmatpush1.msra.mxu1 %v1038_v5  ;;  %v1030_v17 = vld [vmem:[%s5723_s4 + $0x28] sm:$0xff]  ;;  %v1029_v18 = vld [vmem:[%s5723_s4 + $0x20] sm:$0xff] }
  0x6d   : > { %606 = vst.msk [vmem:[#allocation2 + $0x50] sm:$0xff] %vm595_vm0, %v573_v30  ;;  %607 = vst.msk [vmem:[#allocation2 + $0x58] sm:$0xff] %vm595_vm0, %v574_v31  ;;  %1070 = vmatprep.subr.mxu1 %v4073_v0  ;;  %v1028_v20 = vld [vmem:[%s5723_s4 + $0x18] sm:$0xff]  ;;  %v1027_v21 = vld [vmem:[%s5723_s4 + $0x10] sm:$0xff]  ;;  %p4000_p9 = pnand %p3999_p1, %p5758_p2 }
  0x6e   : > { %608 = vst.msk [vmem:[#allocation2 + $0x60] sm:$0xff] %vm595_vm0, %v575_v32  ;;  %609 = vst.msk [vmem:[#allocation2 + $0x68] sm:$0xff] %vm595_vm0, %v576_v34  ;;  %1071 = vmatpush1.msra.mxu1 %v1037_v6  ;;  %v1026_v23 = vld [vmem:[%s5723_s4 + $0x8] sm:$0xff]  ;;  %v1025_v24 = vld [vmem:[%s5723_s4] sm:$0xff]  ;;  %v694_v6 = vlaneseq }
  0x6f   : > { %610 = vst.msk [vmem:[#allocation2 + $0x70] sm:$0xff] %vm595_vm0, %v577_v35  ;;  %611 = vst.msk [vmem:[#allocation2 + $0x78] sm:$0xff] %vm595_vm0, %v578_v36  ;;  %v628_v4 = vld [vmem:[#allocation2] sm:$0xff]  ;;  %v629_v7 = vld [vmem:[#allocation2 + $0x8] sm:$0xff]  ;;  %1072 = vmatprep.subr.mxu1 %v4073_v0  ;;  %p4001_p3 = pneg %p4000_p9 }
  0x70   : > { %612 = vst.msk [vmem:[#allocation2 + $0x80] sm:$0xff] %vm595_vm0, %v579_v37  ;;  %613 = vst.msk [vmem:[#allocation2 + $0x88] sm:$0xff] %vm595_vm0, %v580_v38  ;;  %769 = vmatmul.mubr.f32.vlgmr.msra.gmra.mxu0 %v628_v4  ;;  %v630_v10 = vld [vmem:[#allocation2 + $0x10] sm:$0xff]  ;;  %1073 = vmatpush1.msra.mxu1 %v1036_v8  ;;  %v631_v13 = vld [vmem:[#allocation2 + $0x18] sm:$0xff]  ;;  %v4671_v8 = vshrl.u32 %v694_v6, 7 }
  0x71   : > { %614 = vst.msk [vmem:[#allocation2 + $0x90] sm:$0xff] %vm595_vm0, %v581_v39  ;;  %615 = vst.msk [vmem:[#allocation2 + $0x98] sm:$0xff] %vm595_vm0, %v582_v40  ;;  %774 = vmatprep.mubr.f32.mxu0 %v4073_v0  ;;  %1074 = vmatprep.subr.mxu1 %v4073_v0  ;;  %v632_v16 = vld [vmem:[#allocation2 + $0x20] sm:$0xff]  ;;  %v633_v19 = vld [vmem:[#allocation2 + $0x28] sm:$0xff] }
  0x72   : > { %616 = vst.msk [vmem:[#allocation2 + $0xa0] sm:$0xff] %vm595_vm0, %v583_v41  ;;  %617 = vst.msk [vmem:[#allocation2 + $0xa8] sm:$0xff] %vm595_vm0, %v584_v42  ;;  %1075 = vmatpush1.msra.mxu1 %v1035_v9  ;;  %v634_v22 = vld [vmem:[#allocation2 + $0x30] sm:$0xff]  ;;  %v635_v25 = vld [vmem:[#allocation2 + $0x38] sm:$0xff]  ;;  %v696_v9 = vsub.s32 0, %v4671_v8 }
  0x73   : > { %618 = vst.msk [vmem:[#allocation2 + $0xb0] sm:$0xff] %vm595_vm0, %v585_v44  ;;  %619 = vst.msk [vmem:[#allocation2 + $0xb8] sm:$0xff] %vm595_vm0, %v586_v45  ;;  %1076 = vmatprep.subr.mxu1 %v4073_v0  ;;  %v1056_v26 = vld [vmem:[%s5723_s4 + $0xf8] sm:$0xff]  ;;  %v1055_v27 = vld [vmem:[%s5723_s4 + $0xf0] sm:$0xff] }
  0x74   : > { %620 = vst.msk [vmem:[#allocation2 + $0xc0] sm:$0xff] %vm595_vm0, %v587_v56  ;;  %621 = vst.msk [vmem:[#allocation2 + $0xc8] sm:$0xff] %vm595_vm0, %v588_v58  ;;  %775 = vmatmul.mubr.f32.gmra.mxu0 %v629_v7  ;;  %1077 = vmatpush1.msra.mxu1 %v1034_v11  ;;  %v636_v28 = vld [vmem:[#allocation2 + $0x40] sm:$0xff]  ;;  %v1054_v29 = vld [vmem:[%s5723_s4 + $0xe8] sm:$0xff]  ;;  %v700_v11 = vsub.s32 1, %v4671_v8 }
  0x75   : > { %622 = vst.msk [vmem:[#allocation2 + $0xd0] sm:$0xff] %vm595_vm0, %v589_v59  ;;  %623 = vst.msk [vmem:[#allocation2 + $0xd8] sm:$0xff] %vm595_vm0, %v590_v60  ;;  %780 = vmatprep.mubr.f32.mxu0 %v4073_v0  ;;  %1078 = vmatprep.subr.mxu1 %v4073_v0  ;;  %v1053_v30 = vld [vmem:[%s5723_s4 + $0xe0] sm:$0xff]  ;;  %v637_v31 = vld [vmem:[#allocation2 + $0x48] sm:$0xff] }
  0x76   : > { %624 = vst.msk [vmem:[#allocation2 + $0xe0] sm:$0xff] %vm595_vm0, %v591_v61  ;;  %625 = vst.msk [vmem:[#allocation2 + $0xe8] sm:$0xff] %vm595_vm0, %v592_v62  ;;  %1079 = vmatpush1.msra.mxu1 %v1033_v12  ;;  %v1052_v32 = vld [vmem:[%s5723_s4 + $0xd8] sm:$0xff]  ;;  %v1051_v33 = vld [vmem:[%s5723_s4 + $0xd0] sm:$0xff] }
  0x77   : > { %626 = vst.msk [vmem:[#allocation2 + $0xf0] sm:$0xff] %vm595_vm0, %v593_v63  ;;  %627 = vst.msk [vmem:[#allocation2 + $0xf8] sm:$0xff] %vm595_vm0, %v594_v1  ;;  %1080 = vmatprep.subr.mxu1 %v4073_v0  ;;  %v638_v34 = vld [vmem:[#allocation2 + $0x50] sm:$0xff]  ;;  %v1050_v35 = vld [vmem:[%s5723_s4 + $0xc8] sm:$0xff] }
  0x78   : > { %781 = vmatmul.mubr.f32.gmra.mxu0 %v630_v10  ;;  %1081 = vmatpush1.msra.mxu1 %v1032_v14  ;;  %v1049_v36 = vld [vmem:[%s5723_s4 + $0xc0] sm:$0xff]  ;;  %v639_v37 = vld [vmem:[#allocation2 + $0x58] sm:$0xff]  ;;  %v1047_v39 = vld [vmem:[%s5723_s4 + $0xb0] sm:$0xff] }
  0x79   : > { %786 = vmatprep.mubr.f32.mxu0 %v4073_v0  ;;  %1082 = vmatprep.subr.mxu1 %v4073_v0  ;;  %v1048_v38 = vld [vmem:[%s5723_s4 + $0xb8] sm:$0xff]  ;;  %v640_v40 = vld [vmem:[#allocation2 + $0x60] sm:$0xff]  ;;  %v1046_v41 = vld [vmem:[%s5723_s4 + $0xa8] sm:$0xff] }
  0x7a   : > { %1083 = vmatpush1.msra.mxu1 %v1031_v15  ;;  %v1045_v42 = vld [vmem:[%s5723_s4 + $0xa0] sm:$0xff]  ;;  %v641_v43 = vld [vmem:[#allocation2 + $0x68] sm:$0xff]  ;;  %v642_v44 = vld [vmem:[#allocation2 + $0x70] sm:$0xff] }
  0x7b   : > { %1084 = vmatprep.subr.mxu1 %v4073_v0  ;;  %v643_v45 = vld [vmem:[#allocation2 + $0x78] sm:$0xff]  ;;  %v644_v46 = vld [vmem:[#allocation2 + $0x80] sm:$0xff]  ;;  %v645_v48 = vld [vmem:[#allocation2 + $0x88] sm:$0xff] }
  0x7c   : > { %787 = vmatmul.mubr.f32.gmra.mxu0 %v631_v13  ;;  %1085 = vmatpush1.msra.mxu1 %v1030_v17  ;;  %v1044_v47 = vld [vmem:[%s5723_s4 + $0x98] sm:$0xff]  ;;  %v1043_v49 = vld [vmem:[%s5723_s4 + $0x90] sm:$0xff]  ;;  %v1042_v50 = vld [vmem:[%s5723_s4 + $0x88] sm:$0xff] }
  0x7d   : > { %792 = vmatprep.mubr.f32.mxu0 %v4073_v0  ;;  %1086 = vmatprep.subr.mxu1 %v4073_v0  ;;  %v646_v51 = vld [vmem:[#allocation2 + $0x90] sm:$0xff]  ;;  %v1041_v52 = vld [vmem:[%s5723_s4 + $0x80] sm:$0xff]  ;;  %v647_v53 = vld [vmem:[#allocation2 + $0x98] sm:$0xff] }
  0x7e   : > { %1087 = vmatpush1.msra.mxu1 %v1029_v18  ;;  %v648_v54 = vld [vmem:[#allocation2 + $0xa0] sm:$0xff]  ;;  %v649_v55 = vld [vmem:[#allocation2 + $0xa8] sm:$0xff]  ;;  %v650_v56 = vld [vmem:[#allocation2 + $0xb0] sm:$0xff] }
  0x7f   : > { %1088 = vmatprep.subr.mxu1 %v4073_v0  ;;  %v651_v57 = vld [vmem:[#allocation2 + $0xb8] sm:$0xff]  ;;  %v652_v58 = vld [vmem:[#allocation2 + $0xc0] sm:$0xff]  ;;  %v653_v59 = vld [vmem:[#allocation2 + $0xc8] sm:$0xff] }
  0x80   : > { %793 = vmatmul.mubr.f32.gmra.mxu0 %v632_v16  ;;  %1089 = vmatpush1.msra.mxu1 %v1028_v20  ;;  %v654_v60 = vld [vmem:[#allocation2 + $0xd0] sm:$0xff]  ;;  %v655_v61 = vld [vmem:[#allocation2 + $0xd8] sm:$0xff]  ;;  %v656_v62 = vld [vmem:[#allocation2 + $0xe0] sm:$0xff] }
  0x81   : > { %798 = vmatprep.mubr.f32.mxu0 %v4073_v0  ;;  %1090 = vmatprep.subr.mxu1 %v4073_v0  ;;  %v657_v63 = vld [vmem:[#allocation2 + $0xe8] sm:$0xff]  ;;  %v658_v1 = vld [vmem:[#allocation2 + $0xf0] sm:$0xff]  ;;  %v659_v2 = vld [vmem:[#allocation2 + $0xf8] sm:$0xff] }
  0x82   : > { %1091 = vmatpush1.msra.mxu1 %v1027_v21  ;;  %v1336_v3 = vld [vmem:[%s5725_s6 + $0x78] sm:$0xff]  ;;  %v1335_v4 = vld [vmem:[%s5725_s6 + $0x70] sm:$0xff]  ;;  %v1334_v5 = vld [vmem:[%s5725_s6 + $0x68] sm:$0xff] }
  0x83   : > { %1092 = vmatprep.subr.mxu1 %v4073_v0  ;;  %3426 = vmatprep.subr.mxu0 %v1336_v3  ;;  %v1332_v7 = vld [vmem:[%s5725_s6 + $0x58] sm:$0xff]  ;;  %v692_v10 = vld [vmem:[#allocation4] sm:$0x3]  ;;  %v1331_v12 = vld [vmem:[%s5725_s6 + $0x50] sm:$0xff] }
  0x84   : > { %799 = vmatmul.mubr.f32.gmra.mxu0 %v633_v19  ;;  %1093 = vmatpush1.msra.mxu1 %v1026_v23  ;;  %v4680_v13 = vrot.slane %v692_v10, %v696_v9  ;;  %v4684_v14 = vrot.slane %v692_v10, %v700_v11  ;;  %v1330_v16 = vld [vmem:[%s5725_s6 + $0x48] sm:$0xff]  ;;  %v1329_v21 = vld [vmem:[%s5725_s6 + $0x40] sm:$0xff] }
  0x85   : > { %804 = vmatprep.mubr.f32.mxu0 %v4073_v0  ;;  %1094 = vmatprep.subr.mxu1 %v4073_v0 }
  0x86   : > { %1095 = vmatpush1.msra.mxu1 %v1025_v24  ;;  %3427 = vmatpush3.msra.mxu0 %v1336_v3 }
  0x87   : > { %1096 = vmatprep.subr.mxu1 %v4073_v0  ;;  %3428 = vmatprep.subr.mxu0 %v1335_v4 }
  0x88   : > { %805 = vmatmul.mubr.f32.gmra.mxu0 %v634_v22  ;;  %1097 = vmatpush2.msra.mxu1 %v1056_v26  ;;  %v1328_v22 = vld [vmem:[%s5725_s6 + $0x38] sm:$0xff] }
  0x89   : > { %810 = vmatprep.mubr.f32.mxu0 %v4073_v0  ;;  %1098 = vmatprep.subr.mxu1 %v4073_v0 }
  0x8a   : > { %1099 = vmatpush2.msra.mxu1 %v1055_v27  ;;  %3429 = vmatpush3.msra.mxu0 %v1335_v4  ;;  %v1327_v27 = vld [vmem:[%s5725_s6 + $0x30] sm:$0xff] }
  0x8b   : > { %1100 = vmatprep.subr.mxu1 %v4073_v0  ;;  %3430 = vmatprep.subr.mxu0 %v1334_v5 }
  0x8c   : > { %811 = vmatmul.mubr.f32.gmra.mxu0 %v635_v25  ;;  %1101 = vmatpush2.msra.mxu1 %v1054_v29 }
  0x8d   : > { %816 = vmatprep.mubr.f32.mxu0 %v4073_v0  ;;  %1102 = vmatprep.subr.mxu1 %v4073_v0 }
  0x8e   : > { %1103 = vmatpush2.msra.mxu1 %v1053_v30  ;;  %3431 = vmatpush3.msra.mxu0 %v1334_v5  ;;  %v1326_v30 = vld [vmem:[%s5725_s6 + $0x28] sm:$0xff] }
  0x8f   : > { %1104 = vmatprep.subr.mxu1 %v4073_v0 }
  0x90   : > { %817 = vmatmul.mubr.f32.gmra.mxu0 %v636_v28  ;;  %1105 = vmatpush2.msra.mxu1 %v1052_v32 }
  0x91   : > { %822 = vmatprep.mubr.f32.mxu0 %v4073_v0  ;;  %1106 = vmatprep.subr.mxu1 %v4073_v0 }
  0x92   : > { %1107 = vmatpush2.msra.mxu1 %v1051_v33 }
  0x93   : > { %1108 = vmatprep.subr.mxu1 %v4073_v0 }
  0x94   : > { %823 = vmatmul.mubr.f32.gmra.mxu0 %v637_v31  ;;  %1109 = vmatpush2.msra.mxu1 %v1050_v35  ;;  %v1325_v35 = vld [vmem:[%s5725_s6 + $0x20] sm:$0xff] }
  0x95   : > { %828 = vmatprep.mubr.f32.mxu0 %v4073_v0  ;;  %1110 = vmatprep.subr.mxu1 %v4073_v0 }
  0x96   : > { %1111 = vmatpush2.msra.mxu1 %v1049_v36 }
  0x97   : > { %1112 = vmatprep.subr.mxu1 %v4073_v0 }
  0x98   : > { %829 = vmatmul.mubr.f32.gmra.mxu0 %v638_v34  ;;  %1113 = vmatpush2.msra.mxu1 %v1048_v38  ;;  %v1324_v38 = vld [vmem:[%s5725_s6 + $0x18] sm:$0xff] }
  0x99   : > { %834 = vmatprep.mubr.f32.mxu0 %v4073_v0  ;;  %1114 = vmatprep.subr.mxu1 %v4073_v0 }
  0x9a   : > { %1115 = vmatpush2.msra.mxu1 %v1047_v39 }
  0x9b   : > { %1116 = vmatprep.subr.mxu1 %v4073_v0 }
  0x9c   : > { %835 = vmatmul.mubr.f32.gmra.mxu0 %v639_v37  ;;  %1117 = vmatpush2.msra.mxu1 %v1046_v41 }
  0x9d   : > { %840 = vmatprep.mubr.f32.mxu0 %v4073_v0  ;;  %1118 = vmatprep.subr.mxu1 %v4073_v0 }
  0x9e   : > { %1119 = vmatpush2.msra.mxu1 %v1045_v42 }
  0x9f   : > { %1120 = vmatprep.subr.mxu1 %v4073_v0 }
  0xa0   : > { %841 = vmatmul.mubr.f32.gmra.mxu0 %v640_v40  ;;  %1121 = vmatpush2.msra.mxu1 %v1044_v47 }
  0xa1   : > { %846 = vmatprep.mubr.f32.mxu0 %v4073_v0  ;;  %1122 = vmatprep.subr.mxu1 %v4073_v0 }
  0xa2   : > { %1123 = vmatpush2.msra.mxu1 %v1043_v49 }
  0xa3   : > { %1124 = vmatprep.subr.mxu1 %v4073_v0 }
  0xa4   : > { %847 = vmatmul.mubr.f32.gmra.mxu0 %v641_v43  ;;  %1125 = vmatpush2.msra.mxu1 %v1042_v50  ;;  %v1323_v43 = vld [vmem:[%s5725_s6 + $0x10] sm:$0xff] }
  0xa5   : > { %852 = vmatprep.mubr.f32.mxu0 %v4073_v0  ;;  %1126 = vmatprep.subr.mxu1 %v4073_v0 }
  0xa6   : > { %1127 = vmatpush2.msra.mxu1 %v1041_v52 }
  0xa8   : > { %853 = vmatmul.mubr.f32.gmra.mxu0 %v642_v44 }
  0xa9   : > { %858 = vmatprep.mubr.f32.mxu0 %v4073_v0 }
  0xac   : > { %859 = vmatmul.mubr.f32.gmra.mxu0 %v643_v45 }
  0xad   : > { %864 = vmatprep.mubr.f32.mxu0 %v4073_v0 }
  0xb0   : > { %865 = vmatmul.mubr.f32.gmra.mxu0 %v644_v46  ;;  %v1322_v46 = vld [vmem:[%s5725_s6 + $0x8] sm:$0xff] }
  0xb1   : > { %870 = vmatprep.mubr.f32.mxu0 %v4073_v0 }
  0xb4   : > { %871 = vmatmul.mubr.f32.gmra.mxu0 %v645_v48 }
  0xb5   : > { %876 = vmatprep.mubr.f32.mxu0 %v4073_v0 }
  0xb8   : > { %877 = vmatmul.mubr.f32.gmra.mxu0 %v646_v51 }
  0xb9   : > { %882 = vmatprep.mubr.f32.mxu0 %v4073_v0 }
  0xbc   : > { %883 = vmatmul.mubr.f32.gmra.mxu0 %v647_v53 }
  0xbd   : > { %888 = vmatprep.mubr.f32.mxu0 %v4073_v0 }
  0xc0   : > { %889 = vmatmul.mubr.f32.gmra.mxu0 %v648_v54 }
  0xc1   : > { %894 = vmatprep.mubr.f32.mxu0 %v4073_v0 }
  0xc4   : > { %895 = vmatmul.mubr.f32.gmra.mxu0 %v649_v55 }
  0xc5   : > { %900 = vmatprep.mubr.f32.mxu0 %v4073_v0 }
  0xc8   : > { %901 = vmatmul.mubr.f32.gmra.mxu0 %v650_v56 }
  0xc9   : > { %906 = vmatprep.mubr.f32.mxu0 %v4073_v0 }
  0xcc   : > { %907 = vmatmul.mubr.f32.gmra.mxu0 %v651_v57 }
  0xcd   : > { %912 = vmatprep.mubr.f32.mxu0 %v4073_v0 }
  0xd0   : > { %913 = vmatmul.mubr.f32.gmra.mxu0 %v652_v58 }
  0xd1   : > { %918 = vmatprep.mubr.f32.mxu0 %v4073_v0 }
  0xd4   : > { %919 = vmatmul.mubr.f32.gmra.mxu0 %v653_v59 }
  0xd5   : > { %924 = vmatprep.mubr.f32.mxu0 %v4073_v0 }
  0xd8   : > { %925 = vmatmul.mubr.f32.gmra.mxu0 %v654_v60 }
  0xd9   : > { %930 = vmatprep.mubr.f32.mxu0 %v4073_v0 }
  0xdc   : > { %931 = vmatmul.mubr.f32.gmra.mxu0 %v655_v61 }
  0xdd   : > { %936 = vmatprep.mubr.f32.mxu0 %v4073_v0 }
  0xe0   : > { %937 = vmatmul.mubr.f32.gmra.mxu0 %v656_v62 }
  0xe1   : > { %942 = vmatprep.mubr.f32.mxu0 %v4073_v0 }
  0xe4   : > { %943 = vmatmul.mubr.f32.gmra.mxu0 %v657_v63 }
  0xe5   : > { %948 = vmatprep.mubr.f32.mxu0 %v4073_v0 }
  0xe8   : > { %949 = vmatmul.mubr.f32.gmra.mxu0 %v658_v1 }
  0xe9   : > { %954 = vmatprep.mubr.f32.mxu0 %v4073_v0  ;;  %v1333_v0 = vld [vmem:[%s5725_s6 + $0x60] sm:$0xff] }
  0xea   : > { %3432 = vmatprep.subr.mxu0 %v1333_v0 }
  0xeb   : > { %3433 = vmatpush3.msra.mxu0 %v1333_v0 }
  0xec   : > { %955 = vmatmul.mubr.f32.gmra.mxu0 %v659_v2  ;;  %3434 = vmatprep.subr.mxu0 %v1332_v7 }
  0xed   : > { %3435 = vmatpush3.msra.mxu0 %v1332_v7 }
  0xee   : > { %3436 = vmatprep.subr.mxu0 %v1331_v12 }
  0xef   : > { %3437 = vmatpush3.msra.mxu0 %v1331_v12 }
  0xf0   : > { %3438 = vmatprep.subr.mxu0 %v1330_v16 }
  0xf1   : > { %3439 = vmatpush3.msra.mxu0 %v1330_v16 }
  0xf2   : > { %3440 = vmatprep.subr.mxu0 %v1329_v21 }
  0xf3   : > { %3441 = vmatpush3.msra.mxu0 %v1329_v21 }
  0xf4   : > { %3442 = vmatprep.subr.mxu0 %v1328_v22 }
  0xf5   : > { %3443 = vmatpush3.msra.mxu0 %v1328_v22 }
  0xf6   : > { %3444 = vmatprep.subr.mxu0 %v1327_v27 }
  0xf7   : > { %3445 = vmatpush3.msra.mxu0 %v1327_v27 }
  0xf8   : > { %3446 = vmatprep.subr.mxu0 %v1326_v30 }
  0xf9   : > { %3447 = vmatpush3.msra.mxu0 %v1326_v30 }
  0xfa   : > { %3448 = vmatprep.subr.mxu0 %v1325_v35 }
  0xfb   : > { %3449 = vmatpush3.msra.mxu0 %v1325_v35 }
  0xfc   : > { %3450 = vmatprep.subr.mxu0 %v1324_v38 }
  0xfd   : > { %3451 = vmatpush3.msra.mxu0 %v1324_v38 }
  0xfe   : > { %3452 = vmatprep.subr.mxu0 %v1323_v43 }
  0xff   : > { %3453 = vmatpush3.msra.mxu0 %v1323_v43 }
 0x100   : > { %3454 = vmatprep.subr.mxu0 %v1322_v46 }
 0x101   : > { %3455 = vmatpush3.msra.mxu0 %v1322_v46 }
 0x130   : > { %v770_v15 = vpop.f32.mrf.mxu0 }
 0x131   : > { %v771_v17 = vadd.f32 %v770_v15, %v4680_v13 }
 0x132   : > { %v772_v18 = vpop.f32.mrf.mxu0 }
 0x133   : > { %v773_v19 = vadd.f32 %v772_v18, %v4684_v14  ;;  %v961_v24 = vmax.f32 %v771_v17, 0.0 }
 0x134   : > { %v776_v20 = vpop.f32.mrf.mxu0 }
 0x135   : > { %v962_v23 = vmax.f32 %v773_v19, 0.0  ;;  %v777_v25 = vadd.f32 %v776_v20, %v4680_v13 }
 0x136   : > { %v778_v26 = vpop.f32.mrf.mxu0 }
 0x137   : > { %v779_v28 = vadd.f32 %v778_v26, %v4684_v14  ;;  %1128 = vmatprep.mubr.f32.mxu1 %v962_v23  ;;  %v963_v32 = vmax.f32 %v777_v25, 0.0 }
 0x138   : > { %v782_v29 = vpop.f32.mrf.mxu0  ;;  %1129 = vmatmul.mubr.f32.vlgmr.msra.gmra.mxu1 %v961_v24 }
 0x139   : > { %v964_v31 = vmax.f32 %v779_v28, 0.0  ;;  %v783_v33 = vadd.f32 %v782_v29, %v4680_v13 }
 0x13a   : > { %v784_v34 = vpop.f32.mrf.mxu0 }
 0x13b   : > { %v785_v36 = vadd.f32 %v784_v34, %v4684_v14  ;;  %1133 = vmatprep.mubr.f32.mxu1 %v964_v31  ;;  %v965_v40 = vmax.f32 %v783_v33, 0.0 }
 0x13c   : > { %v788_v37 = vpop.f32.mrf.mxu0  ;;  %1134 = vmatmul.mubr.f32.gmra.mxu1 %v963_v32 }
 0x13d   : > { %v966_v39 = vmax.f32 %v785_v36, 0.0  ;;  %v789_v41 = vadd.f32 %v788_v37, %v4680_v13 }
 0x13e   : > { %v790_v42 = vpop.f32.mrf.mxu0 }
 0x13f   : > { %v791_v44 = vadd.f32 %v790_v42, %v4684_v14  ;;  %1138 = vmatprep.mubr.f32.mxu1 %v966_v39  ;;  %v967_v49 = vmax.f32 %v789_v41, 0.0 }
 0x140   : > { %v794_v45 = vpop.f32.mrf.mxu0  ;;  %1139 = vmatmul.mubr.f32.gmra.mxu1 %v965_v40 }
 0x141   : > { %v968_v47 = vmax.f32 %v791_v44, 0.0  ;;  %v795_v48 = vadd.f32 %v794_v45, %v4680_v13 }
 0x142   : > { %v796_v50 = vpop.f32.mrf.mxu0 }
 0x143   : > { %v797_v51 = vadd.f32 %v796_v50, %v4684_v14  ;;  %1143 = vmatprep.mubr.f32.mxu1 %v968_v47  ;;  %v969_v52 = vmax.f32 %v795_v48, 0.0 }
 0x144   : > { %v800_v53 = vpop.f32.mrf.mxu0  ;;  %1144 = vmatmul.mubr.f32.gmra.mxu1 %v967_v49 }
 0x145   : > { %v970_v54 = vmax.f32 %v797_v51, 0.0  ;;  %v801_v55 = vadd.f32 %v800_v53, %v4680_v13 }
 0x146   : > { %v802_v56 = vpop.f32.mrf.mxu0 }
 0x147   : > { %v803_v57 = vadd.f32 %v802_v56, %v4684_v14  ;;  %1148 = vmatprep.mubr.f32.mxu1 %v970_v54  ;;  %v971_v58 = vmax.f32 %v801_v55, 0.0 }
 0x148   : > { %v806_v59 = vpop.f32.mrf.mxu0  ;;  %1149 = vmatmul.mubr.f32.gmra.mxu1 %v969_v52 }
 0x149   : > { %v972_v60 = vmax.f32 %v803_v57, 0.0  ;;  %v807_v61 = vadd.f32 %v806_v59, %v4680_v13 }
 0x14a   : > { %v808_v62 = vpop.f32.mrf.mxu0 }
 0x14b   : > { %v809_v63 = vadd.f32 %v808_v62, %v4684_v14  ;;  %1153 = vmatprep.mubr.f32.mxu1 %v972_v60  ;;  %v973_v1 = vmax.f32 %v807_v61, 0.0 }
 0x14c   : > { %v812_v2 = vpop.f32.mrf.mxu0  ;;  %1154 = vmatmul.mubr.f32.gmra.mxu1 %v971_v58 }
 0x14d   : > { %v974_v3 = vmax.f32 %v809_v63, 0.0  ;;  %v813_v4 = vadd.f32 %v812_v2, %v4680_v13 }
 0x14e   : > { %v814_v5 = vpop.f32.mrf.mxu0 }
 0x14f   : > { %v815_v0 = vadd.f32 %v814_v5, %v4684_v14  ;;  %1158 = vmatprep.mubr.f32.mxu1 %v974_v3  ;;  %v975_v6 = vmax.f32 %v813_v4, 0.0 }
 0x150   : > { %v818_v7 = vpop.f32.mrf.mxu0  ;;  %1159 = vmatmul.mubr.f32.gmra.mxu1 %v973_v1 }
 0x151   : > { %v976_v10 = vmax.f32 %v815_v0, 0.0  ;;  %v819_v12 = vadd.f32 %v818_v7, %v4680_v13 }
 0x152   : > { %v820_v15 = vpop.f32.mrf.mxu0 }
 0x153   : > { %v821_v16 = vadd.f32 %v820_v15, %v4684_v14  ;;  %1163 = vmatprep.mubr.f32.mxu1 %v976_v10  ;;  %v977_v17 = vmax.f32 %v819_v12, 0.0 }
 0x154   : > { %v824_v18 = vpop.f32.mrf.mxu0  ;;  %1164 = vmatmul.mubr.f32.gmra.mxu1 %v975_v6 }
 0x155   : > { %v978_v19 = vmax.f32 %v821_v16, 0.0  ;;  %v825_v20 = vadd.f32 %v824_v18, %v4680_v13  ;;  %v1321_v18 = vld [vmem:[%s5725_s6] sm:$0xff] }
 0x156   : > { %v826_v21 = vpop.f32.mrf.mxu0  ;;  %3456 = vmatprep.subr.mxu0 %v1321_v18 }
 0x157   : > { %v827_v22 = vadd.f32 %v826_v21, %v4684_v14  ;;  %1168 = vmatprep.mubr.f32.mxu1 %v978_v19  ;;  %v979_v23 = vmax.f32 %v825_v20, 0.0  ;;  %3457 = vmatpush3.msra.mxu0 %v1321_v18 }
 0x158   : > { %v830_v24 = vpop.f32.mrf.mxu0  ;;  %1169 = vmatmul.mubr.f32.gmra.mxu1 %v977_v17 }
 0x159   : > { %v980_v25 = vmax.f32 %v827_v22, 0.0  ;;  %v831_v26 = vadd.f32 %v830_v24, %v4680_v13 }
 0x15a   : > { %v832_v27 = vpop.f32.mrf.mxu0 }
 0x15b   : > { %v833_v28 = vadd.f32 %v832_v27, %v4684_v14  ;;  %1173 = vmatprep.mubr.f32.mxu1 %v980_v25  ;;  %v981_v29 = vmax.f32 %v831_v26, 0.0 }
 0x15c   : > { %v836_v30 = vpop.f32.mrf.mxu0  ;;  %1174 = vmatmul.mubr.f32.gmra.mxu1 %v979_v23 }
 0x15d   : > { %v982_v31 = vmax.f32 %v833_v28, 0.0  ;;  %v837_v32 = vadd.f32 %v836_v30, %v4680_v13 }
 0x15e   : > { %v838_v33 = vpop.f32.mrf.mxu0 }
 0x15f   : > { %v839_v34 = vadd.f32 %v838_v33, %v4684_v14  ;;  %1178 = vmatprep.mubr.f32.mxu1 %v982_v31  ;;  %v983_v35 = vmax.f32 %v837_v32, 0.0 }
 0x160   : > { %v842_v36 = vpop.f32.mrf.mxu0  ;;  %1179 = vmatmul.mubr.f32.gmra.mxu1 %v981_v29 }
 0x161   : > { %v984_v37 = vmax.f32 %v839_v34, 0.0  ;;  %v843_v38 = vadd.f32 %v842_v36, %v4680_v13 }
 0x162   : > { %v844_v39 = vpop.f32.mrf.mxu0 }
 0x163   : > { %v845_v40 = vadd.f32 %v844_v39, %v4684_v14  ;;  %1183 = vmatprep.mubr.f32.mxu1 %v984_v37  ;;  %v985_v41 = vmax.f32 %v843_v38, 0.0 }
 0x164   : > { %v848_v42 = vpop.f32.mrf.mxu0  ;;  %1184 = vmatmul.mubr.f32.gmra.mxu1 %v983_v35 }
 0x165   : > { %v986_v43 = vmax.f32 %v845_v40, 0.0  ;;  %v849_v44 = vadd.f32 %v848_v42, %v4680_v13 }
 0x166   : > { %v850_v45 = vpop.f32.mrf.mxu0 }
 0x167   : > { %v851_v46 = vadd.f32 %v850_v45, %v4684_v14  ;;  %1188 = vmatprep.mubr.f32.mxu1 %v986_v43  ;;  %v987_v47 = vmax.f32 %v849_v44, 0.0 }
 0x168   : > { %v854_v48 = vpop.f32.mrf.mxu0  ;;  %1189 = vmatmul.mubr.f32.gmra.mxu1 %v985_v41 }
 0x169   : > { %v988_v49 = vmax.f32 %v851_v46, 0.0  ;;  %v855_v50 = vadd.f32 %v854_v48, %v4680_v13 }
 0x16a   : > { %v856_v51 = vpop.f32.mrf.mxu0 }
 0x16b   : > { %v857_v52 = vadd.f32 %v856_v51, %v4684_v14  ;;  %1193 = vmatprep.mubr.f32.mxu1 %v988_v49  ;;  %v989_v53 = vmax.f32 %v855_v50, 0.0 }
 0x16c   : > { %v860_v54 = vpop.f32.mrf.mxu0  ;;  %1194 = vmatmul.mubr.f32.gmra.mxu1 %v987_v47 }
 0x16d   : > { %v990_v55 = vmax.f32 %v857_v52, 0.0  ;;  %v861_v56 = vadd.f32 %v860_v54, %v4680_v13 }
 0x16e   : > { %v862_v57 = vpop.f32.mrf.mxu0 }
 0x16f   : > { %v863_v58 = vadd.f32 %v862_v57, %v4684_v14  ;;  %1198 = vmatprep.mubr.f32.mxu1 %v990_v55  ;;  %v991_v59 = vmax.f32 %v861_v56, 0.0 }
 0x170   : > { %v866_v60 = vpop.f32.mrf.mxu0  ;;  %1199 = vmatmul.mubr.f32.gmra.mxu1 %v989_v53 }
 0x171   : > { %v992_v61 = vmax.f32 %v863_v58, 0.0  ;;  %v867_v62 = vadd.f32 %v866_v60, %v4680_v13 }
 0x172   : > { %v868_v63 = vpop.f32.mrf.mxu0 }
 0x173   : > { %v869_v1 = vadd.f32 %v868_v63, %v4684_v14  ;;  %1203 = vmatprep.mubr.f32.mxu1 %v992_v61  ;;  %v993_v2 = vmax.f32 %v867_v62, 0.0 }
 0x174   : > { %v872_v3 = vpop.f32.mrf.mxu0  ;;  %1204 = vmatmul.mubr.f32.gmra.mxu1 %v991_v59 }
 0x175   : > { %v994_v4 = vmax.f32 %v869_v1, 0.0  ;;  %v873_v5 = vadd.f32 %v872_v3, %v4680_v13 }
 0x176   : > { %v874_v0 = vpop.f32.mrf.mxu0 }
 0x177   : > { %v875_v6 = vadd.f32 %v874_v0, %v4684_v14  ;;  %1208 = vmatprep.mubr.f32.mxu1 %v994_v4  ;;  %v995_v7 = vmax.f32 %v873_v5, 0.0 }
 0x178   : > { %v878_v10 = vpop.f32.mrf.mxu0  ;;  %1209 = vmatmul.mubr.f32.gmra.mxu1 %v993_v2 }
 0x179   : > { %v996_v12 = vmax.f32 %v875_v6, 0.0  ;;  %v879_v15 = vadd.f32 %v878_v10, %v4680_v13 }
 0x17a   : > { %v880_v16 = vpop.f32.mrf.mxu0 }
 0x17b   : > { %v881_v17 = vadd.f32 %v880_v16, %v4684_v14  ;;  %1213 = vmatprep.mubr.f32.mxu1 %v996_v12  ;;  %v997_v19 = vmax.f32 %v879_v15, 0.0 }
 0x17c   : > { %v884_v20 = vpop.f32.mrf.mxu0  ;;  %1214 = vmatmul.mubr.f32.gmra.mxu1 %v995_v7 }
 0x17d   : > { %v998_v21 = vmax.f32 %v881_v17, 0.0  ;;  %v885_v22 = vadd.f32 %v884_v20, %v4680_v13 }
 0x17e   : > { %v886_v23 = vpop.f32.mrf.mxu0 }
 0x17f   : > { %v887_v24 = vadd.f32 %v886_v23, %v4684_v14  ;;  %1218 = vmatprep.mubr.f32.mxu1 %v998_v21  ;;  %v999_v25 = vmax.f32 %v885_v22, 0.0 }
 0x180   : > { %v890_v26 = vpop.f32.mrf.mxu0  ;;  %1219 = vmatmul.mubr.f32.gmra.mxu1 %v997_v19 }
 0x181   : > { %v1000_v27 = vmax.f32 %v887_v24, 0.0  ;;  %v891_v28 = vadd.f32 %v890_v26, %v4680_v13 }
 0x182   : > { %v892_v29 = vpop.f32.mrf.mxu0 }
 0x183   : > { %v893_v30 = vadd.f32 %v892_v29, %v4684_v14  ;;  %1223 = vmatprep.mubr.f32.mxu1 %v1000_v27  ;;  %v1001_v31 = vmax.f32 %v891_v28, 0.0 }
 0x184   : > { %v896_v32 = vpop.f32.mrf.mxu0  ;;  %1224 = vmatmul.mubr.f32.gmra.mxu1 %v999_v25 }
 0x185   : > { %v1002_v33 = vmax.f32 %v893_v30, 0.0  ;;  %v897_v34 = vadd.f32 %v896_v32, %v4680_v13 }
 0x186   : > { %v898_v35 = vpop.f32.mrf.mxu0 }
 0x187   : > { %v899_v36 = vadd.f32 %v898_v35, %v4684_v14  ;;  %1228 = vmatprep.mubr.f32.mxu1 %v1002_v33  ;;  %v1003_v37 = vmax.f32 %v897_v34, 0.0 }
 0x188   : > { %v902_v38 = vpop.f32.mrf.mxu0  ;;  %1229 = vmatmul.mubr.f32.gmra.mxu1 %v1001_v31 }
 0x189   : > { %v1004_v39 = vmax.f32 %v899_v36, 0.0  ;;  %v903_v40 = vadd.f32 %v902_v38, %v4680_v13 }
 0x18a   : > { %v904_v41 = vpop.f32.mrf.mxu0 }
 0x18b   : > { %v905_v42 = vadd.f32 %v904_v41, %v4684_v14  ;;  %1233 = vmatprep.mubr.f32.mxu1 %v1004_v39  ;;  %v1005_v43 = vmax.f32 %v903_v40, 0.0  ;;  %v4780_v40 = vld [vmem:[#allocation7] ss:$0 sm:$0xff] }
 0x18c   : > { %v908_v44 = vpop.f32.mrf.mxu0  ;;  %1234 = vmatmul.mubr.f32.gmra.mxu1 %v1003_v37 }
 0x18d   : > { %v1006_v45 = vmax.f32 %v905_v42, 0.0  ;;  %v909_v46 = vadd.f32 %v908_v44, %v4680_v13 }
 0x18e   : > { %v910_v47 = vpop.f32.mrf.mxu0 }
 0x18f   : > { %v911_v48 = vadd.f32 %v910_v47, %v4684_v14  ;;  %1238 = vmatprep.mubr.f32.mxu1 %v1006_v45  ;;  %v1007_v49 = vmax.f32 %v909_v46, 0.0 }
 0x190   : > { %v914_v50 = vpop.f32.mrf.mxu0  ;;  %1239 = vmatmul.mubr.f32.gmra.mxu1 %v1005_v43 }
 0x191   : > { %v1008_v51 = vmax.f32 %v911_v48, 0.0  ;;  %v915_v52 = vadd.f32 %v914_v50, %v4680_v13 }
 0x192   : > { %v916_v53 = vpop.f32.mrf.mxu0 }
 0x193   : > { %v917_v54 = vadd.f32 %v916_v53, %v4684_v14  ;;  %1243 = vmatprep.mubr.f32.mxu1 %v1008_v51  ;;  %v1009_v55 = vmax.f32 %v915_v52, 0.0 }
 0x194   : > { %v920_v56 = vpop.f32.mrf.mxu0  ;;  %1244 = vmatmul.mubr.f32.gmra.mxu1 %v1007_v49 }
 0x195   : > { %v1010_v57 = vmax.f32 %v917_v54, 0.0  ;;  %v921_v58 = vadd.f32 %v920_v56, %v4680_v13 }
 0x196   : > { %v922_v59 = vpop.f32.mrf.mxu0 }
 0x197   : > { %v923_v60 = vadd.f32 %v922_v59, %v4684_v14  ;;  %1248 = vmatprep.mubr.f32.mxu1 %v1010_v57  ;;  %v1011_v61 = vmax.f32 %v921_v58, 0.0 }
 0x198   : > { %v926_v62 = vpop.f32.mrf.mxu0  ;;  %1249 = vmatmul.mubr.f32.gmra.mxu1 %v1009_v55 }
 0x199   : > { %v1012_v63 = vmax.f32 %v923_v60, 0.0  ;;  %v927_v1 = vadd.f32 %v926_v62, %v4680_v13 }
 0x19a   : > { %v928_v2 = vpop.f32.mrf.mxu0 }
 0x19b   : > { %v929_v3 = vadd.f32 %v928_v2, %v4684_v14  ;;  %1253 = vmatprep.mubr.f32.mxu1 %v1012_v63  ;;  %v1013_v4 = vmax.f32 %v927_v1, 0.0 }
 0x19c   : > { %v932_v5 = vpop.f32.mrf.mxu0  ;;  %1254 = vmatmul.mubr.f32.gmra.mxu1 %v1011_v61 }
 0x19d   : > { %v1014_v0 = vmax.f32 %v929_v3, 0.0  ;;  %v933_v6 = vadd.f32 %v932_v5, %v4680_v13 }
 0x19e   : > { %v934_v7 = vpop.f32.mrf.mxu0 }
 0x19f   : > { %v935_v10 = vadd.f32 %v934_v7, %v4684_v14  ;;  %1258 = vmatprep.mubr.f32.mxu1 %v1014_v0  ;;  %v1015_v12 = vmax.f32 %v933_v6, 0.0 }
 0x1a0   : > { %v938_v15 = vpop.f32.mrf.mxu0  ;;  %1259 = vmatmul.mubr.f32.gmra.mxu1 %v1013_v4 }
 0x1a1   : > { %v1016_v16 = vmax.f32 %v935_v10, 0.0  ;;  %v939_v17 = vadd.f32 %v938_v15, %v4680_v13 }
 0x1a2   : > { %v940_v18 = vpop.f32.mrf.mxu0 }
 0x1a3   : > { %v941_v19 = vadd.f32 %v940_v18, %v4684_v14  ;;  %1263 = vmatprep.mubr.f32.mxu1 %v1016_v16  ;;  %v1017_v20 = vmax.f32 %v939_v17, 0.0 }
 0x1a4   : > { %v944_v21 = vpop.f32.mrf.mxu0  ;;  %1264 = vmatmul.mubr.f32.gmra.mxu1 %v1015_v12 }
 0x1a5   : > { %v1018_v22 = vmax.f32 %v941_v19, 0.0  ;;  %v945_v23 = vadd.f32 %v944_v21, %v4680_v13 }
 0x1a6   : > { %v946_v24 = vpop.f32.mrf.mxu0 }
 0x1a7   : > { %v947_v25 = vadd.f32 %v946_v24, %v4684_v14  ;;  %1268 = vmatprep.mubr.f32.mxu1 %v1018_v22  ;;  %v1019_v26 = vmax.f32 %v945_v23, 0.0 }
 0x1a8   : > { %v950_v27 = vpop.f32.mrf.mxu0  ;;  %1269 = vmatmul.mubr.f32.gmra.mxu1 %v1017_v20 }
 0x1a9   : > { %v1020_v28 = vmax.f32 %v947_v25, 0.0  ;;  %v951_v29 = vadd.f32 %v950_v27, %v4680_v13 }
 0x1aa   : > { %v952_v30 = vpop.f32.mrf.mxu0 }
 0x1ab   : > { %v953_v31 = vadd.f32 %v952_v30, %v4684_v14  ;;  %1273 = vmatprep.mubr.f32.mxu1 %v1020_v28  ;;  %v1021_v32 = vmax.f32 %v951_v29, 0.0 }
 0x1ac   : > { %v956_v33 = vpop.f32.mrf.mxu0  ;;  %1274 = vmatmul.mubr.f32.gmra.mxu1 %v1019_v26 }
 0x1ad   : > { %v1022_v34 = vmax.f32 %v953_v31, 0.0  ;;  %v957_v35 = vadd.f32 %v956_v33, %v4680_v13 }
 0x1ae   : > { %v958_v36 = vpop.f32.mrf.mxu0 }
 0x1af   : > { %v959_v37 = vadd.f32 %v958_v36, %v4684_v14  ;;  %1278 = vmatprep.mubr.f32.mxu1 %v1022_v34  ;;  %v1023_v38 = vmax.f32 %v957_v35, 0.0 }
 0x1b0   : > { %1279 = vmatmul.mubr.f32.gmra.mxu1 %v1021_v32 }
 0x1b1   : > { %v1024_v39 = vmax.f32 %v959_v37, 0.0 }
 0x1b3   : > { %1283 = vmatprep.mubr.f32.mxu1 %v1024_v39 }
 0x1b4   : > { %1284 = vmatmul.mubr.f32.gmra.mxu1 %v1023_v38 }
 0x1f8   : > { %v1130_v41 = vpop.f32.mrf.mxu1 }
 0x1f9   : > { %v1131_v42 = vadd.f32 %v4780_v40, %v1130_v41 }
 0x1fa   : > { %v1132_v43 = vpop.f32.mrf.mxu1 }
 0x1fb   : > { %v1289_v44 = vmax.f32 %v1131_v42, 0.0 }
 0x1fc   : > { %v1135_v45 = vpop.f32.mrf.mxu1 }
 0x1fd   : > { %v1136_v46 = vadd.f32 %v4780_v40, %v1135_v45  ;;  %3458 = vmatprep.mubr.f32.mxu0 %v1289_v44 }
 0x1fe   : > { %v1137_v13 = vpop.f32.mrf.mxu1 }
 0x1ff   : > { %v1290_v47 = vmax.f32 %v1136_v46, 0.0 }
 0x200   : > { %v1140_v14 = vpop.f32.mrf.mxu1 }
 0x201   : > { %v1141_v48 = vadd.f32 %v4780_v40, %v1140_v14  ;;  %3459 = vmatmul.mubr.f32.vlgmr.msra.gmra.mxu0 %v1290_v47 }
 0x202   : > { %v1142_v49 = vpop.f32.mrf.mxu1 }
 0x203   : > { %v1291_v50 = vmax.f32 %v1141_v48, 0.0 }
 0x204   : > { %v1145_v51 = vpop.f32.mrf.mxu1 }
 0x205   : > { %v1146_v52 = vadd.f32 %v4780_v40, %v1145_v51  ;;  %3461 = vmatprep.mubr.f32.mxu0 %v1291_v50 }
 0x206   : > { %v1147_v53 = vpop.f32.mrf.mxu1 }
 0x207   : > { %v1292_v54 = vmax.f32 %v1146_v52, 0.0 }
 0x208   : > { %v1150_v55 = vpop.f32.mrf.mxu1 }
 0x209   : > { %v1151_v56 = vadd.f32 %v4780_v40, %v1150_v55  ;;  %3462 = vmatmul.mubr.f32.gmra.mxu0 %v1292_v54 }
 0x20a   : > { %v1152_v57 = vpop.f32.mrf.mxu1 }
 0x20b   : > { %v1293_v58 = vmax.f32 %v1151_v56, 0.0 }
 0x20c   : > { %v1155_v59 = vpop.f32.mrf.mxu1 }
 0x20d   : > { %v1156_v60 = vadd.f32 %v4780_v40, %v1155_v59  ;;  %3464 = vmatprep.mubr.f32.mxu0 %v1293_v58 }
 0x20e   : > { %v1157_v61 = vpop.f32.mrf.mxu1 }
 0x20f   : > { %v1294_v62 = vmax.f32 %v1156_v60, 0.0 }
 0x210   : > { %v1160_v63 = vpop.f32.mrf.mxu1 }
 0x211   : > { %v1161_v1 = vadd.f32 %v4780_v40, %v1160_v63  ;;  %3465 = vmatmul.mubr.f32.gmra.mxu0 %v1294_v62 }
 0x212   : > { %v1162_v2 = vpop.f32.mrf.mxu1 }
 0x213   : > { %v1295_v3 = vmax.f32 %v1161_v1, 0.0 }
 0x214   : > { %v1165_v4 = vpop.f32.mrf.mxu1 }
 0x215   : > { %v1166_v5 = vadd.f32 %v4780_v40, %v1165_v4  ;;  %3467 = vmatprep.mubr.f32.mxu0 %v1295_v3 }
 0x216   : > { %v1167_v0 = vpop.f32.mrf.mxu1 }
 0x217   : > { %v1296_v6 = vmax.f32 %v1166_v5, 0.0 }
 0x218   : > { %v1170_v7 = vpop.f32.mrf.mxu1 }
 0x219   : > { %v1171_v10 = vadd.f32 %v4780_v40, %v1170_v7  ;;  %3468 = vmatmul.mubr.f32.gmra.mxu0 %v1296_v6 }
 0x21a   : > { %v1172_v12 = vpop.f32.mrf.mxu1 }
 0x21b   : > { %v1297_v15 = vmax.f32 %v1171_v10, 0.0 }
 0x21c   : > { %v1175_v16 = vpop.f32.mrf.mxu1 }
 0x21d   : > { %v1176_v17 = vadd.f32 %v4780_v40, %v1175_v16  ;;  %3470 = vmatprep.mubr.f32.mxu0 %v1297_v15 }
 0x21e   : > { %v1177_v18 = vpop.f32.mrf.mxu1 }
 0x21f   : > { %v1298_v19 = vmax.f32 %v1176_v17, 0.0 }
 0x220   : > { %v1180_v20 = vpop.f32.mrf.mxu1 }
 0x221   : > { %v1181_v21 = vadd.f32 %v4780_v40, %v1180_v20  ;;  %3471 = vmatmul.mubr.f32.gmra.mxu0 %v1298_v19 }
 0x222   : > { %v1182_v22 = vpop.f32.mrf.mxu1 }
 0x223   : > { %v1299_v23 = vmax.f32 %v1181_v21, 0.0 }
 0x224   : > { %v1185_v24 = vpop.f32.mrf.mxu1 }
 0x225   : > { %v1186_v25 = vadd.f32 %v4780_v40, %v1185_v24  ;;  %3473 = vmatprep.mubr.f32.mxu0 %v1299_v23 }
 0x226   : > { %v1187_v26 = vpop.f32.mrf.mxu1 }
 0x227   : > { %v1300_v27 = vmax.f32 %v1186_v25, 0.0  ;;  %v2001_v25 = vld [vmem:[#allocation9 + $0x78] sm:$0xff] }
 0x228   : > { %v1190_v28 = vpop.f32.mrf.mxu1  ;;  %3506 = vmatprep.subr.mxu1 %v2001_v25 }
 0x229   : > { %v1191_v29 = vadd.f32 %v4780_v40, %v1190_v28  ;;  %3474 = vmatmul.mubr.f32.gmra.mxu0 %v1300_v27  ;;  %3507 = vmatpush3.msra.mxu1 %v2001_v25 }
 0x22a   : > { %v1192_v30 = vpop.f32.mrf.mxu1 }
 0x22b   : > { %v1301_v31 = vmax.f32 %v1191_v29, 0.0 }
 0x22c   : > { %v1195_v32 = vpop.f32.mrf.mxu1 }
 0x22d   : > { %v1196_v33 = vadd.f32 %v4780_v40, %v1195_v32  ;;  %3476 = vmatprep.mubr.f32.mxu0 %v1301_v31 }
 0x22e   : > { %v1197_v34 = vpop.f32.mrf.mxu1 }
 0x22f   : > { %v1302_v35 = vmax.f32 %v1196_v33, 0.0  ;;  %v2000_v34 = vld [vmem:[#allocation9 + $0x70] sm:$0xff] }
 0x230   : > { %v1200_v36 = vpop.f32.mrf.mxu1  ;;  %3508 = vmatprep.subr.mxu1 %v2000_v34 }
 0x231   : > { %v1201_v37 = vadd.f32 %v4780_v40, %v1200_v36  ;;  %3477 = vmatmul.mubr.f32.gmra.mxu0 %v1302_v35  ;;  %3509 = vmatpush3.msra.mxu1 %v2000_v34 }
 0x232   : > { %v1202_v38 = vpop.f32.mrf.mxu1 }
 0x233   : > { %v1303_v39 = vmax.f32 %v1201_v37, 0.0 }
 0x234   : > { %v1205_v41 = vpop.f32.mrf.mxu1 }
 0x235   : > { %v1206_v42 = vadd.f32 %v4780_v40, %v1205_v41  ;;  %3479 = vmatprep.mubr.f32.mxu0 %v1303_v39 }
 0x236   : > { %v1207_v43 = vpop.f32.mrf.mxu1 }
 0x237   : > { %v1304_v44 = vmax.f32 %v1206_v42, 0.0 }
 0x238   : > { %v1210_v45 = vpop.f32.mrf.mxu1 }
 0x239   : > { %v1211_v46 = vadd.f32 %v4780_v40, %v1210_v45  ;;  %3480 = vmatmul.mubr.f32.gmra.mxu0 %v1304_v44  ;;  %v1999_v44 = vld [vmem:[#allocation9 + $0x68] sm:$0xff] }
 0x23a   : > { %v1212_v13 = vpop.f32.mrf.mxu1  ;;  %3510 = vmatprep.subr.mxu1 %v1999_v44 }
 0x23b   : > { %v1305_v47 = vmax.f32 %v1211_v46, 0.0  ;;  %3511 = vmatpush3.msra.mxu1 %v1999_v44 }
 0x23c   : > { %v1215_v14 = vpop.f32.mrf.mxu1 }
 0x23d   : > { %v1216_v48 = vadd.f32 %v4780_v40, %v1215_v14  ;;  %3482 = vmatprep.mubr.f32.mxu0 %v1305_v47 }
 0x23e   : > { %v1217_v49 = vpop.f32.mrf.mxu1 }
 0x23f   : > { %v1306_v50 = vmax.f32 %v1216_v48, 0.0 }
 0x240   : > { %v1220_v51 = vpop.f32.mrf.mxu1 }
 0x241   : > { %v1221_v52 = vadd.f32 %v4780_v40, %v1220_v51  ;;  %3483 = vmatmul.mubr.f32.gmra.mxu0 %v1306_v50  ;;  %v1998_v50 = vld [vmem:[#allocation9 + $0x60] sm:$0xff] }
 0x242   : > { %v1222_v53 = vpop.f32.mrf.mxu1  ;;  %3512 = vmatprep.subr.mxu1 %v1998_v50  ;;  %v4814_v51 = vld [vmem:[#allocation3] sm:$0xff] }
 0x243   : > { %v1307_v54 = vmax.f32 %v1221_v52, 0.0  ;;  %3513 = vmatpush3.msra.mxu1 %v1998_v50  ;;  %v1997_v52 = vld [vmem:[#allocation9 + $0x58] sm:$0xff]  ;;  %v1996_v53 = vld [vmem:[#allocation9 + $0x50] sm:$0xff] }
 0x244   : > { %v1225_v55 = vpop.f32.mrf.mxu1  ;;  %3514 = vmatprep.subr.mxu1 %v1997_v52 }
 0x245   : > { %v1226_v56 = vadd.f32 %v4780_v40, %v1225_v55  ;;  %3485 = vmatprep.mubr.f32.mxu0 %v1307_v54  ;;  %3515 = vmatpush3.msra.mxu1 %v1997_v52  ;;  %v1995_v54 = vld [vmem:[#allocation9 + $0x48] sm:$0xff]  ;;  %v1993_v55 = vld [vmem:[#allocation9 + $0x38] sm:$0xff] }
 0x246   : > { %v1227_v57 = vpop.f32.mrf.mxu1  ;;  %3516 = vmatprep.subr.mxu1 %v1996_v53 }
 0x247   : > { %v1308_v58 = vmax.f32 %v1226_v56, 0.0  ;;  %3517 = vmatpush3.msra.mxu1 %v1996_v53  ;;  %v1992_v56 = vld [vmem:[#allocation9 + $0x30] sm:$0xff]  ;;  %v1991_v57 = vld [vmem:[#allocation9 + $0x28] sm:$0xff] }
 0x248   : > { %v1230_v59 = vpop.f32.mrf.mxu1  ;;  %3518 = vmatprep.subr.mxu1 %v1995_v54 }
 0x249   : > { %v1231_v60 = vadd.f32 %v4780_v40, %v1230_v59  ;;  %3486 = vmatmul.mubr.f32.gmra.mxu0 %v1308_v58  ;;  %3519 = vmatpush3.msra.mxu1 %v1995_v54  ;;  %v1990_v58 = vld [vmem:[#allocation9 + $0x20] sm:$0xff]  ;;  %v4823_v59 = vld [vmem:[%s5726_s7] ss:$0 sm:$0xff] }
 0x24a   : > { %v1232_v61 = vpop.f32.mrf.mxu1 }
 0x24b   : > { %v1309_v62 = vmax.f32 %v1231_v60, 0.0  ;;  %v1989_v60 = vld [vmem:[#allocation9 + $0x18] sm:$0xff] }
 0x24c   : > { %v1235_v63 = vpop.f32.mrf.mxu1 }
 0x24d   : > { %v1236_v1 = vadd.f32 %v4780_v40, %v1235_v63  ;;  %3488 = vmatprep.mubr.f32.mxu0 %v1309_v62  ;;  %v1988_v63 = vld [vmem:[#allocation9 + $0x10] sm:$0xff] }
 0x24e   : > { %v1237_v2 = vpop.f32.mrf.mxu1 }
 0x24f   : > { %v1310_v3 = vmax.f32 %v1236_v1, 0.0 }
 0x250   : > { %v1240_v4 = vpop.f32.mrf.mxu1 }
 0x251   : > { %v1241_v5 = vadd.f32 %v4780_v40, %v1240_v4  ;;  %3489 = vmatmul.mubr.f32.gmra.mxu0 %v1310_v3 }
 0x252   : > { %v1242_v0 = vpop.f32.mrf.mxu1 }
 0x253   : > { %v1311_v6 = vmax.f32 %v1241_v5, 0.0  ;;  %v1987_v0 = vld [vmem:[#allocation9 + $0x8] sm:$0xff] }
 0x254   : > { %v1245_v7 = vpop.f32.mrf.mxu1 }
 0x255   : > { %v1246_v10 = vadd.f32 %v4780_v40, %v1245_v7  ;;  %3491 = vmatprep.mubr.f32.mxu0 %v1311_v6 }
 0x256   : > { %v1247_v12 = vpop.f32.mrf.mxu1 }
 0x257   : > { %v1312_v15 = vmax.f32 %v1246_v10, 0.0 }
 0x258   : > { %v1250_v16 = vpop.f32.mrf.mxu1 }
 0x259   : > { %v1251_v17 = vadd.f32 %v4780_v40, %v1250_v16  ;;  %3492 = vmatmul.mubr.f32.gmra.mxu0 %v1312_v15 }
 0x25a   : > { %v1252_v18 = vpop.f32.mrf.mxu1 }
 0x25b   : > { %v1313_v19 = vmax.f32 %v1251_v17, 0.0 }
 0x25c   : > { %v1255_v20 = vpop.f32.mrf.mxu1 }
 0x25d   : > { %v1256_v21 = vadd.f32 %v4780_v40, %v1255_v20  ;;  %3494 = vmatprep.mubr.f32.mxu0 %v1313_v19 }
 0x25e   : > { %v1257_v22 = vpop.f32.mrf.mxu1 }
 0x25f   : > { %v1314_v23 = vmax.f32 %v1256_v21, 0.0 }
 0x260   : > { %v1260_v24 = vpop.f32.mrf.mxu1 }
 0x261   : > { %v1261_v26 = vadd.f32 %v4780_v40, %v1260_v24  ;;  %3495 = vmatmul.mubr.f32.gmra.mxu0 %v1314_v23  ;;  %v1986_v23 = vld [vmem:[#allocation9] sm:$0xff] }
 0x262   : > { %v1262_v27 = vpop.f32.mrf.mxu1 }
 0x263   : > { %v1315_v28 = vmax.f32 %v1261_v26, 0.0 }
 0x264   : > { %v1265_v29 = vpop.f32.mrf.mxu1 }
 0x265   : > { %v1266_v30 = vadd.f32 %v4780_v40, %v1265_v29  ;;  %3497 = vmatprep.mubr.f32.mxu0 %v1315_v28 }
 0x266   : > { %v1267_v31 = vpop.f32.mrf.mxu1 }
 0x267   : > { %v1316_v32 = vmax.f32 %v1266_v30, 0.0 }
 0x268   : > { %v1270_v33 = vpop.f32.mrf.mxu1 }
 0x269   : > { %v1271_v35 = vadd.f32 %v4780_v40, %v1270_v33  ;;  %3498 = vmatmul.mubr.f32.gmra.mxu0 %v1316_v32 }
 0x26a   : > { %v1272_v36 = vpop.f32.mrf.mxu1 }
 0x26b   : > { %v1317_v37 = vmax.f32 %v1271_v35, 0.0 }
 0x26c   : > { %v1275_v38 = vpop.f32.mrf.mxu1 }
 0x26d   : > { %v1276_v39 = vadd.f32 %v4780_v40, %v1275_v38  ;;  %3500 = vmatprep.mubr.f32.mxu0 %v1317_v37 }
 0x26e   : > { %v1277_v41 = vpop.f32.mrf.mxu1 }
 0x26f   : > { %v1318_v42 = vmax.f32 %v1276_v39, 0.0 }
 0x270   : > { %v1280_v43 = vpop.f32.mrf.mxu1 }
 0x271   : > { %v1281_v45 = vadd.f32 %v4780_v40, %v1280_v43  ;;  %3501 = vmatmul.mubr.f32.gmra.mxu0 %v1318_v42 }
 0x272   : > { %v1282_v46 = vpop.f32.mrf.mxu1 }
 0x273   : > { %v1319_v13 = vmax.f32 %v1281_v45, 0.0 }
 0x274   : > { %v1285_v47 = vpop.f32.mrf.mxu1 }
 0x275   : > { %v1286_v14 = vadd.f32 %v4780_v40, %v1285_v47  ;;  %3503 = vmatprep.mubr.f32.mxu0 %v1319_v13  ;;  %v1994_v40 = vld [vmem:[#allocation9 + $0x40] sm:$0xff] }
 0x276   : > { %v1287_v48 = vpop.f32.mrf.mxu1  ;;  %3520 = vmatprep.subr.mxu1 %v1994_v40 }
 0x277   : > { %v1320_v49 = vmax.f32 %v1286_v14, 0.0  ;;  %3521 = vmatpush3.msra.mxu1 %v1994_v40 }
 0x278   : > { %3522 = vmatprep.subr.mxu1 %v1993_v55 }
 0x279   : > { %3504 = vmatmul.mubr.f32.gmra.mxu0 %v1320_v49  ;;  %3523 = vmatpush3.msra.mxu1 %v1993_v55 }
 0x27a   : > { %2374 = vmatprep.mubr.f32.mxu0 %v4814_v51  ;;  %3524 = vmatprep.subr.mxu1 %v1992_v56 }
 0x27b   : > { %3525 = vmatpush3.msra.mxu1 %v1992_v56 }
 0x27c   : > { %3526 = vmatprep.subr.mxu1 %v1991_v57 }
 0x27d   : > { %3527 = vmatpush3.msra.mxu1 %v1991_v57 }
 0x27e   : > { %3528 = vmatprep.subr.mxu1 %v1990_v58 }
 0x27f   : > { %3529 = vmatpush3.msra.mxu1 %v1990_v58 }
 0x280   : > { %3530 = vmatprep.subr.mxu1 %v1989_v60 }
 0x281   : > { %3531 = vmatpush3.msra.mxu1 %v1989_v60 }
 0x282   : > { %3532 = vmatprep.subr.mxu1 %v1988_v63 }
 0x283   : > { %3533 = vmatpush3.msra.mxu1 %v1988_v63 }
 0x284   : > { %3534 = vmatprep.subr.mxu1 %v1987_v0 }
 0x285   : > { %3535 = vmatpush3.msra.mxu1 %v1987_v0 }
 0x286   : > { %3536 = vmatprep.subr.mxu1 %v1986_v23 }
 0x287   : > { %3537 = vmatpush3.msra.mxu1 %v1986_v23 }
 0x288   : > { %3586 = vmatprep.subr.mxu1 %v4814_v51 }
 0x2c1   : > { %v3460_v61 = vpop.f32.mrf.mxu0 }
 0x2c2   : > { %v4826_v62 = vadd.f32 %v3460_v61, %v4823_v59 }
 0x2c3   : > { %v1410_v1 = vpop.f32.mrf.mxu0 }
 0x2c4   : > { %3120 = vst [vmem:[%s4828_s28 + $0x18] sm:$0xff] %v4826_v62  ;;  %v4833_v2 = vadd.f32 %v4823_v59, %v1410_v1  ;;  %v1602_v3 = vmul.f32 0.5, %v4826_v62 }
 0x2c6   : > { %v1601_v4 = vmul.f32 0.5, %v4833_v2  ;;  %3119 = vst [vmem:[%s4828_s28 + $0x8] sm:$0xff] %v4833_v2  ;;  %v1635_v7 = vmul.f32 1.442695, %v1602_v3 }
 0x2c8   : > { %v1633_v5 = vmul.f32 1.442695, %v1601_v4 }
 0x2c9   : > { %v3463_v6 = vpop.f32.mrf.mxu0 }
 0x2ca   : > { %3726 = vpow2.f32 %v1633_v5  ;;  %v4840_v10 = vadd.f32 %v3463_v6, %v4823_v59 }
 0x2cb   : > { %v1420_v12 = vpop.f32.mrf.mxu0  ;;  %3728 = vpow2.f32 %v1635_v7 }
 0x2cc   : > { %3122 = vst [vmem:[%s4828_s28 + $0x38] sm:$0xff] %v4840_v10  ;;  %v4845_v15 = vadd.f32 %v4823_v59, %v1420_v12  ;;  %v1604_v16 = vmul.f32 0.5, %v4840_v10 }
 0x2ce   : > { %v1603_v17 = vmul.f32 0.5, %v4845_v15  ;;  %3121 = vst [vmem:[%s4828_s28 + $0x28] sm:$0xff] %v4845_v15  ;;  %v1639_v20 = vmul.f32 1.442695, %v1604_v16 }
 0x2d0   : > { %v1637_v18 = vmul.f32 1.442695, %v1603_v17 }
 0x2d1   : > { %v3466_v19 = vpop.f32.mrf.mxu0 }
 0x2d2   : > { %3730 = vpow2.f32 %v1637_v18  ;;  %v4852_v21 = vadd.f32 %v3466_v19, %v4823_v59 }
 0x2d3   : > { %v1430_v22 = vpop.f32.mrf.mxu0  ;;  %3732 = vpow2.f32 %v1639_v20 }
 0x2d4   : > { %v1606_v24 = vmul.f32 0.5, %v4852_v21  ;;  %3124 = vst [vmem:[%s4828_s28 + $0x58] sm:$0xff] %v4852_v21  ;;  %v4858_v25 = vadd.f32 %v4823_v59, %v1430_v22 }
 0x2d6   : > { %v1643_v26 = vmul.f32 1.442695, %v1606_v24  ;;  %v1605_v27 = vmul.f32 0.5, %v4858_v25  ;;  %3123 = vst [vmem:[%s4828_s28 + $0x48] sm:$0xff] %v4858_v25 }
 0x2d7   : > { %v3727_v28 = vpop.eup %3726 }
 0x2d8   : > { %v1641_v29 = vmul.f32 1.442695, %v1605_v27  ;;  %1729 = vrot.lane.b32.xlu0 %v3727_v28, %s4074_s3  ;;  %3734 = vpow2.f32 %v1643_v26  ;;  %v3729_v32 = vpop.eup %3728 }
 0x2d9   : > { %v3469_v30 = vpop.f32.mrf.mxu0 }
 0x2da   : > { %3736 = vpow2.f32 %v1641_v29  ;;  %v4866_v31 = vadd.f32 %v3469_v30, %v4823_v59 }
 0x2db   : > { %v1440_v33 = vpop.f32.mrf.mxu0 }
 0x2dc   : > { %v1608_v34 = vmul.f32 0.5, %v4866_v31  ;;  %3126 = vst [vmem:[%s4828_s28 + $0x78] sm:$0xff] %v4866_v31  ;;  %v4872_v35 = vadd.f32 %v4823_v59, %v1440_v33  ;;  %1731 = vrot.lane.b32.xlu0 %v3729_v32, %s4074_s3 }
 0x2de   : > { %v1647_v36 = vmul.f32 1.442695, %v1608_v34  ;;  %v1607_v37 = vmul.f32 0.5, %v4872_v35  ;;  %3125 = vst [vmem:[%s4828_s28 + $0x68] sm:$0xff] %v4872_v35 }
 0x2df   : > { %v3731_v38 = vpop.eup %3730 }
 0x2e0   : > { %3738 = vpow2.f32 %v1647_v36  ;;  %v1645_v39 = vmul.f32 1.442695, %v1607_v37  ;;  %1733 = vrot.lane.b32.xlu1 %v3731_v38, %s4074_s3  ;;  %v3733_v43 = vpop.eup %3732 }
 0x2e1   : > { %v3472_v41 = vpop.f32.mrf.mxu0 }
 0x2e2   : > { %3740 = vpow2.f32 %v1645_v39  ;;  %v4880_v42 = vadd.f32 %v3472_v41, %v4823_v59 }
 0x2e3   : > { %v1450_v44 = vpop.f32.mrf.mxu0 }
 0x2e4   : > { %v1610_v45 = vmul.f32 0.5, %v4880_v42  ;;  %3128 = vst [vmem:[%s4828_s28 + $0x98] sm:$0xff] %v4880_v42  ;;  %v4886_v46 = vadd.f32 %v4823_v59, %v1450_v44  ;;  %1735 = vrot.lane.b32.xlu1 %v3733_v43, %s4074_s3 }
 0x2e5   : > { %v3735_v13 = vpop.eup %3734 }
 0x2e6   : > { %v1651_v47 = vmul.f32 1.442695, %v1610_v45  ;;  %v1609_v14 = vmul.f32 0.5, %v4886_v46  ;;  %3127 = vst [vmem:[%s4828_s28 + $0x88] sm:$0xff] %v4886_v46 }
 0x2e7   : > { %v3737_v48 = vpop.eup %3736 }
 0x2e8   : > { %3742 = vpow2.f32 %v1651_v47  ;;  %v1649_v49 = vmul.f32 1.442695, %v1609_v14  ;;  %1739 = vrot.lane.b32.xlu1 %v3735_v13, %s4074_s3  ;;  %1737 = vrot.lane.b32.xlu0 %v3737_v48, %s4074_s3 }
 0x2e9   : > { %v3475_v50 = vpop.f32.mrf.mxu0 }
 0x2ea   : > { %3744 = vpow2.f32 %v1649_v49  ;;  %v4895_v51 = vadd.f32 %v3475_v50, %v4823_v59 }
 0x2eb   : > { %v1460_v52 = vpop.f32.mrf.mxu0 }
 0x2ec   : > { %v1612_v53 = vmul.f32 0.5, %v4895_v51  ;;  %3130 = vst [vmem:[%s4828_s28 + $0xb8] sm:$0xff] %v4895_v51  ;;  %v4901_v54 = vadd.f32 %v4823_v59, %v1460_v52 }
 0x2ed   : > { %v3739_v40 = vpop.eup %3738 }
 0x2ee   : > { %v1655_v55 = vmul.f32 1.442695, %v1612_v53  ;;  %v1611_v56 = vmul.f32 0.5, %v4901_v54  ;;  %3129 = vst [vmem:[%s4828_s28 + $0xa8] sm:$0xff] %v4901_v54  ;;  %1743 = vrot.lane.b32.xlu1 %v3739_v40, %s4074_s3 }
 0x2ef   : > { %v3741_v57 = vpop.eup %3740 }
 0x2f0   : > { %3746 = vpow2.f32 %v1655_v55  ;;  %v1653_v58 = vmul.f32 1.442695, %v1611_v56  ;;  %1741 = vrot.lane.b32.xlu0 %v3741_v57, %s4074_s3 }
 0x2f1   : > { %v3478_v60 = vpop.f32.mrf.mxu0 }
 0x2f2   : > { %3748 = vpow2.f32 %v1653_v58  ;;  %v4909_v61 = vadd.f32 %v3478_v60, %v4823_v59 }
 0x2f3   : > { %v1470_v63 = vpop.f32.mrf.mxu0 }
 0x2f4   : > { %v1614_v1 = vmul.f32 0.5, %v4909_v61  ;;  %3132 = vst [vmem:[%s4828_s28 + $0xd8] sm:$0xff] %v4909_v61  ;;  %v4915_v3 = vadd.f32 %v4823_v59, %v1470_v63 }
 0x2f5   : > { %v3743_v4 = vpop.eup %3742 }
 0x2f6   : > { %v1659_v5 = vmul.f32 1.442695, %v1614_v1  ;;  %v1613_v0 = vmul.f32 0.5, %v4915_v3  ;;  %3131 = vst [vmem:[%s4828_s28 + $0xc8] sm:$0xff] %v4915_v3  ;;  %1747 = vrot.lane.b32.xlu1 %v3743_v4, %s4074_s3 }
 0x2f7   : > { %v3745_v6 = vpop.eup %3744 }
 0x2f8   : > { %3750 = vpow2.f32 %v1659_v5  ;;  %v1657_v7 = vmul.f32 1.442695, %v1613_v0  ;;  %1745 = vrot.lane.b32.xlu0 %v3745_v6, %s4074_s3 }
 0x2f9   : > { %v3481_v12 = vpop.f32.mrf.mxu0 }
 0x2fa   : > { %3752 = vpow2.f32 %v1657_v7  ;;  %v4923_v16 = vadd.f32 %v3481_v12, %v4823_v59 }
 0x2fb   : > { %v1480_v17 = vpop.f32.mrf.mxu0 }
 0x2fc   : > { %v1616_v18 = vmul.f32 0.5, %v4923_v16  ;;  %3134 = vst [vmem:[%s4828_s28 + $0xf8] sm:$0xff] %v4923_v16  ;;  %v4929_v19 = vadd.f32 %v4823_v59, %v1480_v17 }
 0x2fd   : > { %v3747_v20 = vpop.eup %3746 }
 0x2fe   : > { %v1663_v22 = vmul.f32 1.442695, %v1616_v18  ;;  %v1615_v23 = vmul.f32 0.5, %v4929_v19  ;;  %3133 = vst [vmem:[%s4828_s28 + $0xe8] sm:$0xff] %v4929_v19  ;;  %1751 = vrot.lane.b32.xlu1 %v3747_v20, %s4074_s3 }
 0x2ff   : > { %v3749_v24 = vpop.eup %3748 }
 0x300   : > { %3754 = vpow2.f32 %v1663_v22  ;;  %v1661_v26 = vmul.f32 1.442695, %v1615_v23  ;;  %1749 = vrot.lane.b32.xlu0 %v3749_v24, %s4074_s3 }
 0x301   : > { %v3484_v27 = vpop.f32.mrf.mxu0 }
 0x302   : > { %3756 = vpow2.f32 %v1661_v26  ;;  %v4937_v28 = vadd.f32 %v3484_v27, %v4823_v59 }
 0x303   : > { %v1490_v29 = vpop.f32.mrf.mxu0 }
 0x304   : > { %v1618_v30 = vmul.f32 0.5, %v4937_v28  ;;  %3136 = vst [vmem:[%s4828_s28 + $0x118] sm:$0xff] %v4937_v28  ;;  %v4943_v32 = vadd.f32 %v4823_v59, %v1490_v29 }
 0x305   : > { %v3751_v33 = vpop.eup %3750 }
 0x306   : > { %v1667_v34 = vmul.f32 1.442695, %v1618_v30  ;;  %v1617_v36 = vmul.f32 0.5, %v4943_v32  ;;  %3135 = vst [vmem:[%s4828_s28 + $0x108] sm:$0xff] %v4943_v32  ;;  %1755 = vrot.lane.b32.xlu1 %v3751_v33, %s4074_s3 }
 0x307   : > { %v3753_v37 = vpop.eup %3752 }
 0x308   : > { %3758 = vpow2.f32 %v1667_v34  ;;  %v1665_v38 = vmul.f32 1.442695, %v1617_v36  ;;  %1753 = vrot.lane.b32.xlu0 %v3753_v37, %s4074_s3 }
 0x309   : > { %v3487_v39 = vpop.f32.mrf.mxu0 }
 0x30a   : > { %3760 = vpow2.f32 %v1665_v38  ;;  %v4951_v41 = vadd.f32 %v3487_v39, %v4823_v59 }
 0x30b   : > { %v1500_v43 = vpop.f32.mrf.mxu0 }
 0x30c   : > { %v1620_v44 = vmul.f32 0.5, %v4951_v41  ;;  %3138 = vst [vmem:[%s4828_s28 + $0x138] sm:$0xff] %v4951_v41  ;;  %v4957_v45 = vadd.f32 %v4823_v59, %v1500_v43 }
 0x30d   : > { %v3755_v13 = vpop.eup %3754 }
 0x30e   : > { %v1671_v47 = vmul.f32 1.442695, %v1620_v44  ;;  %v1619_v14 = vmul.f32 0.5, %v4957_v45  ;;  %3137 = vst [vmem:[%s4828_s28 + $0x128] sm:$0xff] %v4957_v45  ;;  %1759 = vrot.lane.b32.xlu1 %v3755_v13, %s4074_s3 }
 0x30f   : > { %v3757_v48 = vpop.eup %3756 }
 0x310   : > { %3762 = vpow2.f32 %v1671_v47  ;;  %v1669_v49 = vmul.f32 1.442695, %v1619_v14  ;;  %1757 = vrot.lane.b32.xlu0 %v3757_v48, %s4074_s3 }
 0x311   : > { %v3490_v50 = vpop.f32.mrf.mxu0 }
 0x312   : > { %3764 = vpow2.f32 %v1669_v49  ;;  %v4965_v52 = vadd.f32 %v3490_v50, %v4823_v59 }
 0x313   : > { %v1510_v53 = vpop.f32.mrf.mxu0 }
 0x314   : > { %v1622_v40 = vmul.f32 0.5, %v4965_v52  ;;  %3140 = vst [vmem:[%s4828_s28 + $0x158] sm:$0xff] %v4965_v52  ;;  %v4971_v55 = vadd.f32 %v4823_v59, %v1510_v53 }
 0x315   : > { %v3759_v56 = vpop.eup %3758 }
 0x316   : > { %v1675_v57 = vmul.f32 1.442695, %v1622_v40  ;;  %v1621_v58 = vmul.f32 0.5, %v4971_v55  ;;  %3139 = vst [vmem:[%s4828_s28 + $0x148] sm:$0xff] %v4971_v55  ;;  %1763 = vrot.lane.b32.xlu1 %v3759_v56, %s4074_s3 }
 0x317   : > { %v3761_v60 = vpop.eup %3760 }
 0x318   : > { %3766 = vpow2.f32 %v1675_v57  ;;  %v1673_v63 = vmul.f32 1.442695, %v1621_v58  ;;  %1761 = vrot.lane.b32.xlu0 %v3761_v60, %s4074_s3 }
 0x319   : > { %v3493_v1 = vpop.f32.mrf.mxu0 }
 0x31a   : > { %3768 = vpow2.f32 %v1673_v63  ;;  %v4979_v4 = vadd.f32 %v3493_v1, %v4823_v59 }
 0x31b   : > { %v1520_v5 = vpop.f32.mrf.mxu0 }
 0x31c   : > { %v1624_v0 = vmul.f32 0.5, %v4979_v4  ;;  %3142 = vst [vmem:[%s4828_s28 + $0x178] sm:$0xff] %v4979_v4  ;;  %v4985_v6 = vadd.f32 %v4823_v59, %v1520_v5 }
 0x31d   : > { %v3763_v7 = vpop.eup %3762 }
 0x31e   : > { %v1679_v12 = vmul.f32 1.442695, %v1624_v0  ;;  %v1623_v17 = vmul.f32 0.5, %v4985_v6  ;;  %3141 = vst [vmem:[%s4828_s28 + $0x168] sm:$0xff] %v4985_v6  ;;  %1767 = vrot.lane.b32.xlu1 %v3763_v7, %s4074_s3 }
 0x31f   : > { %v3765_v18 = vpop.eup %3764 }
 0x320   : > { %3770 = vpow2.f32 %v1679_v12  ;;  %v1677_v20 = vmul.f32 1.442695, %v1623_v17  ;;  %1765 = vrot.lane.b32.xlu0 %v3765_v18, %s4074_s3 }
 0x321   : > { %v3496_v22 = vpop.f32.mrf.mxu0 }
 0x322   : > { %3772 = vpow2.f32 %v1677_v20  ;;  %v4993_v23 = vadd.f32 %v3496_v22, %v4823_v59 }
 0x323   : > { %v1530_v24 = vpop.f32.mrf.mxu0 }
 0x324   : > { %v1626_v26 = vmul.f32 0.5, %v4993_v23  ;;  %3144 = vst [vmem:[%s4828_s28 + $0x198] sm:$0xff] %v4993_v23  ;;  %v4999_v27 = vadd.f32 %v4823_v59, %v1530_v24 }
 0x325   : > { %v3767_v29 = vpop.eup %3766 }
 0x326   : > { %v1683_v30 = vmul.f32 1.442695, %v1626_v26  ;;  %v1625_v33 = vmul.f32 0.5, %v4999_v27  ;;  %3143 = vst [vmem:[%s4828_s28 + $0x188] sm:$0xff] %v4999_v27  ;;  %1771 = vrot.lane.b32.xlu1 %v3767_v29, %s4074_s3 }
 0x327   : > { %v3769_v34 = vpop.eup %3768 }
 0x328   : > { %3774 = vpow2.f32 %v1683_v30  ;;  %v1681_v36 = vmul.f32 1.442695, %v1625_v33  ;;  %1769 = vrot.lane.b32.xlu0 %v3769_v34, %s4074_s3  ;;  %v1569_v33 = vld [vmem:[%s5053_s22] sm:$0xff] }
 0x329   : > { %v3499_v37 = vpop.f32.mrf.mxu0 }
 0x32a   : > { %3776 = vpow2.f32 %v1681_v36  ;;  %v5007_v38 = vadd.f32 %v3499_v37, %v4823_v59  ;;  %v1570_v37 = vld [vmem:[%s5053_s22 + $0x8] sm:$0xff] }
 0x32b   : > { %v1540_v39 = vpop.f32.mrf.mxu0 }
 0x32c   : > { %v1628_v43 = vmul.f32 0.5, %v5007_v38  ;;  %3146 = vst [vmem:[%s4828_s28 + $0x1b8] sm:$0xff] %v5007_v38  ;;  %v5013_v44 = vadd.f32 %v4823_v59, %v1540_v39 }
 0x32d   : > { %v3771_v13 = vpop.eup %3770 }
 0x32e   : > { %v1687_v47 = vmul.f32 1.442695, %v1628_v43  ;;  %v1627_v14 = vmul.f32 0.5, %v5013_v44  ;;  %3145 = vst [vmem:[%s4828_s28 + $0x1a8] sm:$0xff] %v5013_v44  ;;  %1775 = vrot.lane.b32.xlu1 %v3771_v13, %s4074_s3 }
 0x32f   : > { %v3773_v48 = vpop.eup %3772 }
 0x330   : > { %3778 = vpow2.f32 %v1687_v47  ;;  %v1685_v49 = vmul.f32 1.442695, %v1627_v14  ;;  %1773 = vrot.lane.b32.xlu0 %v3773_v48, %s4074_s3  ;;  %v1571_v48 = vld [vmem:[%s5053_s22 + $0x10] sm:$0xff] }
 0x331   : > { %v3502_v50 = vpop.f32.mrf.mxu0 }
 0x332   : > { %3780 = vpow2.f32 %v1685_v49  ;;  %v5021_v53 = vadd.f32 %v3502_v50, %v4823_v59  ;;  %v2297_v49 = vld [vmem:[%s5729_s10 + $0xf8] sm:$0xff]  ;;  %v2296_v50 = vld [vmem:[%s5729_s10 + $0xf0] sm:$0xff] }
 0x333   : > { %v1550_v40 = vpop.f32.mrf.mxu0  ;;  %2310 = vmatprep.subr.mxu0 %v2297_v49  ;;  %v2282_v49 = vld [vmem:[%s5729_s10 + $0x80] sm:$0xff] }
 0x334   : > { %v1630_v56 = vmul.f32 0.5, %v5021_v53  ;;  %3148 = vst [vmem:[%s4828_s28 + $0x1d8] sm:$0xff] %v5021_v53  ;;  %v5027_v57 = vadd.f32 %v4823_v59, %v1550_v40  ;;  %2311 = vmatpush1.msra.mxu0 %v2296_v50 }
 0x335   : > { %v3775_v58 = vpop.eup %3774 }
 0x336   : > { %v1691_v60 = vmul.f32 1.442695, %v1630_v56  ;;  %v1629_v63 = vmul.f32 0.5, %v5027_v57  ;;  %3147 = vst [vmem:[%s4828_s28 + $0x1c8] sm:$0xff] %v5027_v57  ;;  %1779 = vrot.lane.b32.xlu1 %v3775_v58, %s4074_s3  ;;  %v2294_v56 = vld [vmem:[%s5729_s10 + $0xe0] sm:$0xff] }
 0x337   : > { %v3777_v1 = vpop.eup %3776 }
 0x338   : > { %3782 = vpow2.f32 %v1691_v60  ;;  %v1689_v5 = vmul.f32 1.442695, %v1629_v63  ;;  %1777 = vrot.lane.b32.xlu0 %v3777_v1, %s4074_s3  ;;  %v2293_v60 = vld [vmem:[%s5729_s10 + $0xd8] sm:$0xff]  ;;  %v2292_v1 = vld [vmem:[%s5729_s10 + $0xd0] sm:$0xff] }
 0x339   : > { %v3505_v0 = vpop.f32.mrf.mxu0 }
 0x33a   : > { %3784 = vpow2.f32 %v1689_v5  ;;  %v5035_v7 = vadd.f32 %v3505_v0, %v4823_v59  ;;  %v2291_v5 = vld [vmem:[%s5729_s10 + $0xc8] sm:$0xff] }
 0x33b   : > { %v1560_v12 = vpop.f32.mrf.mxu0 }
 0x33c   : > { %v1632_v17 = vmul.f32 0.5, %v5035_v7  ;;  %3150 = vst [vmem:[%s4828_s28 + $0x1f8] sm:$0xff] %v5035_v7  ;;  %v5041_v18 = vadd.f32 %v4823_v59, %v1560_v12  ;;  %v2290_v12 = vld [vmem:[%s5729_s10 + $0xc0] sm:$0xff] }
 0x33d   : > { %v3779_v20 = vpop.eup %3778 }
 0x33e   : > { %v1695_v22 = vmul.f32 1.442695, %v1632_v17  ;;  %v1631_v24 = vmul.f32 0.5, %v5041_v18  ;;  %3149 = vst [vmem:[%s4828_s28 + $0x1e8] sm:$0xff] %v5041_v18  ;;  %1783 = vrot.lane.b32.xlu1 %v3779_v20, %s4074_s3 }
 0x33f   : > { %v3781_v26 = vpop.eup %3780 }
 0x340   : > { %3786 = vpow2.f32 %v1695_v22  ;;  %v1693_v29 = vmul.f32 1.442695, %v1631_v24  ;;  %1781 = vrot.lane.b32.xlu0 %v3781_v26, %s4074_s3  ;;  %v2289_v22 = vld [vmem:[%s5729_s10 + $0xb8] sm:$0xff]  ;;  %v1574_v26 = vld [vmem:[%s5053_s22 + $0x28] sm:$0xff] }
 0x342   : > { %3788 = vpow2.f32 %v1693_v29  ;;  %v1573_v29 = vld [vmem:[%s5053_s22 + $0x20] sm:$0xff] }
 0x345   : > { %v3783_v30 = vpop.eup %3782 }
 0x346   : > { %1787 = vrot.lane.b32.xlu1 %v3783_v30, %s4074_s3  ;;  %v2287_v30 = vld [vmem:[%s5729_s10 + $0xa8] sm:$0xff] }
 0x347   : > { %v3785_v59 = vpop.eup %3784 }
 0x348   : > { %1785 = vrot.lane.b32.xlu0 %v3785_v59, %s4074_s3 }
 0x34a   : > { %v1730_v34 = vpop.permute.xlu0 %1729 }
 0x34b   : > { %v1825_v36 = vmul.f32 %v1730_v34, %v1569_v33  ;;  %v2286_v33 = vld [vmem:[%s5729_s10 + $0xa0] sm:$0xff] }
 0x34d   : > { %v3787_v39 = vpop.eup %3786  ;;  %v1857_v43 = vadd.f32 %v1825_v36, %v4833_v2  ;;  %v2295_v2 = vld [vmem:[%s5729_s10 + $0xe8] sm:$0xff] }
 0x34e   : > { %1791 = vrot.lane.b32.xlu1 %v3787_v39, %s4074_s3  ;;  %v1732_v13 = vpop.permute.xlu0 %1731  ;;  %2312 = vmatprep.subr.mxu0 %v2295_v2  ;;  %v2285_v39 = vld [vmem:[%s5729_s10 + $0x98] sm:$0xff] }
 0x34f   : > { %v3789_v47 = vpop.eup %3788  ;;  %1922 = vst.msk [vmem:[#allocation3] sm:$0xff] %vm1921_vm1, %v1857_v43  ;;  %v1826_v14 = vmul.f32 %v1732_v13, %v1570_v37  ;;  %2313 = vmatpush1.msra.mxu0 %v2294_v56  ;;  %v1576_v2 = vld [vmem:[%s5053_s22 + $0x38] sm:$0xff]  ;;  %v1575_v56 = vld [vmem:[%s5053_s22 + $0x30] sm:$0xff] }
 0x350   : > { %1789 = vrot.lane.b32.xlu0 %v3789_v47, %s4074_s3  ;;  %2314 = vmatprep.subr.mxu0 %v2293_v60  ;;  %v2283_v47 = vld [vmem:[%s5729_s10 + $0x88] sm:$0xff] }
 0x351   : > { %v1858_v40 = vadd.f32 %v1826_v14, %v4826_v62  ;;  %v1572_v62 = vld [vmem:[%s5053_s22 + $0x18] sm:$0xff]  ;;  %2315 = vmatpush1.msra.mxu0 %v2292_v1 }
 0x352   : > { %v1734_v58 = vpop.permute.xlu1 %1733  ;;  %2316 = vmatprep.subr.mxu0 %v2291_v5  ;;  %v2277_v5 = vld [vmem:[%s5729_s10 + $0x58] sm:$0xff] }
 0x353   : > { %1923 = vst.msk [vmem:[#allocation3 + $0x8] sm:$0xff] %vm1921_vm1, %v1858_v40  ;;  %v1827_v63 = vmul.f32 %v1734_v58, %v1571_v48  ;;  %2317 = vmatpush1.msra.mxu0 %v2290_v12  ;;  %v2281_v40 = vld [vmem:[%s5729_s10 + $0x78] sm:$0xff]  ;;  %v2279_v58 = vld [vmem:[%s5729_s10 + $0x68] sm:$0xff] }
 0x354   : > { %2318 = vmatprep.subr.mxu0 %v2289_v22 }
 0x355   : > { %v1859_v0 = vadd.f32 %v1827_v63, %v4845_v15  ;;  %v2288_v15 = vld [vmem:[%s5729_s10 + $0xb0] sm:$0xff]  ;;  %v2278_v63 = vld [vmem:[%s5729_s10 + $0x60] sm:$0xff] }
 0x356   : > { %v1736_v17 = vpop.permute.xlu1 %1735  ;;  %v1954_v20 = vld [vmem:[#allocation3] sm:$0xff]  ;;  %2319 = vmatpush1.msra.mxu0 %v2288_v15 }
 0x357   : > { %1924 = vst.msk [vmem:[#allocation3 + $0x10] sm:$0xff] %vm1921_vm1, %v1859_v0  ;;  %v1828_v24 = vmul.f32 %v1736_v17, %v1572_v62  ;;  %3538 = vmatprep.mubr.f32.mxu1 %v1954_v20  ;;  %2320 = vmatprep.subr.mxu0 %v2287_v30  ;;  %v2276_v17 = vld [vmem:[%s5729_s10 + $0x50] sm:$0xff]  ;;  %v2275_v20 = vld [vmem:[%s5729_s10 + $0x48] sm:$0xff] }
 0x358   : > { %2321 = vmatpush1.msra.mxu0 %v2286_v33  ;;  %v2271_v33 = vld [vmem:[%s5729_s10 + $0x28] sm:$0xff] }
 0x359   : > { %v1860_v59 = vadd.f32 %v1828_v24, %v4840_v10  ;;  %v2284_v10 = vld [vmem:[%s5729_s10 + $0x90] sm:$0xff]  ;;  %2322 = vmatprep.subr.mxu0 %v2285_v39  ;;  %v1578_v24 = vld [vmem:[%s5053_s22 + $0x48] sm:$0xff]  ;;  %v2269_v39 = vld [vmem:[%s5729_s10 + $0x18] sm:$0xff] }
 0x35a   : > { %v1740_v34 = vpop.permute.xlu1 %1739  ;;  %v1738_v36 = vpop.permute.xlu0 %1737  ;;  %v1955_v37 = vld [vmem:[#allocation3 + $0x8] sm:$0xff]  ;;  %2323 = vmatpush1.msra.mxu0 %v2284_v10  ;;  %v2268_v10 = vld [vmem:[%s5729_s10 + $0x10] sm:$0xff] }
 0x35b   : > { %1925 = vst.msk [vmem:[#allocation3 + $0x18] sm:$0xff] %vm1921_vm1, %v1860_v59  ;;  %v1830_v43 = vmul.f32 %v1740_v34, %v1574_v26  ;;  %v1829_v13 = vmul.f32 %v1738_v36, %v1573_v29  ;;  %3539 = vmatmul.mubr.f32.vlgmr.msra.gmra.mxu1 %v1955_v37  ;;  %2324 = vmatprep.subr.mxu0 %v2283_v47  ;;  %v2273_v29 = vld [vmem:[%s5729_s10 + $0x38] sm:$0xff]  ;;  %v1577_v59 = vld [vmem:[%s5053_s22 + $0x40] sm:$0xff] }
 0x35c   : > { %2325 = vmatpush1.msra.mxu0 %v2282_v49  ;;  %v2270_v36 = vld [vmem:[%s5729_s10 + $0x20] sm:$0xff] }
 0x35d   : > { %v1862_v14 = vadd.f32 %v1830_v43, %v4852_v21  ;;  %v1861_v48 = vadd.f32 %v1829_v13, %v4858_v25  ;;  %v2280_v21 = vld [vmem:[%s5729_s10 + $0x70] sm:$0xff]  ;;  %2326 = vmatprep.subr.mxu0 %v2281_v40 }
 0x35e   : > { %v1956_v50 = vld [vmem:[#allocation3 + $0x10] sm:$0xff]  ;;  %2327 = vmatpush1.msra.mxu0 %v2280_v21 }
 0x35f   : > { %1927 = vst.msk [vmem:[#allocation3 + $0x28] sm:$0xff] %vm1921_vm1, %v1862_v14  ;;  %1926 = vst.msk [vmem:[#allocation3 + $0x20] sm:$0xff] %vm1921_vm1, %v1861_v48  ;;  %3541 = vmatprep.mubr.f32.mxu1 %v1956_v50  ;;  %2328 = vmatprep.subr.mxu0 %v2279_v58  ;;  %v1580_v48 = vld [vmem:[%s5053_s22 + $0x58] sm:$0xff]  ;;  %v1579_v50 = vld [vmem:[%s5053_s22 + $0x50] sm:$0xff] }
 0x360   : > { %v1744_v25 = vpop.permute.xlu1 %1743  ;;  %2329 = vmatpush1.msra.mxu0 %v2278_v63  ;;  %v1582_v58 = vld [vmem:[%s5053_s22 + $0x68] sm:$0xff] }
 0x361   : > { %v1832_v60 = vmul.f32 %v1744_v25, %v1576_v2  ;;  %2330 = vmatprep.subr.mxu0 %v2277_v5 }
 0x362   : > { %v1742_v1 = vpop.permute.xlu0 %1741  ;;  %v1957_v62 = vld [vmem:[#allocation3 + $0x18] sm:$0xff]  ;;  %2331 = vmatpush1.msra.mxu0 %v2276_v17 }
 0x363   : > { %v1864_v0 = vadd.f32 %v1832_v60, %v4866_v31  ;;  %v1831_v12 = vmul.f32 %v1742_v1, %v1575_v56  ;;  %3542 = vmatmul.mubr.f32.gmra.mxu1 %v1957_v62  ;;  %v2274_v31 = vld [vmem:[%s5729_s10 + $0x40] sm:$0xff]  ;;  %2332 = vmatprep.subr.mxu0 %v2275_v20  ;;  %v1584_v17 = vld [vmem:[%s5053_s22 + $0x78] sm:$0xff] }
 0x364   : > { %2333 = vmatpush1.msra.mxu0 %v2274_v31  ;;  %v1581_v1 = vld [vmem:[%s5053_s22 + $0x60] sm:$0xff] }
 0x365   : > { %1929 = vst.msk [vmem:[#allocation3 + $0x38] sm:$0xff] %vm1921_vm1, %v1864_v0  ;;  %v1863_v22 = vadd.f32 %v1831_v12, %v4872_v35  ;;  %v2272_v35 = vld [vmem:[%s5729_s10 + $0x30] sm:$0xff]  ;;  %2334 = vmatprep.subr.mxu0 %v2273_v29 }
 0x366   : > { %v1958_v15 = vld [vmem:[#allocation3 + $0x20] sm:$0xff]  ;;  %v1959_v26 = vld [vmem:[#allocation3 + $0x28] sm:$0xff]  ;;  %2335 = vmatpush1.msra.mxu0 %v2272_v35 }
 0x367   : > { %1928 = vst.msk [vmem:[#allocation3 + $0x30] sm:$0xff] %vm1921_vm1, %v1863_v22  ;;  %3544 = vmatprep.mubr.f32.mxu1 %v1958_v15  ;;  %2336 = vmatprep.subr.mxu0 %v2271_v33  ;;  %v1586_v35 = vld [vmem:[%s5053_s22 + $0x88] sm:$0xff]  ;;  %v1585_v33 = vld [vmem:[%s5053_s22 + $0x80] sm:$0xff] }
 0x368   : > { %v1748_v30 = vpop.permute.xlu1 %1747  ;;  %3545 = vmatmul.mubr.f32.gmra.mxu1 %v1959_v26  ;;  %2337 = vmatpush1.msra.mxu0 %v2270_v36 }
 0x369   : > { %v1834_v34 = vmul.f32 %v1748_v30, %v1578_v24  ;;  %2338 = vmatprep.subr.mxu0 %v2269_v39  ;;  %v1583_v24 = vld [vmem:[%s5053_s22 + $0x70] sm:$0xff] }
 0x36a   : > { %v1746_v37 = vpop.permute.xlu0 %1745  ;;  %2339 = vmatpush1.msra.mxu0 %v2268_v10 }
 0x36b   : > { %v1866_v43 = vadd.f32 %v1834_v34, %v4880_v42  ;;  %v1833_v13 = vmul.f32 %v1746_v37, %v1577_v59 }
 0x36c   : > { %v1961_v42 = vld [vmem:[#allocation3 + $0x38] sm:$0xff] }
 0x36d   : > { %1931 = vst.msk [vmem:[#allocation3 + $0x48] sm:$0xff] %vm1921_vm1, %v1866_v43  ;;  %v1865_v47 = vadd.f32 %v1833_v13, %v4886_v46  ;;  %v1588_v43 = vld [vmem:[%s5053_s22 + $0x98] sm:$0xff] }
 0x36e   : > { %v1960_v14 = vld [vmem:[#allocation3 + $0x30] sm:$0xff] }
 0x36f   : > { %1930 = vst.msk [vmem:[#allocation3 + $0x40] sm:$0xff] %vm1921_vm1, %v1865_v47  ;;  %3547 = vmatprep.mubr.f32.mxu1 %v1960_v14  ;;  %v1587_v47 = vld [vmem:[%s5053_s22 + $0x90] sm:$0xff] }
 0x370   : > { %v1752_v49 = vpop.permute.xlu1 %1751  ;;  %3548 = vmatmul.mubr.f32.gmra.mxu1 %v1961_v42 }
 0x371   : > { %v1836_v2 = vmul.f32 %v1752_v49, %v1580_v48 }
 0x372   : > { %v1750_v40 = vpop.permute.xlu0 %1749 }
 0x373   : > { %v1868_v21 = vadd.f32 %v1836_v2, %v4895_v51  ;;  %v1835_v25 = vmul.f32 %v1750_v40, %v1579_v50  ;;  %v1590_v50 = vld [vmem:[%s5053_s22 + $0xa8] sm:$0xff] }
 0x374   : > { %v1963_v60 = vld [vmem:[#allocation3 + $0x48] sm:$0xff] }
 0x375   : > { %1933 = vst.msk [vmem:[#allocation3 + $0x58] sm:$0xff] %vm1921_vm1, %v1868_v21  ;;  %v1867_v46 = vadd.f32 %v1835_v25, %v4901_v54  ;;  %v1589_v21 = vld [vmem:[%s5053_s22 + $0xa0] sm:$0xff] }
 0x376   : > { %v1962_v56 = vld [vmem:[#allocation3 + $0x40] sm:$0xff] }
 0x377   : > { %1932 = vst.msk [vmem:[#allocation3 + $0x50] sm:$0xff] %vm1921_vm1, %v1867_v46  ;;  %3550 = vmatprep.mubr.f32.mxu1 %v1962_v56 }
 0x378   : > { %v1756_v63 = vpop.permute.xlu1 %1755  ;;  %3551 = vmatmul.mubr.f32.gmra.mxu1 %v1963_v60  ;;  %v1592_v60 = vld [vmem:[%s5053_s22 + $0xb8] sm:$0xff] }
 0x379   : > { %v1838_v62 = vmul.f32 %v1756_v63, %v1582_v58 }
 0x37a   : > { %v1754_v5 = vpop.permute.xlu0 %1753 }
 0x37b   : > { %v1870_v51 = vadd.f32 %v1838_v62, %v4909_v61  ;;  %v1837_v0 = vmul.f32 %v1754_v5, %v1581_v1  ;;  %v2267_v1 = vld [vmem:[%s5729_s10 + $0x8] sm:$0xff]  ;;  %v1591_v5 = vld [vmem:[%s5053_s22 + $0xb0] sm:$0xff] }
 0x37c   : > { %v1965_v20 = vld [vmem:[#allocation3 + $0x58] sm:$0xff]  ;;  %2340 = vmatprep.subr.mxu0 %v2267_v1  ;;  %v2645_v1 = vld [vmem:[%s5731_s12 + $0x70] sm:$0xff] }
 0x37d   : > { %1935 = vst.msk [vmem:[#allocation3 + $0x68] sm:$0xff] %vm1921_vm1, %v1870_v51  ;;  %v1869_v54 = vadd.f32 %v1837_v0, %v4915_v3  ;;  %v5223_v0 = vld [vmem:[#allocation3 + $0xb0] sm:$0xff] }
 0x37e   : > { %v1964_v12 = vld [vmem:[#allocation3 + $0x50] sm:$0xff] }
 0x37f   : > { %1934 = vst.msk [vmem:[#allocation3 + $0x60] sm:$0xff] %vm1921_vm1, %v1869_v54  ;;  %3553 = vmatprep.mubr.f32.mxu1 %v1964_v12 }
 0x380   : > { %v1760_v22 = vpop.permute.xlu1 %1759  ;;  %3554 = vmatmul.mubr.f32.gmra.mxu1 %v1965_v20 }
 0x381   : > { %v1840_v31 = vmul.f32 %v1760_v22, %v1584_v17  ;;  %v1594_v22 = vld [vmem:[%s5053_s22 + $0xc8] sm:$0xff] }
 0x382   : > { %v1758_v15 = vpop.permute.xlu0 %1757 }
 0x383   : > { %v1872_v61 = vadd.f32 %v1840_v31, %v4923_v16  ;;  %v1839_v26 = vmul.f32 %v1758_v15, %v1583_v24  ;;  %v1593_v15 = vld [vmem:[%s5053_s22 + $0xc0] sm:$0xff] }
 0x384   : > { %v1967_v30 = vld [vmem:[#allocation3 + $0x68] sm:$0xff] }
 0x385   : > { %1937 = vst.msk [vmem:[#allocation3 + $0x78] sm:$0xff] %vm1921_vm1, %v1872_v61  ;;  %v1871_v3 = vadd.f32 %v1839_v26, %v4929_v19 }
 0x386   : > { %v1966_v29 = vld [vmem:[#allocation3 + $0x60] sm:$0xff] }
 0x387   : > { %1936 = vst.msk [vmem:[#allocation3 + $0x70] sm:$0xff] %vm1921_vm1, %v1871_v3  ;;  %3556 = vmatprep.mubr.f32.mxu1 %v1966_v29 }
 0x388   : > { %v1764_v59 = vpop.permute.xlu1 %1763  ;;  %3557 = vmatmul.mubr.f32.gmra.mxu1 %v1967_v30 }
 0x389   : > { %v1842_v34 = vmul.f32 %v1764_v59, %v1586_v35  ;;  %v1596_v35 = vld [vmem:[%s5053_s22 + $0xd8] sm:$0xff] }
 0x38a   : > { %v1762_v36 = vpop.permute.xlu0 %1761 }
 0x38b   : > { %v1874_v16 = vadd.f32 %v1842_v34, %v4937_v28  ;;  %v1841_v37 = vmul.f32 %v1762_v36, %v1585_v33  ;;  %v1595_v33 = vld [vmem:[%s5053_s22 + $0xd0] sm:$0xff] }
 0x38c   : > { %v1969_v13 = vld [vmem:[#allocation3 + $0x78] sm:$0xff] }
 0x38d   : > { %1939 = vst.msk [vmem:[#allocation3 + $0x88] sm:$0xff] %vm1921_vm1, %v1874_v16  ;;  %v1873_v19 = vadd.f32 %v1841_v37, %v4943_v32 }
 0x38e   : > { %v1968_v39 = vld [vmem:[#allocation3 + $0x70] sm:$0xff] }
 0x38f   : > { %1938 = vst.msk [vmem:[#allocation3 + $0x80] sm:$0xff] %vm1921_vm1, %v1873_v19  ;;  %3559 = vmatprep.mubr.f32.mxu1 %v1968_v39  ;;  %v1598_v19 = vld [vmem:[%s5053_s22 + $0xe8] sm:$0xff] }
 0x390   : > { %v1768_v10 = vpop.permute.xlu1 %1767  ;;  %3560 = vmatmul.mubr.f32.gmra.mxu1 %v1969_v13  ;;  %v1597_v13 = vld [vmem:[%s5053_s22 + $0xe0] sm:$0xff] }
 0x391   : > { %v1844_v14 = vmul.f32 %v1768_v10, %v1588_v43 }
 0x392   : > { %v1766_v48 = vpop.permute.xlu0 %1765 }
 0x393   : > { %v1876_v28 = vadd.f32 %v1844_v14, %v4951_v41  ;;  %v1843_v42 = vmul.f32 %v1766_v48, %v1587_v47 }
 0x394   : > { %v1971_v2 = vld [vmem:[#allocation3 + $0x88] sm:$0xff] }
 0x395   : > { %1941 = vst.msk [vmem:[#allocation3 + $0x98] sm:$0xff] %vm1921_vm1, %v1876_v28  ;;  %v1875_v32 = vadd.f32 %v1843_v42, %v4957_v45  ;;  %v1600_v28 = vld [vmem:[%s5053_s22 + $0xf8] sm:$0xff] }
 0x396   : > { %v1970_v49 = vld [vmem:[#allocation3 + $0x80] sm:$0xff] }
 0x397   : > { %1940 = vst.msk [vmem:[#allocation3 + $0x90] sm:$0xff] %vm1921_vm1, %v1875_v32  ;;  %3562 = vmatprep.mubr.f32.mxu1 %v1970_v49  ;;  %v1599_v49 = vld [vmem:[%s5053_s22 + $0xf0] sm:$0xff]  ;;  %s3329_s22 = sshll.u32 %s4174_s17, 13  ;;  %s4075_s17 = smov [#allocation10]  }
 0x398   : > { %v1772_v40 = vpop.permute.xlu1 %1771  ;;  %3563 = vmatmul.mubr.f32.gmra.mxu1 %v1971_v2  ;;  %s5672_s20 = scalar_lea.hbm %s5733_s14, %s3329_s22  ;;  %s4002_s3 = sshll.u32 %s4075_s17, 4  ;;  %s4003_s3 = int_to_ptr.vmem [resolvable:$false] %s4002_s3 }
 0x399   : > { %v1846_v25 = vmul.f32 %v1772_v40, %v1590_v50  ;;  %s4004_s18 = scalar_lea.vmem %s4003_s3, 16384  ;;  %p4005_p6 = scmp.lt.s32.totalorder %s5674_s19, %s4003_s3 }
 0x39a   : > { %v1770_v46 = vpop.permute.xlu0 %1769  ;;  %p4006_p5 = scmp.lt.s32.totalorder %s4004_s18, %s3998_s26 }
 0x39b   : > { %v1878_v41 = vadd.f32 %v1846_v25, %v4965_v52  ;;  %v1845_v56 = vmul.f32 %v1770_v46, %v1589_v21  ;;  %v2266_v52 = vld [vmem:[%s5729_s10] sm:$0xff] }
 0x39c   : > { %v1973_v63 = vld [vmem:[#allocation3 + $0x98] sm:$0xff]  ;;  %2341 = vmatpush1.msra.mxu0 %v2266_v52  ;;  %p4007_p10 = por %p4006_p5, %p4005_p6 }
 0x39d   : > { %1943 = vst.msk [vmem:[#allocation3 + $0xa8] sm:$0xff] %vm1921_vm1, %v1878_v41  ;;  %v1877_v45 = vadd.f32 %v1845_v56, %v4971_v55  ;;  %2670 = vmatprep.subr.mxu0 %v5223_v0 }
 0x39e   : > { %v1972_v58 = vld [vmem:[#allocation3 + $0x90] sm:$0xff]  ;;  %p4008_p4 = pnand %p4007_p10, %p4001_p3 }
 0x39f   : > { %1942 = vst.msk [vmem:[#allocation3 + $0xa0] sm:$0xff] %vm1921_vm1, %v1877_v45  ;;  %3565 = vmatprep.mubr.f32.mxu1 %v1972_v58 }
 0x3a0   : > { %v1776_v62 = vpop.permute.xlu1 %1775  ;;  %3566 = vmatmul.mubr.f32.gmra.mxu1 %v1973_v63 }
 0x3a1   : > { %v1848_v55 = vmul.f32 %v1776_v62, %v1592_v60 }
 0x3a2   : > { %v1774_v51 = vpop.permute.xlu0 %1773 }
 0x3a3   : > { %v1880_v54 = vadd.f32 %v1848_v55, %v4979_v4  ;;  %v1847_v12 = vmul.f32 %v1774_v51, %v1591_v5  ;;  %v2644_v5 = vld [vmem:[%s5731_s12 + $0x68] sm:$0xff] }
 0x3a4   : > { %v1975_v24 = vld [vmem:[#allocation3 + $0xa8] sm:$0xff] }
 0x3a5   : > { %1945 = vst.msk [vmem:[#allocation3 + $0xb8] sm:$0xff] %vm1921_vm1, %v1880_v54  ;;  %v1879_v17 = vadd.f32 %v1847_v12, %v4985_v6  ;;  %v2643_v54 = vld [vmem:[%s5731_s12 + $0x60] sm:$0xff] }
 0x3a6   : > { %v1974_v20 = vld [vmem:[#allocation3 + $0xa0] sm:$0xff] }
 0x3a7   : > { %1944 = vst.msk [vmem:[#allocation3 + $0xb0] sm:$0xff] %vm1921_vm1, %v1879_v17  ;;  %3568 = vmatprep.mubr.f32.mxu1 %v1974_v20 }
 0x3a8   : > { %v1780_v31 = vpop.permute.xlu1 %1779  ;;  %3569 = vmatmul.mubr.f32.gmra.mxu1 %v1975_v24 }
 0x3a9   : > { %v1850_v61 = vmul.f32 %v1780_v31, %v1594_v22  ;;  %v2642_v22 = vld [vmem:[%s5731_s12 + $0x58] sm:$0xff]  ;;  %v2641_v31 = vld [vmem:[%s5731_s12 + $0x50] sm:$0xff] }
 0x3aa   : > { %v1778_v26 = vpop.permute.xlu0 %1777 }
 0x3ab   : > { %v1882_v4 = vadd.f32 %v1850_v61, %v4993_v23  ;;  %v1849_v3 = vmul.f32 %v1778_v26, %v1593_v15  ;;  %v2640_v26 = vld [vmem:[%s5731_s12 + $0x48] sm:$0xff] }
 0x3ac   : > { %v1977_v30 = vld [vmem:[#allocation3 + $0xb8] sm:$0xff] }
 0x3ad   : > { %1947 = vst.msk [vmem:[#allocation3 + $0xc8] sm:$0xff] %vm1921_vm1, %v1882_v4  ;;  %v1881_v6 = vadd.f32 %v1849_v3, %v4999_v27  ;;  %v2639_v4 = vld [vmem:[%s5731_s12 + $0x40] sm:$0xff] }
 0x3ae   : > { %v1976_v29 = vld [vmem:[#allocation3 + $0xb0] sm:$0xff] }
 0x3af   : > { %1946 = vst.msk [vmem:[#allocation3 + $0xc0] sm:$0xff] %vm1921_vm1, %v1881_v6  ;;  %3571 = vmatprep.mubr.f32.mxu1 %v1976_v29 }
 0x3b0   : > { %v1784_v59 = vpop.permute.xlu1 %1783  ;;  %3572 = vmatmul.mubr.f32.gmra.mxu1 %v1977_v30 }
 0x3b1   : > { %v1852_v34 = vmul.f32 %v1784_v59, %v1596_v35  ;;  %v2638_v35 = vld [vmem:[%s5731_s12 + $0x38] sm:$0xff]  ;;  %v2637_v59 = vld [vmem:[%s5731_s12 + $0x30] sm:$0xff] }
 0x3b2   : > { %v1782_v36 = vpop.permute.xlu0 %1781 }
 0x3b3   : > { %v1884_v23 = vadd.f32 %v1852_v34, %v5007_v38  ;;  %v1851_v16 = vmul.f32 %v1782_v36, %v1595_v33  ;;  %v2636_v36 = vld [vmem:[%s5731_s12 + $0x28] sm:$0xff] }
 0x3b4   : > { %v1979_v39 = vld [vmem:[#allocation3 + $0xc8] sm:$0xff] }
 0x3b5   : > { %1949 = vst.msk [vmem:[#allocation3 + $0xd8] sm:$0xff] %vm1921_vm1, %v1884_v23  ;;  %v1883_v27 = vadd.f32 %v1851_v16, %v5013_v44  ;;  %v2635_v23 = vld [vmem:[%s5731_s12 + $0x20] sm:$0xff] }
 0x3b6   : > { %v1978_v37 = vld [vmem:[#allocation3 + $0xc0] sm:$0xff] }
 0x3b7   : > { %1948 = vst.msk [vmem:[#allocation3 + $0xd0] sm:$0xff] %vm1921_vm1, %v1883_v27  ;;  %3574 = vmatprep.mubr.f32.mxu1 %v1978_v37 }
 0x3b8   : > { %v1788_v43 = vpop.permute.xlu1 %1787  ;;  %3575 = vmatmul.mubr.f32.gmra.mxu1 %v1979_v39 }
 0x3b9   : > { %v1854_v10 = vmul.f32 %v1788_v43, %v1598_v19  ;;  %v2634_v19 = vld [vmem:[%s5731_s12 + $0x18] sm:$0xff]  ;;  %v2633_v43 = vld [vmem:[%s5731_s12 + $0x10] sm:$0xff] }
 0x3ba   : > { %v1786_v47 = vpop.permute.xlu0 %1785 }
 0x3bb   : > { %v1886_v38 = vadd.f32 %v1854_v10, %v5021_v53  ;;  %v1853_v14 = vmul.f32 %v1786_v47, %v1597_v13  ;;  %v2632_v47 = vld [vmem:[%s5731_s12 + $0x8] sm:$0xff] }
 0x3bc   : > { %v1981_v42 = vld [vmem:[#allocation3 + $0xd8] sm:$0xff] }
 0x3bd   : > { %1951 = vst.msk [vmem:[#allocation3 + $0xe8] sm:$0xff] %vm1921_vm1, %v1886_v38  ;;  %v1885_v44 = vadd.f32 %v1853_v14, %v5027_v57  ;;  %v5346_v38 = vld [vmem:[%s5731_s12] sm:$0xff] }
 0x3be   : > { %v1980_v48 = vld [vmem:[#allocation3 + $0xd0] sm:$0xff] }
 0x3bf   : > { %1950 = vst.msk [vmem:[#allocation3 + $0xe0] sm:$0xff] %vm1921_vm1, %v1885_v44  ;;  %3577 = vmatprep.mubr.f32.mxu1 %v1980_v48 }
 0x3c0   : > { %v1792_v32 = vpop.permute.xlu1 %1791  ;;  %3578 = vmatmul.mubr.f32.gmra.mxu1 %v1981_v42 }
 0x3c1   : > { %v1856_v50 = vmul.f32 %v1792_v32, %v1600_v28  ;;  %v5354_v28 = vld [vmem:[%s5731_s12 + $0xf8] sm:$0xff]  ;;  %v5362_v32 = vld [vmem:[%s5731_s12 + $0xf0] sm:$0xff] }
 0x3c2   : > { %v1790_v2 = vpop.permute.xlu0 %1789 }
 0x3c3   : > { %v1888_v40 = vadd.f32 %v1856_v50, %v5035_v7  ;;  %v1855_v21 = vmul.f32 %v1790_v2, %v1599_v49  ;;  %v5257_v7 = vld [vmem:[%s5728_s9] ss:$0 sm:$0xff]  ;;  %v5371_v2 = vld [vmem:[%s5731_s12 + $0xe8] sm:$0xff] }
 0x3c4   : > { %v1983_v57 = vld [vmem:[#allocation3 + $0xe8] sm:$0xff] }
 0x3c5   : > { %1953 = vst.msk [vmem:[#allocation3 + $0xf8] sm:$0xff] %vm1921_vm1, %v1888_v40  ;;  %v1887_v53 = vadd.f32 %v1855_v21, %v5041_v18  ;;  %v2646_v18 = vld [vmem:[%s5731_s12 + $0x78] sm:$0xff]  ;;  %v5379_v40 = vld [vmem:[%s5731_s12 + $0xe0] sm:$0xff] }
 0x3c6   : > { %v1982_v25 = vld [vmem:[#allocation3 + $0xe0] sm:$0xff]  ;;  %3618 = vmatpush1.msra.mxu1 %v2646_v18 }
 0x3c7   : > { %1952 = vst.msk [vmem:[#allocation3 + $0xf0] sm:$0xff] %vm1921_vm1, %v1887_v53  ;;  %3580 = vmatprep.mubr.f32.mxu1 %v1982_v25  ;;  %3587 = vmatprep.subr.mxu1 %v5223_v0 }
 0x3c8   : > { %3581 = vmatmul.mubr.f32.gmra.mxu1 %v1983_v57  ;;  %v5390_v57 = vld [vmem:[%s5731_s12 + $0xd8] sm:$0xff] }
 0x3c9   : > { %3619 = vmatpush1.msra.mxu1 %v2645_v1 }
 0x3ca   : > { %3588 = vmatprep.subr.mxu1 %v5223_v0 }
 0x3cb   : > { %3620 = vmatpush1.msra.mxu1 %v2644_v5 }
 0x3cc   : > { %v1985_v41 = vld [vmem:[#allocation3 + $0xf8] sm:$0xff]  ;;  %3589 = vmatprep.subr.mxu1 %v5223_v0 }
 0x3cd   : > { %3621 = vmatpush1.msra.mxu1 %v2643_v54 }
 0x3ce   : > { %v1984_v46 = vld [vmem:[#allocation3 + $0xf0] sm:$0xff]  ;;  %3590 = vmatprep.subr.mxu1 %v5223_v0 }
 0x3cf   : > { %3583 = vmatprep.mubr.f32.mxu1 %v1984_v46  ;;  %3622 = vmatpush1.msra.mxu1 %v2642_v22 }
 0x3d0   : > { %3584 = vmatmul.mubr.f32.gmra.mxu1 %v1985_v41  ;;  %3591 = vmatprep.subr.mxu1 %v5223_v0 }
 0x3d1   : > { %3623 = vmatpush1.msra.mxu1 %v2641_v31 }
 0x3d2   : > { %3592 = vmatprep.subr.mxu1 %v5223_v0 }
 0x3d3   : > { %3624 = vmatpush1.msra.mxu1 %v2640_v26 }
 0x3d4   : > { %3593 = vmatprep.subr.mxu1 %v5223_v0 }
 0x3d5   : > { %3625 = vmatpush1.msra.mxu1 %v2639_v4 }
 0x3d6   : > { %3594 = vmatprep.subr.mxu1 %v5223_v0 }
 0x3d7   : > { %3626 = vmatpush1.msra.mxu1 %v2638_v35 }
 0x3d8   : > { %3595 = vmatprep.subr.mxu1 %v5223_v0 }
 0x3d9   : > { %3627 = vmatpush1.msra.mxu1 %v2637_v59 }
 0x3da   : > { %3596 = vmatprep.subr.mxu1 %v5223_v0 }
 0x3db   : > { %3628 = vmatpush1.msra.mxu1 %v2636_v36 }
 0x3dc   : > { %3597 = vmatprep.subr.mxu1 %v5223_v0 }
 0x3dd   : > { %3629 = vmatpush1.msra.mxu1 %v2635_v23 }
 0x3de   : > { %3598 = vmatprep.subr.mxu1 %v5223_v0 }
 0x3df   : > { %3630 = vmatpush1.msra.mxu1 %v2634_v19 }
 0x3e0   : > { %3599 = vmatprep.subr.mxu1 %v5223_v0 }
 0x3e1   : > { %3631 = vmatpush1.msra.mxu1 %v2633_v43 }
 0x3e2   : > { %3600 = vmatprep.subr.mxu1 %v5223_v0 }
 0x3e3   : > { %3632 = vmatpush1.msra.mxu1 %v2632_v47 }
 0x3e4   : > { %3601 = vmatprep.subr.mxu1 %v5223_v0 }
 0x3e5   : > { %3633 = vmatpush1.msra.mxu1 %v5346_v38 }
 0x3e6   : > { %3602 = vmatprep.subr.mxu1 %v5223_v0 }
 0x3e7   : > { %3634 = vmatpush2.msra.mxu1 %v5354_v28 }
 0x3e8   : > { %3603 = vmatprep.subr.mxu1 %v5223_v0 }
 0x3e9   : > { %3635 = vmatpush2.msra.mxu1 %v5362_v32 }
 0x3ea   : > { %3604 = vmatprep.subr.mxu1 %v5223_v0 }
 0x3eb   : > { %3636 = vmatpush2.msra.mxu1 %v5371_v2 }
 0x3ec   : > { %3605 = vmatprep.subr.mxu1 %v5223_v0 }
 0x3ed   : > { %3637 = vmatpush2.msra.mxu1 %v5379_v40 }
 0x3ee   : > { %3606 = vmatprep.subr.mxu1 %v5223_v0 }
 0x3ef   : > { %3638 = vmatpush2.msra.mxu1 %v5390_v57 }
 0x3f0   : > { %3607 = vmatprep.subr.mxu1 %v5223_v0 }
 0x41b   : > { %v3540_v56 = vpop.f32.mrf.mxu1 }
 0x41c   : > { %v2081_v60 = vadd.f32 %v3540_v56, %v5257_v7 }
 0x41d   : > { %v2075_v45 = vpop.f32.mrf.mxu1 }
 0x41e   : > { %v2076_v58 = vadd.f32 %v5257_v7, %v2075_v45  ;;  %v2235_v52 = vmax.f32 %v2081_v60, 0.0  ;;  %v5400_v45 = vld [vmem:[%s5731_s12 + $0xd0] sm:$0xff] }
 0x41f   : > { %3639 = vmatpush2.msra.mxu1 %v5400_v45 }
 0x420   : > { %v2234_v63 = vmax.f32 %v2076_v58, 0.0  ;;  %v5407_v58 = vld [vmem:[%s5731_s12 + $0xc8] sm:$0xff]  ;;  %3608 = vmatprep.subr.mxu1 %v5223_v0 }
 0x421   : > { %3640 = vmatpush2.msra.mxu1 %v5407_v58 }
 0x422   : > { %2375 = vmatmul.mubr.f32.vlgmr.msra.gmra.mxu0 %v2234_v63  ;;  %3609 = vmatprep.subr.mxu1 %v5223_v0 }
 0x423   : > { %v3543_v62 = vpop.f32.mrf.mxu1  ;;  %2380 = vmatprep.mubr.f32.mxu0 %v5223_v0  ;;  %2671 = vmatpush1.msra.mxu0 %v2646_v18 }
 0x424   : > { %2672 = vmatprep.subr.mxu0 %v5223_v0  ;;  %v2091_v12 = vadd.f32 %v3543_v62, %v5257_v7 }
 0x425   : > { %v2085_v55 = vpop.f32.mrf.mxu1  ;;  %2673 = vmatpush1.msra.mxu0 %v2645_v1  ;;  %v5418_v1 = vld [vmem:[%s5731_s12 + $0xc0] sm:$0xff] }
 0x426   : > { %v2086_v51 = vadd.f32 %v5257_v7, %v2085_v55  ;;  %2381 = vmatmul.mubr.f32.gmra.mxu0 %v2235_v52  ;;  %2674 = vmatprep.subr.mxu0 %v5223_v0  ;;  %v2237_v15 = vmax.f32 %v2091_v12, 0.0  ;;  %v5429_v55 = vld [vmem:[%s5731_s12 + $0xb8] sm:$0xff] }
 0x427   : > { %2386 = vmatprep.mubr.f32.mxu0 %v5223_v0  ;;  %2675 = vmatpush1.msra.mxu0 %v2644_v5 }
 0x428   : > { %v2236_v17 = vmax.f32 %v2086_v51, 0.0  ;;  %v3546_v20 = vpop.f32.mrf.mxu1  ;;  %2676 = vmatprep.subr.mxu0 %v5223_v0  ;;  %v5437_v51 = vld [vmem:[%s5731_s12 + $0xb0] sm:$0xff]  ;;  %3641 = vmatpush2.msra.mxu1 %v5418_v1 }
 0x429   : > { %2677 = vmatpush1.msra.mxu0 %v2643_v54  ;;  %v2101_v3 = vadd.f32 %v3546_v20, %v5257_v7  ;;  %v2652_v20 = vld [vmem:[%s5731_s12 + $0xa8] sm:$0xff]  ;;  %3610 = vmatprep.subr.mxu1 %v5223_v0 }
 0x42a   : > { %v2095_v24 = vpop.f32.mrf.mxu1  ;;  %2387 = vmatmul.mubr.f32.gmra.mxu0 %v2236_v17  ;;  %2678 = vmatprep.subr.mxu0 %v5223_v0 }
 0x42b   : > { %2392 = vmatprep.mubr.f32.mxu0 %v5223_v0  ;;  %2679 = vmatpush1.msra.mxu0 %v2642_v22  ;;  %v2096_v61 = vadd.f32 %v5257_v7, %v2095_v24  ;;  %v2239_v33 = vmax.f32 %v2101_v3, 0.0 }
 0x42c   : > { %2680 = vmatprep.subr.mxu0 %v5223_v0  ;;  %3642 = vmatpush2.msra.mxu1 %v5429_v55 }
 0x42d   : > { %2681 = vmatpush1.msra.mxu0 %v2641_v31  ;;  %v2238_v6 = vmax.f32 %v2096_v61, 0.0  ;;  %3611 = vmatprep.subr.mxu1 %v5223_v0 }
 0x42e   : > { %2393 = vmatmul.mubr.f32.gmra.mxu0 %v2237_v15  ;;  %2682 = vmatprep.subr.mxu0 %v5223_v0  ;;  %v2651_v15 = vld [vmem:[%s5731_s12 + $0xa0] sm:$0xff] }
 0x42f   : > { %2398 = vmatprep.mubr.f32.mxu0 %v5223_v0  ;;  %2683 = vmatpush1.msra.mxu0 %v2640_v26 }
 0x430   : > { %v3549_v29 = vpop.f32.mrf.mxu1  ;;  %2684 = vmatprep.subr.mxu0 %v5223_v0  ;;  %3643 = vmatpush2.msra.mxu1 %v5437_v51 }
 0x431   : > { %2685 = vmatpush1.msra.mxu0 %v2639_v4  ;;  %v2111_v16 = vadd.f32 %v3549_v29, %v5257_v7  ;;  %3612 = vmatprep.subr.mxu1 %v5223_v0 }
 0x432   : > { %v2105_v30 = vpop.f32.mrf.mxu1  ;;  %2399 = vmatmul.mubr.f32.gmra.mxu0 %v2238_v6  ;;  %2686 = vmatprep.subr.mxu0 %v5223_v0  ;;  %v2650_v6 = vld [vmem:[%s5731_s12 + $0x98] sm:$0xff] }
 0x433   : > { %2404 = vmatprep.mubr.f32.mxu0 %v5223_v0  ;;  %2687 = vmatpush1.msra.mxu0 %v2638_v35  ;;  %v2106_v34 = vadd.f32 %v5257_v7, %v2105_v30  ;;  %v2241_v13 = vmax.f32 %v2111_v16, 0.0  ;;  %v2649_v30 = vld [vmem:[%s5731_s12 + $0x90] sm:$0xff] }
 0x434   : > { %2688 = vmatprep.subr.mxu0 %v5223_v0  ;;  %3644 = vmatpush2.msra.mxu1 %v2652_v20 }
 0x435   : > { %2689 = vmatpush1.msra.mxu0 %v2637_v59  ;;  %v2240_v27 = vmax.f32 %v2106_v34, 0.0  ;;  %v2648_v59 = vld [vmem:[%s5731_s12 + $0x88] sm:$0xff]  ;;  %3613 = vmatprep.subr.mxu1 %v5223_v0 }
 0x436   : > { %2405 = vmatmul.mubr.f32.gmra.mxu0 %v2239_v33  ;;  %2690 = vmatprep.subr.mxu0 %v5223_v0 }
 0x437   : > { %2410 = vmatprep.mubr.f32.mxu0 %v5223_v0  ;;  %2691 = vmatpush1.msra.mxu0 %v2636_v36 }
 0x438   : > { %v3552_v37 = vpop.f32.mrf.mxu1  ;;  %2692 = vmatprep.subr.mxu0 %v5223_v0  ;;  %3645 = vmatpush2.msra.mxu1 %v2651_v15 }
 0x439   : > { %2693 = vmatpush1.msra.mxu0 %v2635_v23  ;;  %v2121_v14 = vadd.f32 %v3552_v37, %v5257_v7  ;;  %v2647_v23 = vld [vmem:[%s5731_s12 + $0x80] sm:$0xff]  ;;  %3614 = vmatprep.subr.mxu1 %v5223_v0 }
 0x43a   : > { %v2115_v39 = vpop.f32.mrf.mxu1  ;;  %2411 = vmatmul.mubr.f32.gmra.mxu0 %v2240_v27  ;;  %2694 = vmatprep.subr.mxu0 %v5223_v0 }
 0x43b   : > { %2416 = vmatprep.mubr.f32.mxu0 %v5223_v0  ;;  %2695 = vmatpush1.msra.mxu0 %v2634_v19  ;;  %v2116_v10 = vadd.f32 %v5257_v7, %v2115_v39  ;;  %v2243_v49 = vmax.f32 %v2121_v14, 0.0 }
 0x43c   : > { %2696 = vmatprep.subr.mxu0 %v5223_v0  ;;  %3646 = vmatpush2.msra.mxu1 %v2650_v6 }
 0x43d   : > { %2697 = vmatpush1.msra.mxu0 %v2633_v43  ;;  %v2242_v44 = vmax.f32 %v2116_v10, 0.0  ;;  %3615 = vmatprep.subr.mxu1 %v5223_v0 }
 0x43e   : > { %2417 = vmatmul.mubr.f32.gmra.mxu0 %v2241_v13  ;;  %2698 = vmatprep.subr.mxu0 %v5223_v0 }
 0x43f   : > { %2422 = vmatprep.mubr.f32.mxu0 %v5223_v0  ;;  %2699 = vmatpush1.msra.mxu0 %v2632_v47 }
 0x440   : > { %v3555_v48 = vpop.f32.mrf.mxu1  ;;  %2700 = vmatprep.subr.mxu0 %v5223_v0  ;;  %3647 = vmatpush2.msra.mxu1 %v2649_v30 }
 0x441   : > { %2701 = vmatpush1.msra.mxu0 %v5346_v38  ;;  %v2131_v21 = vadd.f32 %v3555_v48, %v5257_v7  ;;  %3616 = vmatprep.subr.mxu1 %v5223_v0 }
 0x442   : > { %v2125_v42 = vpop.f32.mrf.mxu1  ;;  %2423 = vmatmul.mubr.f32.gmra.mxu0 %v2242_v44  ;;  %2702 = vmatprep.subr.mxu0 %v5223_v0 }
 0x443   : > { %2428 = vmatprep.mubr.f32.mxu0 %v5223_v0  ;;  %2703 = vmatpush2.msra.mxu0 %v5354_v28  ;;  %v2126_v50 = vadd.f32 %v5257_v7, %v2125_v42  ;;  %v2245_v41 = vmax.f32 %v2131_v21, 0.0 }
 0x444   : > { %2704 = vmatprep.subr.mxu0 %v5223_v0  ;;  %3648 = vmatpush2.msra.mxu1 %v2648_v59 }
 0x445   : > { %2705 = vmatpush2.msra.mxu0 %v5362_v32  ;;  %v2244_v53 = vmax.f32 %v2126_v50, 0.0  ;;  %3617 = vmatprep.subr.mxu1 %v5223_v0 }
 0x446   : > { %2429 = vmatmul.mubr.f32.gmra.mxu0 %v2243_v49  ;;  %2706 = vmatprep.subr.mxu0 %v5223_v0 }
 0x447   : > { %2434 = vmatprep.mubr.f32.mxu0 %v5223_v0  ;;  %2707 = vmatpush2.msra.mxu0 %v5371_v2 }
 0x448   : > { %v3558_v25 = vpop.f32.mrf.mxu1  ;;  %2708 = vmatprep.subr.mxu0 %v5223_v0  ;;  %3649 = vmatpush2.msra.mxu1 %v2647_v23 }
 0x449   : > { %2709 = vmatpush2.msra.mxu0 %v5379_v40  ;;  %v2141_v18 = vadd.f32 %v3558_v25, %v5257_v7 }
 0x44a   : > { %v2135_v46 = vpop.f32.mrf.mxu1  ;;  %2435 = vmatmul.mubr.f32.gmra.mxu0 %v2244_v53  ;;  %2710 = vmatprep.subr.mxu0 %v5223_v0 }
 0x44b   : > { %2440 = vmatprep.mubr.f32.mxu0 %v5223_v0  ;;  %v2136_v56 = vadd.f32 %v5257_v7, %v2135_v46  ;;  %2711 = vmatpush2.msra.mxu0 %v5390_v57  ;;  %v2247_v5 = vmax.f32 %v2141_v18, 0.0 }
 0x44c   : > { %2712 = vmatprep.subr.mxu0 %v5223_v0 }
 0x44d   : > { %2713 = vmatpush2.msra.mxu0 %v5400_v45  ;;  %v2246_v60 = vmax.f32 %v2136_v56, 0.0 }
 0x44e   : > { %2441 = vmatmul.mubr.f32.gmra.mxu0 %v2245_v41  ;;  %2714 = vmatprep.subr.mxu0 %v5223_v0 }
 0x44f   : > { %2446 = vmatprep.mubr.f32.mxu0 %v5223_v0  ;;  %2715 = vmatpush2.msra.mxu0 %v5407_v58 }
 0x450   : > { %v3561_v63 = vpop.f32.mrf.mxu1  ;;  %2716 = vmatprep.subr.mxu0 %v5223_v0 }
 0x451   : > { %2717 = vmatpush2.msra.mxu0 %v5418_v1  ;;  %v2151_v54 = vadd.f32 %v3561_v63, %v5257_v7 }
 0x452   : > { %v2145_v62 = vpop.f32.mrf.mxu1  ;;  %2447 = vmatmul.mubr.f32.gmra.mxu0 %v2246_v60  ;;  %2718 = vmatprep.subr.mxu0 %v5223_v0 }
 0x453   : > { %2452 = vmatprep.mubr.f32.mxu0 %v5223_v0  ;;  %v2146_v52 = vadd.f32 %v5257_v7, %v2145_v62  ;;  %2719 = vmatpush2.msra.mxu0 %v5429_v55  ;;  %v2249_v24 = vmax.f32 %v2151_v54, 0.0  ;;  %v2298_v55 = vld [vmem:[%s5730_s11] sm:$0x3] }
 0x454   : > { %2720 = vmatprep.subr.mxu0 %v5223_v0  ;;  %v5533_v54 = vrot.slane %v2298_v55, %v700_v11 }
 0x455   : > { %v2248_v12 = vmax.f32 %v2146_v52, 0.0  ;;  %2721 = vmatpush2.msra.mxu0 %v5437_v51  ;;  %v5529_v51 = vrot.slane %v2298_v55, %v696_v9 }
 0x456   : > { %2453 = vmatmul.mubr.f32.gmra.mxu0 %v2247_v5  ;;  %2722 = vmatprep.subr.mxu0 %v5223_v0 }
 0x457   : > { %2458 = vmatprep.mubr.f32.mxu0 %v5223_v0  ;;  %2723 = vmatpush2.msra.mxu0 %v2652_v20 }
 0x458   : > { %v3564_v17 = vpop.f32.mrf.mxu1  ;;  %2724 = vmatprep.subr.mxu0 %v5223_v0 }
 0x459   : > { %2725 = vmatpush2.msra.mxu0 %v2651_v15  ;;  %v2161_v61 = vadd.f32 %v3564_v17, %v5257_v7 }
 0x45a   : > { %v2155_v22 = vpop.f32.mrf.mxu1  ;;  %2459 = vmatmul.mubr.f32.gmra.mxu0 %v2248_v12  ;;  %2726 = vmatprep.subr.mxu0 %v5223_v0 }
 0x45b   : > { %2464 = vmatprep.mubr.f32.mxu0 %v5223_v0  ;;  %v2156_v31 = vadd.f32 %v5257_v7, %v2155_v22  ;;  %2727 = vmatpush2.msra.mxu0 %v2650_v6  ;;  %v2251_v29 = vmax.f32 %v2161_v61, 0.0 }
 0x45c   : > { %2728 = vmatprep.subr.mxu0 %v5223_v0 }
 0x45d   : > { %v2250_v26 = vmax.f32 %v2156_v31, 0.0  ;;  %2729 = vmatpush2.msra.mxu0 %v2649_v30 }
 0x45e   : > { %2465 = vmatmul.mubr.f32.gmra.mxu0 %v2249_v24  ;;  %2730 = vmatprep.subr.mxu0 %v5223_v0 }
 0x45f   : > { %2470 = vmatprep.mubr.f32.mxu0 %v5223_v0  ;;  %2731 = vmatpush2.msra.mxu0 %v2648_v59 }
 0x460   : > { %v3567_v4 = vpop.f32.mrf.mxu1  ;;  %2732 = vmatprep.subr.mxu0 %v5223_v0 }
 0x461   : > { %v2171_v33 = vadd.f32 %v3567_v4, %v5257_v7  ;;  %2733 = vmatpush2.msra.mxu0 %v2647_v23 }
 0x462   : > { %v2165_v3 = vpop.f32.mrf.mxu1  ;;  %2471 = vmatmul.mubr.f32.gmra.mxu0 %v2250_v26 }
 0x463   : > { %2476 = vmatprep.mubr.f32.mxu0 %v5223_v0  ;;  %v2166_v35 = vadd.f32 %v5257_v7, %v2165_v3  ;;  %v2253_v27 = vmax.f32 %v2171_v33, 0.0 }
 0x465   : > { %v2252_v34 = vmax.f32 %v2166_v35, 0.0 }
 0x466   : > { %2477 = vmatmul.mubr.f32.gmra.mxu0 %v2251_v29 }
 0x467   : > { %2482 = vmatprep.mubr.f32.mxu0 %v5223_v0 }
 0x468   : > { %v3570_v36 = vpop.f32.mrf.mxu1 }
 0x469   : > { %v2181_v19 = vadd.f32 %v3570_v36, %v5257_v7 }
 0x46a   : > { %v2175_v16 = vpop.f32.mrf.mxu1  ;;  %2483 = vmatmul.mubr.f32.gmra.mxu0 %v2252_v34 }
 0x46b   : > { %2488 = vmatprep.mubr.f32.mxu0 %v5223_v0  ;;  %v2176_v37 = vadd.f32 %v5257_v7, %v2175_v16  ;;  %v2255_v10 = vmax.f32 %v2181_v19, 0.0 }
 0x46d   : > { %v2254_v39 = vmax.f32 %v2176_v37, 0.0 }
 0x46e   : > { %2489 = vmatmul.mubr.f32.gmra.mxu0 %v2253_v27 }
 0x46f   : > { %2494 = vmatprep.mubr.f32.mxu0 %v5223_v0 }
 0x470   : > { %v3573_v43 = vpop.f32.mrf.mxu1 }
 0x471   : > { %v2191_v38 = vadd.f32 %v3573_v43, %v5257_v7 }
 0x472   : > { %v2185_v13 = vpop.f32.mrf.mxu1  ;;  %2495 = vmatmul.mubr.f32.gmra.mxu0 %v2254_v39 }
 0x473   : > { %2500 = vmatprep.mubr.f32.mxu0 %v5223_v0  ;;  %v2186_v47 = vadd.f32 %v5257_v7, %v2185_v13  ;;  %v2257_v28 = vmax.f32 %v2191_v38, 0.0 }
 0x475   : > { %v2256_v14 = vmax.f32 %v2186_v47, 0.0 }
 0x476   : > { %2501 = vmatmul.mubr.f32.gmra.mxu0 %v2255_v10 }
 0x477   : > { %2506 = vmatprep.mubr.f32.mxu0 %v5223_v0 }
 0x478   : > { %v3576_v44 = vpop.f32.mrf.mxu1 }
 0x479   : > { %v2201_v32 = vadd.f32 %v3576_v44, %v5257_v7 }
 0x47a   : > { %v2195_v48 = vpop.f32.mrf.mxu1  ;;  %2507 = vmatmul.mubr.f32.gmra.mxu0 %v2256_v14 }
 0x47b   : > { %2512 = vmatprep.mubr.f32.mxu0 %v5223_v0  ;;  %v2196_v42 = vadd.f32 %v5257_v7, %v2195_v48  ;;  %v2259_v40 = vmax.f32 %v2201_v32, 0.0 }
 0x47d   : > { %v2258_v49 = vmax.f32 %v2196_v42, 0.0 }
 0x47e   : > { %2513 = vmatmul.mubr.f32.gmra.mxu0 %v2257_v28 }
 0x47f   : > { %2518 = vmatprep.mubr.f32.mxu0 %v5223_v0 }
 0x480   : > { %v3579_v50 = vpop.f32.mrf.mxu1 }
 0x481   : > { %v2211_v53 = vadd.f32 %v3579_v50, %v5257_v7 }
 0x482   : > { %v2205_v2 = vpop.f32.mrf.mxu1  ;;  %2519 = vmatmul.mubr.f32.gmra.mxu0 %v2258_v49 }
 0x483   : > { %2524 = vmatprep.mubr.f32.mxu0 %v5223_v0  ;;  %v2206_v21 = vadd.f32 %v5257_v7, %v2205_v2  ;;  %v2261_v41 = vmax.f32 %v2211_v53, 0.0 }
 0x485   : > { %v2260_v25 = vmax.f32 %v2206_v21, 0.0 }
 0x486   : > { %2525 = vmatmul.mubr.f32.gmra.mxu0 %v2259_v40 }
 0x487   : > { %2530 = vmatprep.mubr.f32.mxu0 %v5223_v0 }
 0x488   : > { %v3582_v57 = vpop.f32.mrf.mxu1 }
 0x489   : > { %v2221_v45 = vadd.f32 %v3582_v57, %v5257_v7 }
 0x48a   : > { %v2215_v46 = vpop.f32.mrf.mxu1  ;;  %2531 = vmatmul.mubr.f32.gmra.mxu0 %v2260_v25 }
 0x48b   : > { %2536 = vmatprep.mubr.f32.mxu0 %v5223_v0  ;;  %v2216_v56 = vadd.f32 %v5257_v7, %v2215_v46  ;;  %v2263_v63 = vmax.f32 %v2221_v45, 0.0 }
 0x48d   : > { %v2262_v58 = vmax.f32 %v2216_v56, 0.0 }
 0x48e   : > { %2537 = vmatmul.mubr.f32.gmra.mxu0 %v2261_v41 }
 0x48f   : > { %2542 = vmatprep.mubr.f32.mxu0 %v5223_v0 }
 0x490   : > { %v3585_v18 = vpop.f32.mrf.mxu1 }
 0x491   : > { %v2231_v62 = vadd.f32 %v3585_v18, %v5257_v7 }
 0x492   : > { %v2225_v60 = vpop.f32.mrf.mxu1  ;;  %2543 = vmatmul.mubr.f32.gmra.mxu0 %v2262_v58 }
 0x493   : > { %2548 = vmatprep.mubr.f32.mxu0 %v5223_v0  ;;  %v2226_v1 = vadd.f32 %v5257_v7, %v2225_v60  ;;  %v2265_v52 = vmax.f32 %v2231_v62, 0.0 }
 0x495   : > { %v2264_v5 = vmax.f32 %v2226_v1, 0.0 }
 0x496   : > { %2549 = vmatmul.mubr.f32.gmra.mxu0 %v2263_v63 }
 0x497   : > { %2554 = vmatprep.mubr.f32.mxu0 %v5223_v0 }
 0x49a   : > { %2555 = vmatmul.mubr.f32.gmra.mxu0 %v2264_v5 }
 0x49b   : > { %2560 = vmatprep.mubr.f32.mxu0 %v5223_v0 }
 0x49e   : > { %2561 = vmatmul.mubr.f32.gmra.mxu0 %v2265_v52 }
 0x4e2   : > { %v2376_v12 = vpop.f32.mrf.mxu0 }
 0x4e3   : > { %v2377_v7 = vadd.f32 %v2376_v12, %v5529_v51 }
 0x4e4   : > { %v2378_v17 = vpop.f32.mrf.mxu0 }
 0x4e5   : > { %v2379_v0 = vadd.f32 %v2378_v17, %v5533_v54  ;;  %v2567_v24 = vmax.f32 %v2377_v7, 0.0 }
 0x4e6   : > { %v2382_v20 = vpop.f32.mrf.mxu0 }
 0x4e7   : > { %v2568_v22 = vmax.f32 %v2379_v0, 0.0  ;;  %v2383_v31 = vadd.f32 %v2382_v20, %v5529_v51 }
 0x4e8   : > { %v2384_v15 = vpop.f32.mrf.mxu0 }
 0x4e9   : > { %v2385_v61 = vadd.f32 %v2384_v15, %v5533_v54  ;;  %2734 = vmatprep.mubr.f32.mxu0 %v2568_v22  ;;  %v2569_v11 = vmax.f32 %v2383_v31, 0.0 }
 0x4ea   : > { %v2388_v9 = vpop.f32.mrf.mxu0  ;;  %2735 = vmatmul.mubr.f32.vlgmr.msra.gmra.mxu0 %v2567_v24 }
 0x4eb   : > { %v2570_v8 = vmax.f32 %v2385_v61, 0.0  ;;  %v2389_v26 = vadd.f32 %v2388_v9, %v5529_v51 }
 0x4ec   : > { %v2390_v4 = vpop.f32.mrf.mxu0 }
 0x4ed   : > { %v2391_v3 = vadd.f32 %v2390_v4, %v5533_v54  ;;  %2739 = vmatprep.mubr.f32.mxu0 %v2570_v8  ;;  %v2571_v35 = vmax.f32 %v2389_v26, 0.0 }
 0x4ee   : > { %v2394_v6 = vpop.f32.mrf.mxu0  ;;  %2740 = vmatmul.mubr.f32.gmra.mxu0 %v2569_v11 }
 0x4ef   : > { %v2572_v29 = vmax.f32 %v2391_v3, 0.0  ;;  %v2395_v30 = vadd.f32 %v2394_v6, %v5529_v51 }
 0x4f0   : > { %v2396_v59 = vpop.f32.mrf.mxu0 }
 0x4f1   : > { %v2397_v33 = vadd.f32 %v2396_v59, %v5533_v54  ;;  %2744 = vmatprep.mubr.f32.mxu0 %v2572_v29  ;;  %v2573_v23 = vmax.f32 %v2395_v30, 0.0 }
 0x4f2   : > { %v2400_v34 = vpop.f32.mrf.mxu0  ;;  %2745 = vmatmul.mubr.f32.gmra.mxu0 %v2571_v35 }
 0x4f3   : > { %v2574_v36 = vmax.f32 %v2397_v33, 0.0  ;;  %v2401_v16 = vadd.f32 %v2400_v34, %v5529_v51 }
 0x4f4   : > { %v2402_v27 = vpop.f32.mrf.mxu0 }
 0x4f5   : > { %v2403_v37 = vadd.f32 %v2402_v27, %v5533_v54  ;;  %2749 = vmatprep.mubr.f32.mxu0 %v2574_v36  ;;  %v2575_v43 = vmax.f32 %v2401_v16, 0.0 }
 0x4f6   : > { %v2406_v19 = vpop.f32.mrf.mxu0  ;;  %2750 = vmatmul.mubr.f32.gmra.mxu0 %v2573_v23 }
 0x4f7   : > { %v2576_v39 = vmax.f32 %v2403_v37, 0.0  ;;  %v2407_v13 = vadd.f32 %v2406_v19, %v5529_v51 }
 0x4f8   : > { %v2408_v10 = vpop.f32.mrf.mxu0 }
 0x4f9   : > { %v2409_v47 = vadd.f32 %v2408_v10, %v5533_v54  ;;  %2754 = vmatprep.mubr.f32.mxu1 %v2576_v39  ;;  %v2577_v44 = vmax.f32 %v2407_v13, 0.0 }
 0x4fa   : > { %v2412_v38 = vpop.f32.mrf.mxu0  ;;  %2755 = vmatmul.mubr.f32.vlgmr.msra.gmra.mxu1 %v2575_v43 }
 0x4fb   : > { %v2578_v14 = vmax.f32 %v2409_v47, 0.0  ;;  %v2413_v48 = vadd.f32 %v2412_v38, %v5529_v51 }
 0x4fc   : > { %v2414_v28 = vpop.f32.mrf.mxu0 }
 0x4fd   : > { %v2415_v42 = vadd.f32 %v2414_v28, %v5533_v54  ;;  %2759 = vmatprep.mubr.f32.mxu1 %v2578_v14  ;;  %v2579_v50 = vmax.f32 %v2413_v48, 0.0 }
 0x4fe   : > { %v2418_v32 = vpop.f32.mrf.mxu0  ;;  %2760 = vmatmul.mubr.f32.gmra.mxu1 %v2577_v44 }
 0x4ff   : > { %v2580_v49 = vmax.f32 %v2415_v42, 0.0  ;;  %v2419_v2 = vadd.f32 %v2418_v32, %v5529_v51 }
 0x500   : > { %v2420_v40 = vpop.f32.mrf.mxu0 }
 0x501   : > { %v2421_v21 = vadd.f32 %v2420_v40, %v5533_v54  ;;  %2764 = vmatprep.mubr.f32.mxu1 %v2580_v49  ;;  %v2581_v57 = vmax.f32 %v2419_v2, 0.0 }
 0x502   : > { %v2424_v53 = vpop.f32.mrf.mxu0  ;;  %2765 = vmatmul.mubr.f32.gmra.mxu1 %v2579_v50 }
 0x503   : > { %v2582_v25 = vmax.f32 %v2421_v21, 0.0  ;;  %v2425_v46 = vadd.f32 %v2424_v53, %v5529_v51 }
 0x504   : > { %v2426_v41 = vpop.f32.mrf.mxu0 }
 0x505   : > { %v2427_v56 = vadd.f32 %v2426_v41, %v5533_v54  ;;  %2769 = vmatprep.mubr.f32.mxu1 %v2582_v25  ;;  %v2583_v18 = vmax.f32 %v2425_v46, 0.0 }
 0x506   : > { %v2430_v45 = vpop.f32.mrf.mxu0  ;;  %2770 = vmatmul.mubr.f32.gmra.mxu1 %v2581_v57 }
 0x507   : > { %v2584_v58 = vmax.f32 %v2427_v56, 0.0  ;;  %v2431_v60 = vadd.f32 %v2430_v45, %v5529_v51 }
 0x508   : > { %v2432_v63 = vpop.f32.mrf.mxu0 }
 0x509   : > { %v2433_v1 = vadd.f32 %v2432_v63, %v5533_v54  ;;  %2774 = vmatprep.mubr.f32.mxu1 %v2584_v58  ;;  %v2585_v52 = vmax.f32 %v2431_v60, 0.0 }
 0x50a   : > { %v2436_v62 = vpop.f32.mrf.mxu0  ;;  %2775 = vmatmul.mubr.f32.gmra.mxu1 %v2583_v18 }
 0x50b   : > { %v2586_v5 = vmax.f32 %v2433_v1, 0.0  ;;  %v2437_v55 = vadd.f32 %v2436_v62, %v5529_v51 }
 0x50c   : > { %v2438_v12 = vpop.f32.mrf.mxu0 }
 0x50d   : > { %v2439_v7 = vadd.f32 %v2438_v12, %v5533_v54  ;;  %2779 = vmatprep.mubr.f32.mxu1 %v2586_v5  ;;  %v2587_v20 = vmax.f32 %v2437_v55, 0.0 }
 0x50e   : > { %v2442_v17 = vpop.f32.mrf.mxu0  ;;  %2780 = vmatmul.mubr.f32.gmra.mxu1 %v2585_v52 }
 0x50f   : > { %v2588_v0 = vmax.f32 %v2439_v7, 0.0  ;;  %v2443_v22 = vadd.f32 %v2442_v17, %v5529_v51 }
 0x510   : > { %v2444_v24 = vpop.f32.mrf.mxu0 }
 0x511   : > { %v2445_v31 = vadd.f32 %v2444_v24, %v5533_v54  ;;  %2784 = vmatprep.mubr.f32.mxu1 %v2588_v0  ;;  %v2589_v9 = vmax.f32 %v2443_v22, 0.0 }
 0x512   : > { %v2448_v15 = vpop.f32.mrf.mxu0  ;;  %2785 = vmatmul.mubr.f32.gmra.mxu1 %v2587_v20 }
 0x513   : > { %v2590_v61 = vmax.f32 %v2445_v31, 0.0  ;;  %v2449_v8 = vadd.f32 %v2448_v15, %v5529_v51 }
 0x514   : > { %v2450_v11 = vpop.f32.mrf.mxu0 }
 0x515   : > { %v2451_v26 = vadd.f32 %v2450_v11, %v5533_v54  ;;  %2789 = vmatprep.mubr.f32.mxu1 %v2590_v61  ;;  %v2591_v6 = vmax.f32 %v2449_v8, 0.0 }
 0x516   : > { %v2454_v4 = vpop.f32.mrf.mxu0  ;;  %2790 = vmatmul.mubr.f32.gmra.mxu1 %v2589_v9 }
 0x517   : > { %v2592_v3 = vmax.f32 %v2451_v26, 0.0  ;;  %v2455_v29 = vadd.f32 %v2454_v4, %v5529_v51 }
 0x518   : > { %v2456_v35 = vpop.f32.mrf.mxu0 }
 0x519   : > { %v2457_v30 = vadd.f32 %v2456_v35, %v5533_v54  ;;  %2794 = vmatprep.mubr.f32.mxu1 %v2592_v3  ;;  %v2593_v34 = vmax.f32 %v2455_v29, 0.0 }
 0x51a   : > { %v2460_v59 = vpop.f32.mrf.mxu0  ;;  %2795 = vmatmul.mubr.f32.gmra.mxu1 %v2591_v6 }
 0x51b   : > { %v2594_v33 = vmax.f32 %v2457_v30, 0.0  ;;  %v2461_v36 = vadd.f32 %v2460_v59, %v5529_v51 }
 0x51c   : > { %v2462_v23 = vpop.f32.mrf.mxu0 }
 0x51d   : > { %v2463_v16 = vadd.f32 %v2462_v23, %v5533_v54  ;;  %2799 = vmatprep.mubr.f32.mxu1 %v2594_v33  ;;  %v2595_v19 = vmax.f32 %v2461_v36, 0.0 }
 0x51e   : > { %v2466_v27 = vpop.f32.mrf.mxu0  ;;  %2800 = vmatmul.mubr.f32.gmra.mxu1 %v2593_v34 }
 0x51f   : > { %v2596_v37 = vmax.f32 %v2463_v16, 0.0  ;;  %v2467_v39 = vadd.f32 %v2466_v27, %v5529_v51 }
 0x520   : > { %v2468_v43 = vpop.f32.mrf.mxu0 }
 0x521   : > { %v2469_v13 = vadd.f32 %v2468_v43, %v5533_v54  ;;  %2804 = vmatprep.mubr.f32.mxu1 %v2596_v37  ;;  %v2597_v38 = vmax.f32 %v2467_v39, 0.0 }
 0x522   : > { %v2472_v10 = vpop.f32.mrf.mxu0  ;;  %2805 = vmatmul.mubr.f32.gmra.mxu1 %v2595_v19 }
 0x523   : > { %v2598_v47 = vmax.f32 %v2469_v13, 0.0  ;;  %v2473_v14 = vadd.f32 %v2472_v10, %v5529_v51 }
 0x524   : > { %v2474_v44 = vpop.f32.mrf.mxu0 }
 0x525   : > { %v2475_v48 = vadd.f32 %v2474_v44, %v5533_v54  ;;  %2809 = vmatprep.mubr.f32.mxu1 %v2598_v47  ;;  %v2599_v32 = vmax.f32 %v2473_v14, 0.0 }
 0x526   : > { %v2478_v28 = vpop.f32.mrf.mxu0  ;;  %2810 = vmatmul.mubr.f32.gmra.mxu1 %v2597_v38 }
 0x527   : > { %v2600_v42 = vmax.f32 %v2475_v48, 0.0  ;;  %v2479_v49 = vadd.f32 %v2478_v28, %v5529_v51 }
 0x528   : > { %v2480_v50 = vpop.f32.mrf.mxu0 }
 0x529   : > { %v2481_v2 = vadd.f32 %v2480_v50, %v5533_v54  ;;  %2814 = vmatprep.mubr.f32.mxu1 %v2600_v42  ;;  %v2601_v53 = vmax.f32 %v2479_v49, 0.0 }
 0x52a   : > { %v2484_v40 = vpop.f32.mrf.mxu0  ;;  %2815 = vmatmul.mubr.f32.gmra.mxu1 %v2599_v32 }
 0x52b   : > { %v2602_v21 = vmax.f32 %v2481_v2, 0.0  ;;  %v2485_v25 = vadd.f32 %v2484_v40, %v5529_v51 }
 0x52c   : > { %v2486_v57 = vpop.f32.mrf.mxu0 }
 0x52d   : > { %v2487_v46 = vadd.f32 %v2486_v57, %v5533_v54  ;;  %2819 = vmatprep.mubr.f32.mxu1 %v2602_v21  ;;  %v2603_v45 = vmax.f32 %v2485_v25, 0.0 }
 0x52e   : > { %v2490_v41 = vpop.f32.mrf.mxu0  ;;  %2820 = vmatmul.mubr.f32.gmra.mxu1 %v2601_v53 }
 0x52f   : > { %v2604_v56 = vmax.f32 %v2487_v46, 0.0  ;;  %v2491_v58 = vadd.f32 %v2490_v41, %v5529_v51 }
 0x530   : > { %v2492_v18 = vpop.f32.mrf.mxu0 }
 0x531   : > { %v2493_v60 = vadd.f32 %v2492_v18, %v5533_v54  ;;  %2824 = vmatprep.mubr.f32.mxu1 %v2604_v56  ;;  %v2605_v62 = vmax.f32 %v2491_v58, 0.0 }
 0x532   : > { %v2496_v63 = vpop.f32.mrf.mxu0  ;;  %2825 = vmatmul.mubr.f32.gmra.mxu1 %v2603_v45 }
 0x533   : > { %v2606_v1 = vmax.f32 %v2493_v60, 0.0  ;;  %v2497_v5 = vadd.f32 %v2496_v63, %v5529_v51 }
 0x534   : > { %v2498_v52 = vpop.f32.mrf.mxu0 }
 0x535   : > { %v2499_v55 = vadd.f32 %v2498_v52, %v5533_v54  ;;  %2829 = vmatprep.mubr.f32.mxu1 %v2606_v1  ;;  %v2607_v17 = vmax.f32 %v2497_v5, 0.0 }
 0x536   : > { %v2502_v12 = vpop.f32.mrf.mxu0  ;;  %2830 = vmatmul.mubr.f32.gmra.mxu1 %v2605_v62 }
 0x537   : > { %v2608_v7 = vmax.f32 %v2499_v55, 0.0  ;;  %v2503_v0 = vadd.f32 %v2502_v12, %v5529_v51 }
 0x538   : > { %v2504_v20 = vpop.f32.mrf.mxu0 }
 0x539   : > { %v2505_v22 = vadd.f32 %v2504_v20, %v5533_v54  ;;  %2834 = vmatprep.mubr.f32.mxu1 %v2608_v7  ;;  %v2609_v15 = vmax.f32 %v2503_v0, 0.0 }
 0x53a   : > { %v2508_v24 = vpop.f32.mrf.mxu0  ;;  %2835 = vmatmul.mubr.f32.gmra.mxu1 %v2607_v17 }
 0x53b   : > { %v2610_v31 = vmax.f32 %v2505_v22, 0.0  ;;  %v2509_v61 = vadd.f32 %v2508_v24, %v5529_v51  ;;  %v5602_v24 = vld [vmem:[%s5732_s13] ss:$0 sm:$0xff] }
 0x53c   : > { %v2510_v9 = vpop.f32.mrf.mxu0 }
 0x53d   : > { %v2511_v8 = vadd.f32 %v2510_v9, %v5533_v54  ;;  %2839 = vmatprep.mubr.f32.mxu1 %v2610_v31  ;;  %v2611_v4 = vmax.f32 %v2509_v61, 0.0 }
 0x53e   : > { %v2514_v11 = vpop.f32.mrf.mxu0  ;;  %2840 = vmatmul.mubr.f32.gmra.mxu1 %v2609_v15 }
 0x53f   : > { %v2612_v26 = vmax.f32 %v2511_v8, 0.0  ;;  %v2515_v3 = vadd.f32 %v2514_v11, %v5529_v51 }
 0x540   : > { %v2516_v6 = vpop.f32.mrf.mxu0 }
 0x541   : > { %v2517_v29 = vadd.f32 %v2516_v6, %v5533_v54  ;;  %2844 = vmatprep.mubr.f32.mxu1 %v2612_v26  ;;  %v2613_v59 = vmax.f32 %v2515_v3, 0.0 }
 0x542   : > { %v2520_v35 = vpop.f32.mrf.mxu0  ;;  %2845 = vmatmul.mubr.f32.gmra.mxu1 %v2611_v4 }
 0x543   : > { %v2614_v30 = vmax.f32 %v2517_v29, 0.0  ;;  %v2521_v33 = vadd.f32 %v2520_v35, %v5529_v51 }
 0x544   : > { %v2522_v34 = vpop.f32.mrf.mxu0 }
 0x545   : > { %v2523_v36 = vadd.f32 %v2522_v34, %v5533_v54  ;;  %2849 = vmatprep.mubr.f32.mxu1 %v2614_v30  ;;  %v2615_v27 = vmax.f32 %v2521_v33, 0.0 }
 0x546   : > { %v2526_v23 = vpop.f32.mrf.mxu0  ;;  %2850 = vmatmul.mubr.f32.gmra.mxu1 %v2613_v59 }
 0x547   : > { %v2616_v16 = vmax.f32 %v2523_v36, 0.0  ;;  %v2527_v37 = vadd.f32 %v2526_v23, %v5529_v51 }
 0x548   : > { %v2528_v19 = vpop.f32.mrf.mxu0 }
 0x549   : > { %v2529_v39 = vadd.f32 %v2528_v19, %v5533_v54  ;;  %2854 = vmatprep.mubr.f32.mxu1 %v2616_v16  ;;  %v2617_v10 = vmax.f32 %v2527_v37, 0.0 }
 0x54a   : > { %v2532_v43 = vpop.f32.mrf.mxu0  ;;  %2855 = vmatmul.mubr.f32.gmra.mxu1 %v2615_v27 }
 0x54b   : > { %v2618_v13 = vmax.f32 %v2529_v39, 0.0  ;;  %v2533_v47 = vadd.f32 %v2532_v43, %v5529_v51 }
 0x54c   : > { %v2534_v38 = vpop.f32.mrf.mxu0 }
 0x54d   : > { %v2535_v14 = vadd.f32 %v2534_v38, %v5533_v54  ;;  %2859 = vmatprep.mubr.f32.mxu1 %v2618_v13  ;;  %v2619_v28 = vmax.f32 %v2533_v47, 0.0 }
 0x54e   : > { %v2538_v44 = vpop.f32.mrf.mxu0  ;;  %2860 = vmatmul.mubr.f32.gmra.mxu1 %v2617_v10 }
 0x54f   : > { %v2620_v48 = vmax.f32 %v2535_v14, 0.0  ;;  %v2539_v42 = vadd.f32 %v2538_v44, %v5529_v51 }
 0x550   : > { %v2540_v32 = vpop.f32.mrf.mxu0 }
 0x551   : > { %v2541_v49 = vadd.f32 %v2540_v32, %v5533_v54  ;;  %2864 = vmatprep.mubr.f32.mxu1 %v2620_v48  ;;  %v2621_v40 = vmax.f32 %v2539_v42, 0.0 }
 0x552   : > { %v2544_v50 = vpop.f32.mrf.mxu0  ;;  %2865 = vmatmul.mubr.f32.gmra.mxu1 %v2619_v28 }
 0x553   : > { %v2622_v2 = vmax.f32 %v2541_v49, 0.0  ;;  %v2545_v21 = vadd.f32 %v2544_v50, %v5529_v51 }
 0x554   : > { %v2546_v53 = vpop.f32.mrf.mxu0 }
 0x555   : > { %v2547_v25 = vadd.f32 %v2546_v53, %v5533_v54  ;;  %2869 = vmatprep.mubr.f32.mxu1 %v2622_v2  ;;  %v2623_v41 = vmax.f32 %v2545_v21, 0.0 }
 0x556   : > { %v2550_v57 = vpop.f32.mrf.mxu0  ;;  %2870 = vmatmul.mubr.f32.gmra.mxu1 %v2621_v40 }
 0x557   : > { %v2624_v46 = vmax.f32 %v2547_v25, 0.0  ;;  %v2551_v56 = vadd.f32 %v2550_v57, %v5529_v51 }
 0x558   : > { %v2552_v45 = vpop.f32.mrf.mxu0 }
 0x559   : > { %v2553_v58 = vadd.f32 %v2552_v45, %v5533_v54  ;;  %2874 = vmatprep.mubr.f32.mxu1 %v2624_v46  ;;  %v2625_v63 = vmax.f32 %v2551_v56, 0.0 }
 0x55a   : > { %v2556_v18 = vpop.f32.mrf.mxu0  ;;  %2875 = vmatmul.mubr.f32.gmra.mxu1 %v2623_v41 }
 0x55b   : > { %v2626_v60 = vmax.f32 %v2553_v58, 0.0  ;;  %v2557_v1 = vadd.f32 %v2556_v18, %v5529_v51 }
 0x55c   : > { %v2558_v62 = vpop.f32.mrf.mxu0 }
 0x55d   : > { %v2559_v5 = vadd.f32 %v2558_v62, %v5533_v54  ;;  %2879 = vmatprep.mubr.f32.mxu1 %v2626_v60  ;;  %v2627_v12 = vmax.f32 %v2557_v1, 0.0 }
 0x55e   : > { %v2562_v52 = vpop.f32.mrf.mxu0  ;;  %2880 = vmatmul.mubr.f32.gmra.mxu1 %v2625_v63 }
 0x55f   : > { %v2628_v55 = vmax.f32 %v2559_v5, 0.0  ;;  %v2563_v7 = vadd.f32 %v2562_v52, %v5529_v51 }
 0x560   : > { %v2564_v17 = vpop.f32.mrf.mxu0 }
 0x561   : > { %v2565_v0 = vadd.f32 %v2564_v17, %v5533_v54  ;;  %2884 = vmatprep.mubr.f32.mxu1 %v2628_v55  ;;  %v2629_v22 = vmax.f32 %v2563_v7, 0.0 }
 0x562   : > { %2885 = vmatmul.mubr.f32.gmra.mxu1 %v2627_v12 }
 0x563   : > { %v2630_v20 = vmax.f32 %v2565_v0, 0.0 }
 0x565   : > { %2889 = vmatprep.mubr.f32.mxu1 %v2630_v20 }
 0x566   : > { %2890 = vmatmul.mubr.f32.gmra.mxu1 %v2629_v22 }
 0x5aa   : > { %v2736_v31 = vpop.f32.mrf.mxu0 }
 0x5ab   : > { %v2737_v15 = vadd.f32 %v5602_v24, %v2736_v31 }
 0x5ac   : > { %v2738_v61 = vpop.f32.mrf.mxu0 }
 0x5ad   : > { %v3290_v9 = vmul.f32 -1.442695, %v2737_v15 }
 0x5ae   : > { %v2741_v51 = vpop.f32.mrf.mxu0 }
 0x5af   : > { %3790 = vpow2.f32 %v3290_v9  ;;  %v2742_v54 = vadd.f32 %v5602_v24, %v2741_v51 }
 0x5b0   : > { %v2743_v8 = vpop.f32.mrf.mxu0 }
 0x5b1   : > { %v3291_v11 = vmul.f32 -1.442695, %v2742_v54 }
 0x5b2   : > { %v2746_v26 = vpop.f32.mrf.mxu0 }
 0x5b3   : > { %3792 = vpow2.f32 %v3291_v11  ;;  %v2747_v4 = vadd.f32 %v5602_v24, %v2746_v26 }
 0x5b4   : > { %v2748_v3 = vpop.f32.mrf.mxu0 }
 0x5b5   : > { %v3292_v6 = vmul.f32 -1.442695, %v2747_v4 }
 0x5b6   : > { %v2751_v29 = vpop.f32.mrf.mxu0 }
 0x5b7   : > { %3794 = vpow2.f32 %v3292_v6  ;;  %v2752_v35 = vadd.f32 %v5602_v24, %v2751_v29 }
 0x5b8   : > { %v2753_v30 = vpop.f32.mrf.mxu0 }
 0x5b9   : > { %v3293_v59 = vmul.f32 -1.442695, %v2752_v35 }
 0x5ba   : > { %v2756_v33 = vpop.f32.mrf.mxu1 }
 0x5bb   : > { %3796 = vpow2.f32 %v3293_v59  ;;  %v2757_v34 = vadd.f32 %v5602_v24, %v2756_v33 }
 0x5bc   : > { %v3791_v36 = vpop.eup %3790  ;;  %v2758_v23 = vpop.f32.mrf.mxu1 }
 0x5bd   : > { %v2991_v16 = vadd.f32 1.0, %v3791_v36  ;;  %v3294_v27 = vmul.f32 -1.442695, %v2757_v34 }
 0x5be   : > { %v2761_v37 = vpop.f32.mrf.mxu1 }
 0x5bf   : > { %3798 = vrcp.f32 %v2991_v16  ;;  %v2762_v19 = vadd.f32 %v5602_v24, %v2761_v37 }
 0x5c0   : > { %v3793_v39 = vpop.eup %3792  ;;  %3800 = vpow2.f32 %v3294_v27  ;;  %v2763_v43 = vpop.f32.mrf.mxu1 }
 0x5c1   : > { %v2992_v13 = vadd.f32 1.0, %v3793_v39  ;;  %v3295_v10 = vmul.f32 -1.442695, %v2762_v19 }
 0x5c2   : > { %v2766_v47 = vpop.f32.mrf.mxu1 }
 0x5c3   : > { %3802 = vrcp.f32 %v2992_v13  ;;  %v2767_v38 = vadd.f32 %v5602_v24, %v2766_v47 }
 0x5c4   : > { %v3795_v14 = vpop.eup %3794  ;;  %3804 = vpow2.f32 %v3295_v10  ;;  %v2768_v44 = vpop.f32.mrf.mxu1 }
 0x5c5   : > { %v2993_v48 = vadd.f32 1.0, %v3795_v14  ;;  %v3296_v28 = vmul.f32 -1.442695, %v2767_v38 }
 0x5c6   : > { %v2771_v42 = vpop.f32.mrf.mxu1 }
 0x5c7   : > { %3806 = vrcp.f32 %v2993_v48  ;;  %v2772_v32 = vadd.f32 %v5602_v24, %v2771_v42 }
 0x5c8   : > { %v3797_v49 = vpop.eup %3796  ;;  %3808 = vpow2.f32 %v3296_v28  ;;  %v2773_v50 = vpop.f32.mrf.mxu1 }
 0x5c9   : > { %v2994_v2 = vadd.f32 1.0, %v3797_v49  ;;  %v3297_v40 = vmul.f32 -1.442695, %v2772_v32 }
 0x5ca   : > { %v2776_v21 = vpop.f32.mrf.mxu1 }
 0x5cb   : > { %3810 = vrcp.f32 %v2994_v2  ;;  %v2777_v53 = vadd.f32 %v5602_v24, %v2776_v21 }
 0x5cc   : > { %v3799_v25 = vpop.eup %3798  ;;  %3812 = vpow2.f32 %v3297_v40  ;;  %v2778_v57 = vpop.f32.mrf.mxu1 }
 0x5cd   : > { %v3801_v46 = vpop.eup %3800  ;;  %3087 = vst [vmem:[%s4828_s28] sm:$0xff] %v3799_v25  ;;  %v3298_v41 = vmul.f32 -1.442695, %v2777_v53 }
 0x5ce   : > { %v2995_v56 = vadd.f32 1.0, %v3801_v46  ;;  %v2781_v45 = vpop.f32.mrf.mxu1 }
 0x5cf   : > { %3814 = vpow2.f32 %v3298_v41  ;;  %v2782_v58 = vadd.f32 %v5602_v24, %v2781_v45 }
 0x5d0   : > { %v3803_v18 = vpop.eup %3802  ;;  %3816 = vrcp.f32 %v2995_v56  ;;  %v2783_v60 = vpop.f32.mrf.mxu1 }
 0x5d1   : > { %v3805_v63 = vpop.eup %3804  ;;  %3088 = vst [vmem:[%s4828_s28 + $0x10] sm:$0xff] %v3803_v18  ;;  %v3299_v1 = vmul.f32 -1.442695, %v2782_v58 }
 0x5d2   : > { %v2996_v62 = vadd.f32 1.0, %v3805_v63  ;;  %v2786_v5 = vpop.f32.mrf.mxu1 }
 0x5d3   : > { %3818 = vpow2.f32 %v3299_v1  ;;  %v2787_v52 = vadd.f32 %v5602_v24, %v2786_v5 }
 0x5d4   : > { %v3807_v55 = vpop.eup %3806  ;;  %3820 = vrcp.f32 %v2996_v62  ;;  %v2788_v12 = vpop.f32.mrf.mxu1 }
 0x5d5   : > { %v3809_v7 = vpop.eup %3808  ;;  %3089 = vst [vmem:[%s4828_s28 + $0x20] sm:$0xff] %v3807_v55  ;;  %v3300_v17 = vmul.f32 -1.442695, %v2787_v52 }
 0x5d6   : > { %v2997_v0 = vadd.f32 1.0, %v3809_v7  ;;  %v2791_v20 = vpop.f32.mrf.mxu1 }
 0x5d7   : > { %3822 = vpow2.f32 %v3300_v17  ;;  %v2792_v22 = vadd.f32 %v5602_v24, %v2791_v20 }
 0x5d8   : > { %v3811_v31 = vpop.eup %3810  ;;  %3824 = vrcp.f32 %v2997_v0  ;;  %v2793_v15 = vpop.f32.mrf.mxu1 }
 0x5d9   : > { %v3813_v61 = vpop.eup %3812  ;;  %3090 = vst [vmem:[%s4828_s28 + $0x30] sm:$0xff] %v3811_v31  ;;  %v3301_v9 = vmul.f32 -1.442695, %v2792_v22 }
 0x5da   : > { %v2998_v51 = vadd.f32 1.0, %v3813_v61  ;;  %v2796_v54 = vpop.f32.mrf.mxu1 }
 0x5db   : > { %3826 = vpow2.f32 %v3301_v9  ;;  %v2797_v8 = vadd.f32 %v5602_v24, %v2796_v54 }
 0x5dc   : > { %v3815_v11 = vpop.eup %3814  ;;  %3828 = vrcp.f32 %v2998_v51  ;;  %v2798_v26 = vpop.f32.mrf.mxu1 }
 0x5dd   : > { %v3817_v4 = vpop.eup %3816  ;;  %v2999_v3 = vadd.f32 1.0, %v3815_v11  ;;  %v3302_v6 = vmul.f32 -1.442695, %v2797_v8 }
 0x5de   : > { %3091 = vst [vmem:[%s4828_s28 + $0x40] sm:$0xff] %v3817_v4  ;;  %v2801_v29 = vpop.f32.mrf.mxu1 }
 0x5df   : > { %3830 = vrcp.f32 %v2999_v3  ;;  %v2802_v35 = vadd.f32 %v5602_v24, %v2801_v29 }
 0x5e0   : > { %v3819_v30 = vpop.eup %3818  ;;  %3832 = vpow2.f32 %v3302_v6  ;;  %v2803_v59 = vpop.f32.mrf.mxu1 }
 0x5e1   : > { %v3821_v33 = vpop.eup %3820  ;;  %v3000_v34 = vadd.f32 1.0, %v3819_v30  ;;  %v3303_v36 = vmul.f32 -1.442695, %v2802_v35 }
 0x5e2   : > { %3092 = vst [vmem:[%s4828_s28 + $0x50] sm:$0xff] %v3821_v33  ;;  %v2806_v23 = vpop.f32.mrf.mxu1 }
 0x5e3   : > { %3834 = vrcp.f32 %v3000_v34  ;;  %v2807_v16 = vadd.f32 %v5602_v24, %v2806_v23 }
 0x5e4   : > { %v3823_v27 = vpop.eup %3822  ;;  %3836 = vpow2.f32 %v3303_v36  ;;  %v2808_v37 = vpop.f32.mrf.mxu1 }
 0x5e5   : > { %v3825_v19 = vpop.eup %3824  ;;  %v3001_v39 = vadd.f32 1.0, %v3823_v27  ;;  %v3304_v43 = vmul.f32 -1.442695, %v2807_v16 }
 0x5e6   : > { %3093 = vst [vmem:[%s4828_s28 + $0x60] sm:$0xff] %v3825_v19  ;;  %v2811_v13 = vpop.f32.mrf.mxu1 }
 0x5e7   : > { %3838 = vrcp.f32 %v3001_v39  ;;  %v2812_v10 = vadd.f32 %v5602_v24, %v2811_v13 }
 0x5e8   : > { %v3827_v47 = vpop.eup %3826  ;;  %3840 = vpow2.f32 %v3304_v43  ;;  %v2813_v38 = vpop.f32.mrf.mxu1 }
 0x5e9   : > { %v3829_v14 = vpop.eup %3828  ;;  %v3002_v44 = vadd.f32 1.0, %v3827_v47  ;;  %v3305_v48 = vmul.f32 -1.442695, %v2812_v10 }
 0x5ea   : > { %3094 = vst [vmem:[%s4828_s28 + $0x70] sm:$0xff] %v3829_v14  ;;  %v2816_v28 = vpop.f32.mrf.mxu1 }
 0x5eb   : > { %3842 = vrcp.f32 %v3002_v44  ;;  %v2817_v42 = vadd.f32 %v5602_v24, %v2816_v28 }
 0x5ec   : > { %v3831_v32 = vpop.eup %3830  ;;  %3844 = vpow2.f32 %v3305_v48  ;;  %v2818_v49 = vpop.f32.mrf.mxu1 }
 0x5ed   : > { %v3833_v50 = vpop.eup %3832  ;;  %3095 = vst [vmem:[%s4828_s28 + $0x80] sm:$0xff] %v3831_v32  ;;  %v3306_v2 = vmul.f32 -1.442695, %v2817_v42 }
 0x5ee   : > { %v3003_v40 = vadd.f32 1.0, %v3833_v50  ;;  %v2821_v21 = vpop.f32.mrf.mxu1 }
 0x5ef   : > { %3846 = vpow2.f32 %v3306_v2  ;;  %v2822_v53 = vadd.f32 %v5602_v24, %v2821_v21 }
 0x5f0   : > { %v3835_v25 = vpop.eup %3834  ;;  %3848 = vrcp.f32 %v3003_v40  ;;  %v2823_v57 = vpop.f32.mrf.mxu1 }
 0x5f1   : > { %v3837_v46 = vpop.eup %3836  ;;  %3096 = vst [vmem:[%s4828_s28 + $0x90] sm:$0xff] %v3835_v25  ;;  %v3307_v41 = vmul.f32 -1.442695, %v2822_v53 }
 0x5f2   : > { %v3004_v56 = vadd.f32 1.0, %v3837_v46  ;;  %v2826_v45 = vpop.f32.mrf.mxu1 }
 0x5f3   : > { %3850 = vpow2.f32 %v3307_v41  ;;  %v2827_v58 = vadd.f32 %v5602_v24, %v2826_v45 }
 0x5f4   : > { %v3839_v18 = vpop.eup %3838  ;;  %3852 = vrcp.f32 %v3004_v56  ;;  %v2828_v60 = vpop.f32.mrf.mxu1 }
 0x5f5   : > { %v3841_v63 = vpop.eup %3840  ;;  %3097 = vst [vmem:[%s4828_s28 + $0xa0] sm:$0xff] %v3839_v18  ;;  %v3308_v1 = vmul.f32 -1.442695, %v2827_v58 }
 0x5f6   : > { %v3005_v62 = vadd.f32 1.0, %v3841_v63  ;;  %v2831_v5 = vpop.f32.mrf.mxu1 }
 0x5f7   : > { %3854 = vpow2.f32 %v3308_v1  ;;  %v2832_v52 = vadd.f32 %v5602_v24, %v2831_v5 }
 0x5f8   : > { %v3843_v55 = vpop.eup %3842  ;;  %3856 = vrcp.f32 %v3005_v62  ;;  %v2833_v12 = vpop.f32.mrf.mxu1 }
 0x5f9   : > { %v3845_v7 = vpop.eup %3844  ;;  %3098 = vst [vmem:[%s4828_s28 + $0xb0] sm:$0xff] %v3843_v55  ;;  %v3309_v17 = vmul.f32 -1.442695, %v2832_v52 }
 0x5fa   : > { %v3006_v0 = vadd.f32 1.0, %v3845_v7  ;;  %v2836_v20 = vpop.f32.mrf.mxu1 }
 0x5fb   : > { %3858 = vpow2.f32 %v3309_v17  ;;  %v2837_v22 = vadd.f32 %v5602_v24, %v2836_v20 }
 0x5fc   : > { %v3847_v31 = vpop.eup %3846  ;;  %3860 = vrcp.f32 %v3006_v0  ;;  %v2838_v15 = vpop.f32.mrf.mxu1 }
 0x5fd   : > { %v3849_v61 = vpop.eup %3848  ;;  %v3007_v9 = vadd.f32 1.0, %v3847_v31  ;;  %v3310_v51 = vmul.f32 -1.442695, %v2837_v22 }
 0x5fe   : > { %3099 = vst [vmem:[%s4828_s28 + $0xc0] sm:$0xff] %v3849_v61  ;;  %v2841_v54 = vpop.f32.mrf.mxu1 }
 0x5ff   : > { %3862 = vrcp.f32 %v3007_v9  ;;  %v2842_v8 = vadd.f32 %v5602_v24, %v2841_v54 }
 0x600   : > { %v3851_v11 = vpop.eup %3850  ;;  %3864 = vpow2.f32 %v3310_v51  ;;  %v2843_v26 = vpop.f32.mrf.mxu1 }
 0x601   : > { %v3853_v4 = vpop.eup %3852  ;;  %v3008_v3 = vadd.f32 1.0, %v3851_v11  ;;  %v3311_v6 = vmul.f32 -1.442695, %v2842_v8 }
 0x602   : > { %3100 = vst [vmem:[%s4828_s28 + $0xd0] sm:$0xff] %v3853_v4  ;;  %v2846_v29 = vpop.f32.mrf.mxu1 }
 0x603   : > { %3866 = vrcp.f32 %v3008_v3  ;;  %v2847_v35 = vadd.f32 %v5602_v24, %v2846_v29 }
 0x604   : > { %v3855_v30 = vpop.eup %3854  ;;  %3868 = vpow2.f32 %v3311_v6  ;;  %v2848_v59 = vpop.f32.mrf.mxu1 }
 0x605   : > { %v3857_v33 = vpop.eup %3856  ;;  %v3009_v34 = vadd.f32 1.0, %v3855_v30  ;;  %v3312_v36 = vmul.f32 -1.442695, %v2847_v35 }
 0x606   : > { %3101 = vst [vmem:[%s4828_s28 + $0xe0] sm:$0xff] %v3857_v33  ;;  %v2851_v23 = vpop.f32.mrf.mxu1 }
 0x607   : > { %3870 = vrcp.f32 %v3009_v34  ;;  %v2852_v16 = vadd.f32 %v5602_v24, %v2851_v23 }
 0x608   : > { %v3859_v27 = vpop.eup %3858  ;;  %3872 = vpow2.f32 %v3312_v36  ;;  %v2853_v37 = vpop.f32.mrf.mxu1 }
 0x609   : > { %v3861_v19 = vpop.eup %3860  ;;  %v3010_v39 = vadd.f32 1.0, %v3859_v27  ;;  %v3313_v43 = vmul.f32 -1.442695, %v2852_v16 }
 0x60a   : > { %3102 = vst [vmem:[%s4828_s28 + $0xf0] sm:$0xff] %v3861_v19  ;;  %v2856_v13 = vpop.f32.mrf.mxu1 }
 0x60b   : > { %3874 = vrcp.f32 %v3010_v39  ;;  %v2857_v10 = vadd.f32 %v5602_v24, %v2856_v13 }
 0x60c   : > { %v3863_v47 = vpop.eup %3862  ;;  %3876 = vpow2.f32 %v3313_v43  ;;  %v2858_v38 = vpop.f32.mrf.mxu1 }
 0x60d   : > { %v3865_v14 = vpop.eup %3864  ;;  %3103 = vst [vmem:[%s4828_s28 + $0x100] sm:$0xff] %v3863_v47  ;;  %v3314_v44 = vmul.f32 -1.442695, %v2857_v10 }
 0x60e   : > { %v3011_v48 = vadd.f32 1.0, %v3865_v14  ;;  %v2861_v28 = vpop.f32.mrf.mxu1 }
 0x60f   : > { %3878 = vpow2.f32 %v3314_v44  ;;  %v2862_v42 = vadd.f32 %v5602_v24, %v2861_v28 }
 0x610   : > { %v3867_v32 = vpop.eup %3866  ;;  %3880 = vrcp.f32 %v3011_v48  ;;  %v2863_v49 = vpop.f32.mrf.mxu1 }
 0x611   : > { %v3869_v50 = vpop.eup %3868  ;;  %3104 = vst [vmem:[%s4828_s28 + $0x110] sm:$0xff] %v3867_v32  ;;  %v3315_v2 = vmul.f32 -1.442695, %v2862_v42 }
 0x612   : > { %v3012_v40 = vadd.f32 1.0, %v3869_v50  ;;  %v2866_v21 = vpop.f32.mrf.mxu1 }
 0x613   : > { %3882 = vpow2.f32 %v3315_v2  ;;  %v2867_v53 = vadd.f32 %v5602_v24, %v2866_v21 }
 0x614   : > { %v3871_v25 = vpop.eup %3870  ;;  %3884 = vrcp.f32 %v3012_v40  ;;  %v2868_v57 = vpop.f32.mrf.mxu1 }
 0x615   : > { %v3873_v46 = vpop.eup %3872  ;;  %3105 = vst [vmem:[%s4828_s28 + $0x120] sm:$0xff] %v3871_v25  ;;  %v3316_v41 = vmul.f32 -1.442695, %v2867_v53 }
 0x616   : > { %v3013_v56 = vadd.f32 1.0, %v3873_v46  ;;  %v2871_v45 = vpop.f32.mrf.mxu1 }
 0x617   : > { %3886 = vpow2.f32 %v3316_v41  ;;  %v2872_v58 = vadd.f32 %v5602_v24, %v2871_v45 }
 0x618   : > { %v3875_v18 = vpop.eup %3874  ;;  %3888 = vrcp.f32 %v3013_v56  ;;  %v2873_v60 = vpop.f32.mrf.mxu1 }
 0x619   : > { %v3877_v63 = vpop.eup %3876  ;;  %3106 = vst [vmem:[%s4828_s28 + $0x130] sm:$0xff] %v3875_v18  ;;  %v3317_v1 = vmul.f32 -1.442695, %v2872_v58 }
 0x61a   : > { %v3014_v62 = vadd.f32 1.0, %v3877_v63  ;;  %v2876_v5 = vpop.f32.mrf.mxu1 }
 0x61b   : > { %3890 = vpow2.f32 %v3317_v1  ;;  %v2877_v52 = vadd.f32 %v5602_v24, %v2876_v5 }
 0x61c   : > { %v3879_v55 = vpop.eup %3878  ;;  %3892 = vrcp.f32 %v3014_v62  ;;  %v2878_v12 = vpop.f32.mrf.mxu1 }
 0x61d   : > { %v3881_v7 = vpop.eup %3880  ;;  %v3015_v17 = vadd.f32 1.0, %v3879_v55  ;;  %v3318_v0 = vmul.f32 -1.442695, %v2877_v52 }
 0x61e   : > { %3107 = vst [vmem:[%s4828_s28 + $0x140] sm:$0xff] %v3881_v7  ;;  %v2881_v20 = vpop.f32.mrf.mxu1 }
 0x61f   : > { %3894 = vrcp.f32 %v3015_v17  ;;  %v2882_v22 = vadd.f32 %v5602_v24, %v2881_v20 }
 0x620   : > { %v3883_v31 = vpop.eup %3882  ;;  %3896 = vpow2.f32 %v3318_v0  ;;  %v2883_v15 = vpop.f32.mrf.mxu1 }
 0x621   : > { %v3885_v61 = vpop.eup %3884  ;;  %v3016_v9 = vadd.f32 1.0, %v3883_v31  ;;  %v3319_v51 = vmul.f32 -1.442695, %v2882_v22 }
 0x622   : > { %3108 = vst [vmem:[%s4828_s28 + $0x150] sm:$0xff] %v3885_v61  ;;  %v2886_v54 = vpop.f32.mrf.mxu1 }
 0x623   : > { %3898 = vrcp.f32 %v3016_v9  ;;  %v2887_v8 = vadd.f32 %v5602_v24, %v2886_v54 }
 0x624   : > { %v3887_v11 = vpop.eup %3886  ;;  %3900 = vpow2.f32 %v3319_v51  ;;  %v2888_v26 = vpop.f32.mrf.mxu1 }
 0x625   : > { %v3889_v4 = vpop.eup %3888  ;;  %v3017_v3 = vadd.f32 1.0, %v3887_v11  ;;  %v3320_v6 = vmul.f32 -1.442695, %v2887_v8 }
 0x626   : > { %3109 = vst [vmem:[%s4828_s28 + $0x160] sm:$0xff] %v3889_v4  ;;  %v2891_v29 = vpop.f32.mrf.mxu1 }
 0x627   : > { %3902 = vrcp.f32 %v3017_v3  ;;  %v2892_v35 = vadd.f32 %v5602_v24, %v2891_v29 }
 0x628   : > { %v3891_v30 = vpop.eup %3890  ;;  %3904 = vpow2.f32 %v3320_v6  ;;  %v2893_v59 = vpop.f32.mrf.mxu1 }
 0x629   : > { %v3893_v33 = vpop.eup %3892  ;;  %v3018_v34 = vadd.f32 1.0, %v3891_v30  ;;  %v3321_v36 = vmul.f32 -1.442695, %v2892_v35 }
 0x62a   : > { %3110 = vst [vmem:[%s4828_s28 + $0x170] sm:$0xff] %v3893_v33 }
 0x62b   : > { %3906 = vrcp.f32 %v3018_v34 }
 0x62c   : > { %v3895_v23 = vpop.eup %3894  ;;  %3908 = vpow2.f32 %v3321_v36 }
 0x62d   : > { %v3897_v16 = vpop.eup %3896  ;;  %3111 = vst [vmem:[%s4828_s28 + $0x180] sm:$0xff] %v3895_v23 }
 0x62e   : > { %v3019_v27 = vadd.f32 1.0, %v3897_v16 }
 0x630   : > { %v3899_v37 = vpop.eup %3898  ;;  %3910 = vrcp.f32 %v3019_v27 }
 0x631   : > { %v3901_v24 = vpop.eup %3900  ;;  %3112 = vst [vmem:[%s4828_s28 + $0x190] sm:$0xff] %v3899_v37 }
 0x632   : > { %v3020_v19 = vadd.f32 1.0, %v3901_v24 }
 0x634   : > { %v3903_v39 = vpop.eup %3902  ;;  %3912 = vrcp.f32 %v3020_v19 }
 0x635   : > { %v3905_v43 = vpop.eup %3904  ;;  %3113 = vst [vmem:[%s4828_s28 + $0x1a0] sm:$0xff] %v3903_v39 }
 0x636   : > { %v3021_v13 = vadd.f32 1.0, %v3905_v43 }
 0x638   : > { %v3907_v10 = vpop.eup %3906  ;;  %3914 = vrcp.f32 %v3021_v13 }
 0x639   : > { %v3909_v47 = vpop.eup %3908  ;;  %3114 = vst [vmem:[%s4828_s28 + $0x1b0] sm:$0xff] %v3907_v10 }
 0x63a   : > { %v3022_v38 = vadd.f32 1.0, %v3909_v47 }
 0x63c   : > { %3916 = vrcp.f32 %v3022_v38 }
 0x63d   : > { %v3911_v14 = vpop.eup %3910 }
 0x63e   : > { %3115 = vst [vmem:[%s4828_s28 + $0x1c0] sm:$0xff] %v3911_v14 }
 0x641   : > { %v3913_v44 = vpop.eup %3912 }
 0x642   : > { %3116 = vst [vmem:[%s4828_s28 + $0x1d0] sm:$0xff] %v3913_v44 }
 0x645   : > { %v3915_v48 = vpop.eup %3914 }
 0x646   : > { %3117 = vst [vmem:[%s4828_s28 + $0x1e0] sm:$0xff] %v3915_v48 }
 0x649   : > { %v3917_v28 = vpop.eup %3916 }
 0x64a   : > { %3118 = vst [vmem:[%s4828_s28 + $0x1f0] sm:$0xff] %v3917_v28 }
 0x64b   : > { %4011 = shalt.err (!%p4008_p4)
}
 0x64c   : > { %s4012_s28 = scalar_lea.hbm %s5672_s20, 8192  ;;  %s4016_s15 = scalar_lea.hbm %s5733_s14, 16384 }
 0x64d   : > { %p4013_p7 = scmp.ne.s32.totalorder %s5672_s20, %s4012_s28  ;;  %p4017_p11 = scmp.lt.s32.totalorder %s5672_s20, %s5733_s14 }
 0x64e   : > { %p4018_p0 = scmp.lt.s32.totalorder %s4016_s15, %s4012_s28 }
 0x64f   : > { %p4014_p13 = pnand %p4013_p7, %p5758_p2 }
 0x650   : > { %p4019_p12 = por %p4018_p0, %p4017_p11 }
 0x651   : > { %p4015_p8 = pneg %p4014_p13 }
 0x653   : > { %p4020_p1 = pnand %p4019_p12, %p4015_p8 }
 0x655   : > { %4023 = shalt.err (!%p4020_p1)
}
 0x656   : > { %s4076_s26 = smov 256   ;;  %s4077_s3 = smov 16  }
 0x657   : > { %3662 = dma.vmem_to_hbm [thread:$0]  (%p5758_p2), %s5674_s19, 8192, %s5672_s20, %s5679_s21, %s4076_s26, %s4076_s26, %s4077_s3  }
 0x658 PF: > { %p3684_p9 = scmp.ge.s32.totalorder %s4066_s16, 2  ;;  %s3181_s18 = sand.u32 1, %s4054_s29  }
 0x659   : > { %p5759_p3 = scmp.ne.s32.totalorder %s5747_s24, 0  ;;  %s3182_s28 = scalar_lea.sflag [#allocation6], %s3181_s18 }
 0x65b   : > { %p3675_p6 = pnand %p3684_p9, %p5759_p3 }
 0x65d   : > { %p3676_p5 = pneg %p3675_p6 }
 0x65f   : > { %4049 = dma.done.wait (%p3676_p5), %s3182_s28, 8192  }
 0x660   : > { %4051 = vsyncadd (%p3676_p5), %s3182_s28, 4294959104  ;;  %s5760_s16 = sld [smem:[#allocation15_spill]]  ;;  %s5763_s29 = smov %s4058_s30 }
 0x661   : > { %s5761_s22 = sld [smem:[#allocation14_spill]] }
 0x662   : > { %s5762_s15 = sld [smem:[#allocation16_spill]] }
 0x666   : > { %p26_p10 = scmp.ge.s32.totalorder %s5760_s16, 4  }
 0x667   : > { %s5764_s30 = smov %s5761_s22 }
 0x668   :  { %28 = sbr.rel (!%p26_p10) target bundleno = 7 (0x7), region = 127 }
 0x66d   :  { %3187 = vsyncpa [#allocation5], 1 }
 0x66e   :  { %3189 = vsyncpa [#allocation5 + $0x1], 1 }
 0x66f   :  { %3190 = vsyncpa [#allocation8], 1 }
 0x670   :  { %3191 = vsyncpa [#allocation6], 1 }
 0x671   :  { %3193 = vsyncpa [#allocation6 + $0x1], 1 }

</bundles_post_ra>
